<compile_context>
chip_gen: v7x
topology: tpu7x:2x2x1
jax: 0.10.0
libtpu: 0.0.40
codegen_flags: <defaults>
</compile_context>

<pallas_src>
import math
import functools

import jax
import jax.numpy as jnp
from jax.experimental import pallas as pl
from jax.experimental.pallas import tpu as pltpu


# ----------------------------- in-kernel helpers -----------------------------

def _erf(x):
    # Abramowitz & Stegun 7.1.26, |err| < 1.5e-7 -> matches exact nn.GELU() at
    # f32 precision.  Kept (instead of tanh-GELU) to preserve reference
    # numerics; the exp() already lands on the EUP slot.
    a1, a2, a3, a4, a5 = 0.254829592, -0.284496736, 1.421413741, -1.453152027, 1.061405429
    p = 0.3275911
    sgn = jnp.where(x < 0.0, -1.0, 1.0)
    ax = jnp.abs(x)
    t = 1.0 / (1.0 + p * ax)
    poly = ((((a5 * t + a4) * t + a3) * t + a2) * t + a1) * t
    return sgn * (1.0 - poly * jnp.exp(-ax * ax))


def _gelu(x):
    # exact (erf-based) GELU, like nn.GELU()
    return 0.5 * x * (1.0 + _erf(x * (1.0 / math.sqrt(2.0))))


def _layernorm(x3, gamma, beta, eps=1e-5):
    """nn.LayerNorm(normalized_shape=(T, D)) applied per batch element of the
    (Bb, T, D) block.  Fused single pass: E[x] and E[x^2] computed together."""
    Bb, T, D = x3.shape
    inv_n = 1.0 / float(T * D)
    s1 = jnp.sum(x3, axis=-1, keepdims=True)            # (Bb, T, 1)
    s2 = jnp.sum(x3 * x3, axis=-1, keepdims=True)
    mu = jnp.sum(s1, axis=-2, keepdims=True) * inv_n     # (Bb, 1, 1)
    ms = jnp.sum(s2, axis=-2, keepdims=True) * inv_n
    var = ms - mu * mu
    xhat = (x3 - mu) * jax.lax.rsqrt(var + eps)
    return xhat * gamma + beta                           # gamma/beta (T, D) broadcast


def _softmax(x):
    m = jnp.max(x, axis=-1, keepdims=True)
    e = jnp.exp(x - m)
    return e / jnp.sum(e, axis=-1, keepdims=True)


def _mm(a, b, dtype):
    # Optionally cast MXU operands (e.g. bf16 on v6e/v7x); always accumulate f32.
    if dtype is not None:
        a = a.astype(dtype)
        b = b.astype(dtype)
    return jnp.dot(a, b, preferred_element_type=jnp.float32)


def _mha(xq_flat, xkv_flat, Bb, Tq, Tk,
         wq, bq, wk, bk, wv, bv, wo, bo, num_heads, bias, mm_dtype):
    """Multi-head attention for a batch block.
    Q/K/V and the output projection are lane-dense 2D matmuls on (Bb*T, D);
    score / value matmuls are batched over the Bb sequences with 3D einsums.
    Head outputs are folded into the output-projection accumulation, i.e.
    concat(o_h) @ Wo == sum_h o_h @ Wo[h*dh:(h+1)*dh, :]  (no concatenate)."""
    D = xq_flat.shape[-1]
    dh = D // num_heads
    scale = 1.0 / math.sqrt(dh)

    q = _mm(xq_flat, wq, mm_dtype) + bq          # (Bb*Tq, D)
    k = _mm(xkv_flat, wk, mm_dtype) + bk         # (Bb*Tk, D)
    v = _mm(xkv_flat, wv, mm_dtype) + bv         # (Bb*Tk, D)

    q3 = q.reshape(Bb, Tq, D)
    k3 = k.reshape(Bb, Tk, D)
    v3 = v.reshape(Bb, Tk, D)

    out = jnp.zeros((Bb * Tq, D), jnp.float32)
    for h in range(num_heads):                   # static, small head count
        lo, hi = h * dh, (h + 1) * dh
        qh = q3[:, :, lo:hi]                     # (Bb, Tq, dh)
        kh = k3[:, :, lo:hi]                     # (Bb, Tk, dh)
        vh = v3[:, :, lo:hi]
        s = jnp.einsum('bqd,bkd->bqk', qh, kh,
                       preferred_element_type=jnp.float32) * scale
        if bias is not None:
            s = s + bias                         # additive causal bias (T, T)
        p = _softmax(s)
        oh = jnp.einsum('bqk,bkd->bqd', p, vh,
                        preferred_element_type=jnp.float32)
        out = out + _mm(oh.reshape(Bb * Tq, dh), wo[lo:hi, :], mm_dtype)
    return out + bo


# --------------------------------- kernel ------------------------------------

def decoder_kernel(h_ref, e_ref,
                   s_wq, s_bq, s_wk, s_bk, s_wv, s_bv, s_wo, s_bo,
                   c_wq, c_bq, c_wk, c_bk, c_wv, c_bv, c_wo, c_bo,
                   ln_g, ln_b,
                   f_w1, f_b1, f_w2, f_b2,
                   o_ref, *, num_heads, masking, mm_dtype):
    Bb, T, D = h_ref.shape
    _, Te, _ = e_ref.shape

    H3 = h_ref[...]                       # (Bb, T, D)
    E3 = e_ref[...]                       # (Bb, Te, D)
    Hf = H3.reshape(Bb * T, D)
    Ef = E3.reshape(Bb * Te, D)

    if masking:
        row = jax.lax.broadcasted_iota(jnp.int32, (T, T), 0)
        col = jax.lax.broadcasted_iota(jnp.int32, (T, T), 1)
        # Additive form of masked_fill(mask == 0, -inf): identical softmax
        # result (exp underflows to exactly 0), no -inf/NaN edge case.
        bias = jnp.where(row >= col, 0.0, -1e30).astype(jnp.float32)
    else:
        bias = None

    gamma = ln_g[...]
    beta = ln_b[...]

    # --- masked multi-head self-attention + residual + LayerNorm ---
    attn1 = _mha(Hf, Hf, Bb, T, T,
                 s_wq[...], s_bq[...], s_wk[...], s_bk[...],
                 s_wv[...], s_bv[...], s_wo[...], s_bo[...],
                 num_heads, bias, mm_dtype)
    S = _layernorm(H3 + attn1.reshape(Bb, T, D), gamma, beta)

    # --- cross-attention (queries from S, keys/values from encoder memory) ---
    attn2 = _mha(S.reshape(Bb * T, D), Ef, Bb, T, Te,
                 c_wq[...], c_bq[...], c_wk[...], c_bk[...],
                 c_wv[...], c_bv[...], c_wo[...], c_bo[...],
                 num_heads, None, mm_dtype)
    tff = _layernorm(S + attn2.reshape(Bb, T, D), gamma, beta)

    # --- feed-forward: Linear(D,4D) -> GELU -> [Dropout: eval no-op] -> Linear(4D,D)
    # TODO(synk): for very large D on v7x, stream f_w1/f_w2 from HBM (pl.ANY +
    # pltpu.emit_pipeline or an extra grid axis over the 4D hidden dim) instead
    # of keeping them VMEM-resident and double-buffered.
    tf2 = tff.reshape(Bb * T, D)
    ff = _mm(tf2, f_w1[...], mm_dtype) + f_b1[...]
    ff = _gelu(ff)
    ff = _mm(ff, f_w2[...], mm_dtype) + f_b2[...]

    o_ref[...] = _layernorm(tff + ff.reshape(Bb, T, D), gamma, beta)


# -------------------------------- wrapper -------------------------------------

def _pick_block_b(B, T, target_rows=256, max_rows=1024):
    """Choose batch-block size: fill the MXU M dimension (>= target_rows rows per
    grid step when possible) while keeping >= 2 grid steps so both v7x
    TensorCores get work and VMEM stays bounded."""
    divs = [d for d in range(1, B + 1) if B % d == 0 and d * T <= max_rows]
    if not divs:
        return 1
    multi = [d for d in divs if B // d >= 2] or divs
    meets = [d for d in multi if d * T >= target_rows]
    return min(meets) if meets else max(multi)


def _vmem_budget(params, block_b, T, Te, D):
    """Explicit scoped-VMEM budget: resident (double-buffered) weights + I/O
    blocks + a generous bound on in-kernel intermediates, clamped to [16, 64] MiB."""
    f = 4
    param_bytes = sum(int(p.size) * p.dtype.itemsize for p in params)
    act_bytes = 2 * block_b * (2 * T * D + Te * D) * f          # double-buffered blocks
    inter_bytes = block_b * (20 * T * D + 3 * Te * D + 4 * T * max(T, Te)) * f
    est = int((2 * param_bytes + act_bytes + inter_bytes) * 1.5) + (2 << 20)
    return max(16 << 20, min(est, 64 << 20))


def decoder_forward(Hx, Ex, params, *, num_heads, masking=True,
                    block_b=None, matmul_dtype=None):
    """matmul_dtype=None keeps exact f32 semantics; pass jnp.bfloat16 on v6e/v7x
    to halve matmul-operand bytes (accumulation stays f32)."""
    B, T, D = Hx.shape
    _, Te, _ = Ex.shape
    if block_b is None:
        block_b = _pick_block_b(B, T)
    assert B % block_b == 0, "batch must be divisible by block_b"

    kern = functools.partial(decoder_kernel, num_heads=num_heads,
                             masking=masking, mm_dtype=matmul_dtype)

    # Parameters are grid-invariant (constant index_map), kept VMEM-resident.
    # TODO(synk): single-buffer these with pipeline_mode=pl.Buffered(1) once it
    # is reliable for pallas_call inputs (halves parameter VMEM footprint).
    param_specs = [pl.BlockSpec(p.shape, lambda b: (0, 0)) for p in params]
    in_specs = [
        pl.BlockSpec((block_b, T, D), lambda b: (b, 0, 0)),
        pl.BlockSpec((block_b, Te, D), lambda b: (b, 0, 0)),
    ] + param_specs
    out_spec = pl.BlockSpec((block_b, T, D), lambda b: (b, 0, 0))

    return pl.pallas_call(
        kern,
        out_shape=jax.ShapeDtypeStruct((B, T, D), jnp.float32),
        grid_spec=pltpu.PrefetchScalarGridSpec(
            num_scalar_prefetch=0,
            grid=(B // block_b,),
            in_specs=in_specs,
            out_specs=out_spec,
        ),
        compiler_params=pltpu.CompilerParams(
            dimension_semantics=("parallel",),
            vmem_limit_bytes=_vmem_budget(params, block_b, T, Te, D)),
    )(Hx, Ex, *params)


# ------------------------------ parameter init ---------------------------------

def _linear_init(key, fan_in, fan_out):
    # mimic nn.Linear default init (uniform +/- 1/sqrt(fan_in)), deterministic
    kw, kb = jax.random.split(key)
    bound = 1.0 / math.sqrt(fan_in)
    w = jax.random.uniform(kw, (fan_in, fan_out), jnp.float32, -bound, bound)
    b = jax.random.uniform(kb, (1, fan_out), jnp.float32, -bound, bound)
    return w, b


def make_params(key, T, D):
    keys = jax.random.split(key, 10)
    # self-attention q, k, v, out
    s_wq, s_bq = _linear_init(keys[0], D, D)
    s_wk, s_bk = _linear_init(keys[1], D, D)
    s_wv, s_bv = _linear_init(keys[2], D, D)
    s_wo, s_bo = _linear_init(keys[3], D, D)
    # cross-attention q, k, v, out
    c_wq, c_bq = _linear_init(keys[4], D, D)
    c_wk, c_bk = _linear_init(keys[5], D, D)
    c_wv, c_bv = _linear_init(keys[6], D, D)
    c_wo, c_bo = _linear_init(keys[7], D, D)
    # shared LayerNorm over (T, D) (reused three times, as in the PyTorch code)
    ln_g = jnp.ones((T, D), jnp.float32)
    ln_b = jnp.zeros((T, D), jnp.float32)
    # feed-forward
    f_w1, f_b1 = _linear_init(keys[8], D, 4 * D)
    f_w2, f_b2 = _linear_init(keys[9], 4 * D, D)
    return [s_wq, s_bq, s_wk, s_bk, s_wv, s_bv, s_wo, s_bo,
            c_wq, c_bq, c_wk, c_bk, c_wv, c_bv, c_wo, c_bo,
            ln_g, ln_b,
            f_w1, f_b1, f_w2, f_b2]


# ---------------------------------- main ---------------------------------------

if __name__ == "__main__":
    # seq_length=8, embd_dim=32, 4 heads; B=4 -> block_b=2, 2 parallel grid steps
    B, T, Te, D, NUM_HEADS = 4, 8, 8, 32, 4
    key = jax.random.PRNGKey(0)
    kH, kE, kP = jax.random.split(key, 3)

    H = jax.random.normal(kH, (B, T, D), jnp.float32)    # decoder input
    E = jax.random.normal(kE, (B, Te, D), jnp.float32)   # encoder memory
    params = make_params(kP, T, D)

    out = decoder_forward(H, E, params, num_heads=NUM_HEADS, masking=True)
    out = jax.block_until_ready(out)
    assert out.shape == (B, T, D) and out.dtype == jnp.float32
    assert bool(jnp.all(jnp.isfinite(out)))
    print("KERNEL_OK")
</pallas_src>

<mosaic_0001>
module attributes {stable_mosaic.version = 11 : i64} {
  func.func @decoder_kernel(%arg0: i32, %arg1: memref<2x8x32xf32, #tpu.memory_space<vmem>>, %arg2: memref<2x8x32xf32, #tpu.memory_space<vmem>>, %arg3: memref<32x32xf32, #tpu.memory_space<vmem>>, %arg4: memref<1x32xf32, #tpu.memory_space<vmem>>, %arg5: memref<32x32xf32, #tpu.memory_space<vmem>>, %arg6: memref<1x32xf32, #tpu.memory_space<vmem>>, %arg7: memref<32x32xf32, #tpu.memory_space<vmem>>, %arg8: memref<1x32xf32, #tpu.memory_space<vmem>>, %arg9: memref<32x32xf32, #tpu.memory_space<vmem>>, %arg10: memref<1x32xf32, #tpu.memory_space<vmem>>, %arg11: memref<32x32xf32, #tpu.memory_space<vmem>>, %arg12: memref<1x32xf32, #tpu.memory_space<vmem>>, %arg13: memref<32x32xf32, #tpu.memory_space<vmem>>, %arg14: memref<1x32xf32, #tpu.memory_space<vmem>>, %arg15: memref<32x32xf32, #tpu.memory_space<vmem>>, %arg16: memref<1x32xf32, #tpu.memory_space<vmem>>, %arg17: memref<32x32xf32, #tpu.memory_space<vmem>>, %arg18: memref<1x32xf32, #tpu.memory_space<vmem>>, %arg19: memref<8x32xf32, #tpu.memory_space<vmem>>, %arg20: memref<8x32xf32, #tpu.memory_space<vmem>>, %arg21: memref<32x128xf32, #tpu.memory_space<vmem>>, %arg22: memref<1x128xf32, #tpu.memory_space<vmem>>, %arg23: memref<128x32xf32, #tpu.memory_space<vmem>>, %arg24: memref<1x32xf32, #tpu.memory_space<vmem>>, %arg25: memref<2x8x32xf32, #tpu.memory_space<vmem>>) attributes {dimension_semantics = [#tpu.dimension_semantics<parallel>], iteration_bounds = array<i64: 2>, scalar_prefetch = 0 : i64, scratch_operands = 0 : i64, tpu.core_type = #tpu.core_type<tc>, window_params = [{transform_indices = @transform_0, window_bounds = array<i64: 2, 8, 32>}, {transform_indices = @transform_1, window_bounds = array<i64: 2, 8, 32>}, {pipeline_mode = #tpu.pipeline_mode<synchronous>, transform_indices = @transform_2, window_bounds = array<i64: 32, 32>}, {pipeline_mode = #tpu.pipeline_mode<synchronous>, transform_indices = @transform_3, window_bounds = array<i64: 1, 32>}, {pipeline_mode = #tpu.pipeline_mode<synchronous>, transform_indices = @transform_4, window_bounds = array<i64: 32, 32>}, {pipeline_mode = #tpu.pipeline_mode<synchronous>, transform_indices = @transform_5, window_bounds = array<i64: 1, 32>}, {pipeline_mode = #tpu.pipeline_mode<synchronous>, transform_indices = @transform_6, window_bounds = array<i64: 32, 32>}, {pipeline_mode = #tpu.pipeline_mode<synchronous>, transform_indices = @transform_7, window_bounds = array<i64: 1, 32>}, {pipeline_mode = #tpu.pipeline_mode<synchronous>, transform_indices = @transform_8, window_bounds = array<i64: 32, 32>}, {pipeline_mode = #tpu.pipeline_mode<synchronous>, transform_indices = @transform_9, window_bounds = array<i64: 1, 32>}, {pipeline_mode = #tpu.pipeline_mode<synchronous>, transform_indices = @transform_10, window_bounds = array<i64: 32, 32>}, {pipeline_mode = #tpu.pipeline_mode<synchronous>, transform_indices = @transform_11, window_bounds = array<i64: 1, 32>}, {pipeline_mode = #tpu.pipeline_mode<synchronous>, transform_indices = @transform_12, window_bounds = array<i64: 32, 32>}, {pipeline_mode = #tpu.pipeline_mode<synchronous>, transform_indices = @transform_13, window_bounds = array<i64: 1, 32>}, {pipeline_mode = #tpu.pipeline_mode<synchronous>, transform_indices = @transform_14, window_bounds = array<i64: 32, 32>}, {pipeline_mode = #tpu.pipeline_mode<synchronous>, transform_indices = @transform_15, window_bounds = array<i64: 1, 32>}, {pipeline_mode = #tpu.pipeline_mode<synchronous>, transform_indices = @transform_16, window_bounds = array<i64: 32, 32>}, {pipeline_mode = #tpu.pipeline_mode<synchronous>, transform_indices = @transform_17, window_bounds = array<i64: 1, 32>}, {pipeline_mode = #tpu.pipeline_mode<synchronous>, transform_indices = @transform_18, window_bounds = array<i64: 8, 32>}, {pipeline_mode = #tpu.pipeline_mode<synchronous>, transform_indices = @transform_19, window_bounds = array<i64: 8, 32>}, {pipeline_mode = #tpu.pipeline_mode<synchronous>, transform_indices = @transform_20, window_bounds = array<i64: 32, 128>}, {pipeline_mode = #tpu.pipeline_mode<synchronous>, transform_indices = @transform_21, window_bounds = array<i64: 1, 128>}, {pipeline_mode = #tpu.pipeline_mode<synchronous>, transform_indices = @transform_22, window_bounds = array<i64: 128, 32>}, {pipeline_mode = #tpu.pipeline_mode<synchronous>, transform_indices = @transform_23, window_bounds = array<i64: 1, 32>}, {transform_indices = @transform_24, window_bounds = array<i64: 2, 8, 32>}]} {
    %c0 = arith.constant 0 : index
    %c0_0 = arith.constant 0 : index
    %c0_1 = arith.constant 0 : index
    %0 = vector.load %arg1[%c0, %c0_0, %c0_1] : memref<2x8x32xf32, #tpu.memory_space<vmem>>, vector<2x8x32xf32>
    %c0_2 = arith.constant 0 : index
    %c0_3 = arith.constant 0 : index
    %c0_4 = arith.constant 0 : index
    %1 = vector.load %arg2[%c0_2, %c0_3, %c0_4] : memref<2x8x32xf32, #tpu.memory_space<vmem>>, vector<2x8x32xf32>
    %2 = vector.shape_cast %0 : vector<2x8x32xf32> to vector<16x32xf32>
    %3 = vector.shape_cast %1 : vector<2x8x32xf32> to vector<16x32xf32>
    %4 = tpu.iota {dimensions = array<i32: 0>} : vector<8x8xi32>
    %5 = tpu.iota {dimensions = array<i32: 1>} : vector<8x8xi32>
    %6 = arith.cmpi sge, %4, %5 : vector<8x8xi32>
    %cst = arith.constant 0.000000e+00 : f32
    %cst_5 = arith.constant -1.000000e+30 : f32
    %7 = vector.broadcast %cst : f32 to vector<8x8xf32>
    %8 = vector.broadcast %cst_5 : f32 to vector<8x8xf32>
    %9 = arith.select %6, %7, %8 : vector<8x8xi1>, vector<8x8xf32>
    %c0_6 = arith.constant 0 : index
    %c0_7 = arith.constant 0 : index
    %10 = vector.load %arg19[%c0_6, %c0_7] : memref<8x32xf32, #tpu.memory_space<vmem>>, vector<8x32xf32>
    %c0_8 = arith.constant 0 : index
    %c0_9 = arith.constant 0 : index
    %11 = vector.load %arg20[%c0_8, %c0_9] : memref<8x32xf32, #tpu.memory_space<vmem>>, vector<8x32xf32>
    %c0_10 = arith.constant 0 : index
    %c0_11 = arith.constant 0 : index
    %12 = vector.load %arg3[%c0_10, %c0_11] : memref<32x32xf32, #tpu.memory_space<vmem>>, vector<32x32xf32>
    %c0_12 = arith.constant 0 : index
    %c0_13 = arith.constant 0 : index
    %13 = vector.load %arg4[%c0_12, %c0_13] : memref<1x32xf32, #tpu.memory_space<vmem>>, vector<1x32xf32>
    %c0_14 = arith.constant 0 : index
    %c0_15 = arith.constant 0 : index
    %14 = vector.load %arg5[%c0_14, %c0_15] : memref<32x32xf32, #tpu.memory_space<vmem>>, vector<32x32xf32>
    %c0_16 = arith.constant 0 : index
    %c0_17 = arith.constant 0 : index
    %15 = vector.load %arg6[%c0_16, %c0_17] : memref<1x32xf32, #tpu.memory_space<vmem>>, vector<1x32xf32>
    %c0_18 = arith.constant 0 : index
    %c0_19 = arith.constant 0 : index
    %16 = vector.load %arg7[%c0_18, %c0_19] : memref<32x32xf32, #tpu.memory_space<vmem>>, vector<32x32xf32>
    %c0_20 = arith.constant 0 : index
    %c0_21 = arith.constant 0 : index
    %17 = vector.load %arg8[%c0_20, %c0_21] : memref<1x32xf32, #tpu.memory_space<vmem>>, vector<1x32xf32>
    %c0_22 = arith.constant 0 : index
    %c0_23 = arith.constant 0 : index
    %18 = vector.load %arg9[%c0_22, %c0_23] : memref<32x32xf32, #tpu.memory_space<vmem>>, vector<32x32xf32>
    %c0_24 = arith.constant 0 : index
    %c0_25 = arith.constant 0 : index
    %19 = vector.load %arg10[%c0_24, %c0_25] : memref<1x32xf32, #tpu.memory_space<vmem>>, vector<1x32xf32>
    %cst_26 = arith.constant dense<0.000000e+00> : vector<16x32xf32>
    %20 = tpu.matmul %2, %12, %cst_26 {dimension_numbers = #tpu.dot_dimension_numbers<[1], [0], [0], [1], [0, 0, 1, 1], [], []>} : vector<16x32xf32>, vector<32x32xf32>, vector<16x32xf32> -> vector<16x32xf32>
    %21 = vector.broadcast %13 : vector<1x32xf32> to vector<16x32xf32>
    %22 = arith.addf %20, %21 : vector<16x32xf32>
    %cst_27 = arith.constant dense<0.000000e+00> : vector<16x32xf32>
    %23 = tpu.matmul %2, %14, %cst_27 {dimension_numbers = #tpu.dot_dimension_numbers<[1], [0], [0], [1], [0, 0, 1, 1], [], []>} : vector<16x32xf32>, vector<32x32xf32>, vector<16x32xf32> -> vector<16x32xf32>
    %24 = vector.broadcast %15 : vector<1x32xf32> to vector<16x32xf32>
    %25 = arith.addf %23, %24 : vector<16x32xf32>
    %cst_28 = arith.constant dense<0.000000e+00> : vector<16x32xf32>
    %26 = tpu.matmul %2, %16, %cst_28 {dimension_numbers = #tpu.dot_dimension_numbers<[1], [0], [0], [1], [0, 0, 1, 1], [], []>} : vector<16x32xf32>, vector<32x32xf32>, vector<16x32xf32> -> vector<16x32xf32>
    %27 = vector.broadcast %17 : vector<1x32xf32> to vector<16x32xf32>
    %28 = arith.addf %26, %27 : vector<16x32xf32>
    %29 = vector.shape_cast %22 : vector<16x32xf32> to vector<2x8x32xf32>
    %30 = vector.shape_cast %25 : vector<16x32xf32> to vector<2x8x32xf32>
    %31 = vector.shape_cast %28 : vector<16x32xf32> to vector<2x8x32xf32>
    %cst_29 = arith.constant 0.000000e+00 : f32
    %32 = vector.broadcast %cst_29 : f32 to vector<16x32xf32>
    %33 = vector.extract_strided_slice %29 {offsets = [0, 0, 0], sizes = [2, 8, 8], strides = [1, 1, 1]} : vector<2x8x32xf32> to vector<2x8x8xf32>
    %34 = vector.extract_strided_slice %30 {offsets = [0, 0, 0], sizes = [2, 8, 8], strides = [1, 1, 1]} : vector<2x8x32xf32> to vector<2x8x8xf32>
    %35 = vector.extract_strided_slice %31 {offsets = [0, 0, 0], sizes = [2, 8, 8], strides = [1, 1, 1]} : vector<2x8x32xf32> to vector<2x8x8xf32>
    "tpu.trace_start"() <{level = 10 : i32, message = "bqd,bkd->bqk"}> : () -> ()
    %cst_30 = arith.constant dense<0.000000e+00> : vector<2x8x8xf32>
    %36 = tpu.matmul %33, %34, %cst_30 {dimension_numbers = #tpu.dot_dimension_numbers<[2], [2], [1], [1], [0, 0, 0, 1, 1, 1], [0], [0]>} : vector<2x8x8xf32>, vector<2x8x8xf32>, vector<2x8x8xf32> -> vector<2x8x8xf32>
    "tpu.trace_stop"() : () -> ()
    %cst_31 = arith.constant 0.353553385 : f32
    %37 = vector.broadcast %cst_31 : f32 to vector<2x8x8xf32>
    %38 = arith.mulf %36, %37 : vector<2x8x8xf32>
    %39 = vector.shape_cast %9 : vector<8x8xf32> to vector<1x8x8xf32>
    %40 = vector.broadcast %39 : vector<1x8x8xf32> to vector<2x8x8xf32>
    %41 = arith.addf %38, %40 : vector<2x8x8xf32>
    %cst_32 = arith.constant dense<0xFF800000> : vector<2x8xf32>
    %42 = vector.multi_reduction <maximumf>, %41, %cst_32 [2] : vector<2x8x8xf32> to vector<2x8xf32>
    %43 = vector.shape_cast %42 : vector<2x8xf32> to vector<2x8x1xf32>
    %44 = vector.broadcast %43 : vector<2x8x1xf32> to vector<2x8x8xf32>
    %45 = arith.subf %41, %44 : vector<2x8x8xf32>
    %46 = math.exp %45 : vector<2x8x8xf32>
    %cst_33 = arith.constant dense<0.000000e+00> : vector<2x8xf32>
    %47 = vector.multi_reduction <add>, %46, %cst_33 [2] : vector<2x8x8xf32> to vector<2x8xf32>
    %48 = vector.shape_cast %47 : vector<2x8xf32> to vector<2x8x1xf32>
    %49 = vector.broadcast %48 : vector<2x8x1xf32> to vector<2x8x8xf32>
    %50 = arith.divf %46, %49 : vector<2x8x8xf32>
    "tpu.trace_start"() <{level = 10 : i32, message = "bqk,bkd->bqd"}> : () -> ()
    %cst_34 = arith.constant dense<0.000000e+00> : vector<2x8x8xf32>
    %51 = tpu.matmul %50, %35, %cst_34 {dimension_numbers = #tpu.dot_dimension_numbers<[2], [1], [1], [2], [0, 0, 0, 1, 1, 2], [0], [0]>} : vector<2x8x8xf32>, vector<2x8x8xf32>, vector<2x8x8xf32> -> vector<2x8x8xf32>
    "tpu.trace_stop"() : () -> ()
    %52 = vector.shape_cast %51 : vector<2x8x8xf32> to vector<16x8xf32>
    %53 = vector.extract_strided_slice %18 {offsets = [0, 0], sizes = [8, 32], strides = [1, 1]} : vector<32x32xf32> to vector<8x32xf32>
    %cst_35 = arith.constant dense<0.000000e+00> : vector<16x32xf32>
    %54 = tpu.matmul %52, %53, %cst_35 {dimension_numbers = #tpu.dot_dimension_numbers<[1], [0], [0], [1], [0, 0, 1, 1], [], []>} : vector<16x8xf32>, vector<8x32xf32>, vector<16x32xf32> -> vector<16x32xf32>
    %55 = arith.addf %32, %54 : vector<16x32xf32>
    %56 = vector.extract_strided_slice %29 {offsets = [0, 0, 8], sizes = [2, 8, 8], strides = [1, 1, 1]} : vector<2x8x32xf32> to vector<2x8x8xf32>
    %57 = vector.extract_strided_slice %30 {offsets = [0, 0, 8], sizes = [2, 8, 8], strides = [1, 1, 1]} : vector<2x8x32xf32> to vector<2x8x8xf32>
    %58 = vector.extract_strided_slice %31 {offsets = [0, 0, 8], sizes = [2, 8, 8], strides = [1, 1, 1]} : vector<2x8x32xf32> to vector<2x8x8xf32>
    "tpu.trace_start"() <{level = 10 : i32, message = "bqd,bkd->bqk"}> : () -> ()
    %cst_36 = arith.constant dense<0.000000e+00> : vector<2x8x8xf32>
    %59 = tpu.matmul %56, %57, %cst_36 {dimension_numbers = #tpu.dot_dimension_numbers<[2], [2], [1], [1], [0, 0, 0, 1, 1, 1], [0], [0]>} : vector<2x8x8xf32>, vector<2x8x8xf32>, vector<2x8x8xf32> -> vector<2x8x8xf32>
    "tpu.trace_stop"() : () -> ()
    %cst_37 = arith.constant 0.353553385 : f32
    %60 = vector.broadcast %cst_37 : f32 to vector<2x8x8xf32>
    %61 = arith.mulf %59, %60 : vector<2x8x8xf32>
    %62 = vector.shape_cast %9 : vector<8x8xf32> to vector<1x8x8xf32>
    %63 = vector.broadcast %62 : vector<1x8x8xf32> to vector<2x8x8xf32>
    %64 = arith.addf %61, %63 : vector<2x8x8xf32>
    %cst_38 = arith.constant dense<0xFF800000> : vector<2x8xf32>
    %65 = vector.multi_reduction <maximumf>, %64, %cst_38 [2] : vector<2x8x8xf32> to vector<2x8xf32>
    %66 = vector.shape_cast %65 : vector<2x8xf32> to vector<2x8x1xf32>
    %67 = vector.broadcast %66 : vector<2x8x1xf32> to vector<2x8x8xf32>
    %68 = arith.subf %64, %67 : vector<2x8x8xf32>
    %69 = math.exp %68 : vector<2x8x8xf32>
    %cst_39 = arith.constant dense<0.000000e+00> : vector<2x8xf32>
    %70 = vector.multi_reduction <add>, %69, %cst_39 [2] : vector<2x8x8xf32> to vector<2x8xf32>
    %71 = vector.shape_cast %70 : vector<2x8xf32> to vector<2x8x1xf32>
    %72 = vector.broadcast %71 : vector<2x8x1xf32> to vector<2x8x8xf32>
    %73 = arith.divf %69, %72 : vector<2x8x8xf32>
    "tpu.trace_start"() <{level = 10 : i32, message = "bqk,bkd->bqd"}> : () -> ()
    %cst_40 = arith.constant dense<0.000000e+00> : vector<2x8x8xf32>
    %74 = tpu.matmul %73, %58, %cst_40 {dimension_numbers = #tpu.dot_dimension_numbers<[2], [1], [1], [2], [0, 0, 0, 1, 1, 2], [0], [0]>} : vector<2x8x8xf32>, vector<2x8x8xf32>, vector<2x8x8xf32> -> vector<2x8x8xf32>
    "tpu.trace_stop"() : () -> ()
    %75 = vector.shape_cast %74 : vector<2x8x8xf32> to vector<16x8xf32>
    %76 = vector.extract_strided_slice %18 {offsets = [8, 0], sizes = [8, 32], strides = [1, 1]} : vector<32x32xf32> to vector<8x32xf32>
    %cst_41 = arith.constant dense<0.000000e+00> : vector<16x32xf32>
    %77 = tpu.matmul %75, %76, %cst_41 {dimension_numbers = #tpu.dot_dimension_numbers<[1], [0], [0], [1], [0, 0, 1, 1], [], []>} : vector<16x8xf32>, vector<8x32xf32>, vector<16x32xf32> -> vector<16x32xf32>
    %78 = arith.addf %55, %77 : vector<16x32xf32>
    %79 = vector.extract_strided_slice %29 {offsets = [0, 0, 16], sizes = [2, 8, 8], strides = [1, 1, 1]} : vector<2x8x32xf32> to vector<2x8x8xf32>
    %80 = vector.extract_strided_slice %30 {offsets = [0, 0, 16], sizes = [2, 8, 8], strides = [1, 1, 1]} : vector<2x8x32xf32> to vector<2x8x8xf32>
    %81 = vector.extract_strided_slice %31 {offsets = [0, 0, 16], sizes = [2, 8, 8], strides = [1, 1, 1]} : vector<2x8x32xf32> to vector<2x8x8xf32>
    "tpu.trace_start"() <{level = 10 : i32, message = "bqd,bkd->bqk"}> : () -> ()
    %cst_42 = arith.constant dense<0.000000e+00> : vector<2x8x8xf32>
    %82 = tpu.matmul %79, %80, %cst_42 {dimension_numbers = #tpu.dot_dimension_numbers<[2], [2], [1], [1], [0, 0, 0, 1, 1, 1], [0], [0]>} : vector<2x8x8xf32>, vector<2x8x8xf32>, vector<2x8x8xf32> -> vector<2x8x8xf32>
    "tpu.trace_stop"() : () -> ()
    %cst_43 = arith.constant 0.353553385 : f32
    %83 = vector.broadcast %cst_43 : f32 to vector<2x8x8xf32>
    %84 = arith.mulf %82, %83 : vector<2x8x8xf32>
    %85 = vector.shape_cast %9 : vector<8x8xf32> to vector<1x8x8xf32>
    %86 = vector.broadcast %85 : vector<1x8x8xf32> to vector<2x8x8xf32>
    %87 = arith.addf %84, %86 : vector<2x8x8xf32>
    %cst_44 = arith.constant dense<0xFF800000> : vector<2x8xf32>
    %88 = vector.multi_reduction <maximumf>, %87, %cst_44 [2] : vector<2x8x8xf32> to vector<2x8xf32>
    %89 = vector.shape_cast %88 : vector<2x8xf32> to vector<2x8x1xf32>
    %90 = vector.broadcast %89 : vector<2x8x1xf32> to vector<2x8x8xf32>
    %91 = arith.subf %87, %90 : vector<2x8x8xf32>
    %92 = math.exp %91 : vector<2x8x8xf32>
    %cst_45 = arith.constant dense<0.000000e+00> : vector<2x8xf32>
    %93 = vector.multi_reduction <add>, %92, %cst_45 [2] : vector<2x8x8xf32> to vector<2x8xf32>
    %94 = vector.shape_cast %93 : vector<2x8xf32> to vector<2x8x1xf32>
    %95 = vector.broadcast %94 : vector<2x8x1xf32> to vector<2x8x8xf32>
    %96 = arith.divf %92, %95 : vector<2x8x8xf32>
    "tpu.trace_start"() <{level = 10 : i32, message = "bqk,bkd->bqd"}> : () -> ()
    %cst_46 = arith.constant dense<0.000000e+00> : vector<2x8x8xf32>
    %97 = tpu.matmul %96, %81, %cst_46 {dimension_numbers = #tpu.dot_dimension_numbers<[2], [1], [1], [2], [0, 0, 0, 1, 1, 2], [0], [0]>} : vector<2x8x8xf32>, vector<2x8x8xf32>, vector<2x8x8xf32> -> vector<2x8x8xf32>
    "tpu.trace_stop"() : () -> ()
    %98 = vector.shape_cast %97 : vector<2x8x8xf32> to vector<16x8xf32>
    %99 = vector.extract_strided_slice %18 {offsets = [16, 0], sizes = [8, 32], strides = [1, 1]} : vector<32x32xf32> to vector<8x32xf32>
    %cst_47 = arith.constant dense<0.000000e+00> : vector<16x32xf32>
    %100 = tpu.matmul %98, %99, %cst_47 {dimension_numbers = #tpu.dot_dimension_numbers<[1], [0], [0], [1], [0, 0, 1, 1], [], []>} : vector<16x8xf32>, vector<8x32xf32>, vector<16x32xf32> -> vector<16x32xf32>
    %101 = arith.addf %78, %100 : vector<16x32xf32>
    %102 = vector.extract_strided_slice %29 {offsets = [0, 0, 24], sizes = [2, 8, 8], strides = [1, 1, 1]} : vector<2x8x32xf32> to vector<2x8x8xf32>
    %103 = vector.extract_strided_slice %30 {offsets = [0, 0, 24], sizes = [2, 8, 8], strides = [1, 1, 1]} : vector<2x8x32xf32> to vector<2x8x8xf32>
    %104 = vector.extract_strided_slice %31 {offsets = [0, 0, 24], sizes = [2, 8, 8], strides = [1, 1, 1]} : vector<2x8x32xf32> to vector<2x8x8xf32>
    "tpu.trace_start"() <{level = 10 : i32, message = "bqd,bkd->bqk"}> : () -> ()
    %cst_48 = arith.constant dense<0.000000e+00> : vector<2x8x8xf32>
    %105 = tpu.matmul %102, %103, %cst_48 {dimension_numbers = #tpu.dot_dimension_numbers<[2], [2], [1], [1], [0, 0, 0, 1, 1, 1], [0], [0]>} : vector<2x8x8xf32>, vector<2x8x8xf32>, vector<2x8x8xf32> -> vector<2x8x8xf32>
    "tpu.trace_stop"() : () -> ()
    %cst_49 = arith.constant 0.353553385 : f32
    %106 = vector.broadcast %cst_49 : f32 to vector<2x8x8xf32>
    %107 = arith.mulf %105, %106 : vector<2x8x8xf32>
    %108 = vector.shape_cast %9 : vector<8x8xf32> to vector<1x8x8xf32>
    %109 = vector.broadcast %108 : vector<1x8x8xf32> to vector<2x8x8xf32>
    %110 = arith.addf %107, %109 : vector<2x8x8xf32>
    %cst_50 = arith.constant dense<0xFF800000> : vector<2x8xf32>
    %111 = vector.multi_reduction <maximumf>, %110, %cst_50 [2] : vector<2x8x8xf32> to vector<2x8xf32>
    %112 = vector.shape_cast %111 : vector<2x8xf32> to vector<2x8x1xf32>
    %113 = vector.broadcast %112 : vector<2x8x1xf32> to vector<2x8x8xf32>
    %114 = arith.subf %110, %113 : vector<2x8x8xf32>
    %115 = math.exp %114 : vector<2x8x8xf32>
    %cst_51 = arith.constant dense<0.000000e+00> : vector<2x8xf32>
    %116 = vector.multi_reduction <add>, %115, %cst_51 [2] : vector<2x8x8xf32> to vector<2x8xf32>
    %117 = vector.shape_cast %116 : vector<2x8xf32> to vector<2x8x1xf32>
    %118 = vector.broadcast %117 : vector<2x8x1xf32> to vector<2x8x8xf32>
    %119 = arith.divf %115, %118 : vector<2x8x8xf32>
    "tpu.trace_start"() <{level = 10 : i32, message = "bqk,bkd->bqd"}> : () -> ()
    %cst_52 = arith.constant dense<0.000000e+00> : vector<2x8x8xf32>
    %120 = tpu.matmul %119, %104, %cst_52 {dimension_numbers = #tpu.dot_dimension_numbers<[2], [1], [1], [2], [0, 0, 0, 1, 1, 2], [0], [0]>} : vector<2x8x8xf32>, vector<2x8x8xf32>, vector<2x8x8xf32> -> vector<2x8x8xf32>
    "tpu.trace_stop"() : () -> ()
    %121 = vector.shape_cast %120 : vector<2x8x8xf32> to vector<16x8xf32>
    %122 = vector.extract_strided_slice %18 {offsets = [24, 0], sizes = [8, 32], strides = [1, 1]} : vector<32x32xf32> to vector<8x32xf32>
    %cst_53 = arith.constant dense<0.000000e+00> : vector<16x32xf32>
    %123 = tpu.matmul %121, %122, %cst_53 {dimension_numbers = #tpu.dot_dimension_numbers<[1], [0], [0], [1], [0, 0, 1, 1], [], []>} : vector<16x8xf32>, vector<8x32xf32>, vector<16x32xf32> -> vector<16x32xf32>
    %124 = arith.addf %101, %123 : vector<16x32xf32>
    %125 = vector.broadcast %19 : vector<1x32xf32> to vector<16x32xf32>
    %126 = arith.addf %124, %125 : vector<16x32xf32>
    %127 = vector.shape_cast %126 : vector<16x32xf32> to vector<2x8x32xf32>
    %128 = arith.addf %0, %127 : vector<2x8x32xf32>
    %cst_54 = arith.constant dense<0.000000e+00> : vector<2x8xf32>
    %129 = vector.multi_reduction <add>, %128, %cst_54 [2] : vector<2x8x32xf32> to vector<2x8xf32>
    %130 = vector.shape_cast %129 : vector<2x8xf32> to vector<2x8x1xf32>
    %131 = arith.mulf %128, %128 : vector<2x8x32xf32>
    %cst_55 = arith.constant dense<0.000000e+00> : vector<2x8xf32>
    %132 = vector.multi_reduction <add>, %131, %cst_55 [2] : vector<2x8x32xf32> to vector<2x8xf32>
    %133 = vector.shape_cast %132 : vector<2x8xf32> to vector<2x8x1xf32>
    %cst_56 = arith.constant dense<0.000000e+00> : vector<2x1xf32>
    %134 = vector.multi_reduction <add>, %130, %cst_56 [1] : vector<2x8x1xf32> to vector<2x1xf32>
    %135 = vector.shape_cast %134 : vector<2x1xf32> to vector<2x1x1xf32>
    %cst_57 = arith.constant 3.906250e-03 : f32
    %136 = vector.broadcast %cst_57 : f32 to vector<2x1x1xf32>
    %137 = arith.mulf %135, %136 : vector<2x1x1xf32>
    %cst_58 = arith.constant dense<0.000000e+00> : vector<2x1xf32>
    %138 = vector.multi_reduction <add>, %133, %cst_58 [1] : vector<2x8x1xf32> to vector<2x1xf32>
    %139 = vector.shape_cast %138 : vector<2x1xf32> to vector<2x1x1xf32>
    %cst_59 = arith.constant 3.906250e-03 : f32
    %140 = vector.broadcast %cst_59 : f32 to vector<2x1x1xf32>
    %141 = arith.mulf %139, %140 : vector<2x1x1xf32>
    %142 = arith.mulf %137, %137 : vector<2x1x1xf32>
    %143 = arith.subf %141, %142 : vector<2x1x1xf32>
    %144 = vector.broadcast %137 : vector<2x1x1xf32> to vector<2x8x32xf32>
    %145 = arith.subf %128, %144 : vector<2x8x32xf32>
    %cst_60 = arith.constant 9.99999974E-6 : f32
    %146 = vector.broadcast %cst_60 : f32 to vector<2x1x1xf32>
    %147 = arith.addf %143, %146 : vector<2x1x1xf32>
    %148 = math.rsqrt %147 : vector<2x1x1xf32>
    %149 = vector.broadcast %148 : vector<2x1x1xf32> to vector<2x8x32xf32>
    %150 = arith.mulf %145, %149 : vector<2x8x32xf32>
    %151 = vector.shape_cast %10 : vector<8x32xf32> to vector<1x8x32xf32>
    %152 = vector.broadcast %151 : vector<1x8x32xf32> to vector<2x8x32xf32>
    %153 = arith.mulf %150, %152 : vector<2x8x32xf32>
    %154 = vector.shape_cast %11 : vector<8x32xf32> to vector<1x8x32xf32>
    %155 = vector.broadcast %154 : vector<1x8x32xf32> to vector<2x8x32xf32>
    %156 = arith.addf %153, %155 : vector<2x8x32xf32>
    %157 = vector.shape_cast %156 : vector<2x8x32xf32> to vector<16x32xf32>
    %c0_61 = arith.constant 0 : index
    %c0_62 = arith.constant 0 : index
    %158 = vector.load %arg11[%c0_61, %c0_62] : memref<32x32xf32, #tpu.memory_space<vmem>>, vector<32x32xf32>
    %c0_63 = arith.constant 0 : index
    %c0_64 = arith.constant 0 : index
    %159 = vector.load %arg12[%c0_63, %c0_64] : memref<1x32xf32, #tpu.memory_space<vmem>>, vector<1x32xf32>
    %c0_65 = arith.constant 0 : index
    %c0_66 = arith.constant 0 : index
    %160 = vector.load %arg13[%c0_65, %c0_66] : memref<32x32xf32, #tpu.memory_space<vmem>>, vector<32x32xf32>
    %c0_67 = arith.constant 0 : index
    %c0_68 = arith.constant 0 : index
    %161 = vector.load %arg14[%c0_67, %c0_68] : memref<1x32xf32, #tpu.memory_space<vmem>>, vector<1x32xf32>
    %c0_69 = arith.constant 0 : index
    %c0_70 = arith.constant 0 : index
    %162 = vector.load %arg15[%c0_69, %c0_70] : memref<32x32xf32, #tpu.memory_space<vmem>>, vector<32x32xf32>
    %c0_71 = arith.constant 0 : index
    %c0_72 = arith.constant 0 : index
    %163 = vector.load %arg16[%c0_71, %c0_72] : memref<1x32xf32, #tpu.memory_space<vmem>>, vector<1x32xf32>
    %c0_73 = arith.constant 0 : index
    %c0_74 = arith.constant 0 : index
    %164 = vector.load %arg17[%c0_73, %c0_74] : memref<32x32xf32, #tpu.memory_space<vmem>>, vector<32x32xf32>
    %c0_75 = arith.constant 0 : index
    %c0_76 = arith.constant 0 : index
    %165 = vector.load %arg18[%c0_75, %c0_76] : memref<1x32xf32, #tpu.memory_space<vmem>>, vector<1x32xf32>
    %cst_77 = arith.constant dense<0.000000e+00> : vector<16x32xf32>
    %166 = tpu.matmul %157, %158, %cst_77 {dimension_numbers = #tpu.dot_dimension_numbers<[1], [0], [0], [1], [0, 0, 1, 1], [], []>} : vector<16x32xf32>, vector<32x32xf32>, vector<16x32xf32> -> vector<16x32xf32>
    %167 = vector.broadcast %159 : vector<1x32xf32> to vector<16x32xf32>
    %168 = arith.addf %166, %167 : vector<16x32xf32>
    %cst_78 = arith.constant dense<0.000000e+00> : vector<16x32xf32>
    %169 = tpu.matmul %3, %160, %cst_78 {dimension_numbers = #tpu.dot_dimension_numbers<[1], [0], [0], [1], [0, 0, 1, 1], [], []>} : vector<16x32xf32>, vector<32x32xf32>, vector<16x32xf32> -> vector<16x32xf32>
    %170 = vector.broadcast %161 : vector<1x32xf32> to vector<16x32xf32>
    %171 = arith.addf %169, %170 : vector<16x32xf32>
    %cst_79 = arith.constant dense<0.000000e+00> : vector<16x32xf32>
    %172 = tpu.matmul %3, %162, %cst_79 {dimension_numbers = #tpu.dot_dimension_numbers<[1], [0], [0], [1], [0, 0, 1, 1], [], []>} : vector<16x32xf32>, vector<32x32xf32>, vector<16x32xf32> -> vector<16x32xf32>
    %173 = vector.broadcast %163 : vector<1x32xf32> to vector<16x32xf32>
    %174 = arith.addf %172, %173 : vector<16x32xf32>
    %175 = vector.shape_cast %168 : vector<16x32xf32> to vector<2x8x32xf32>
    %176 = vector.shape_cast %171 : vector<16x32xf32> to vector<2x8x32xf32>
    %177 = vector.shape_cast %174 : vector<16x32xf32> to vector<2x8x32xf32>
    %cst_80 = arith.constant 0.000000e+00 : f32
    %178 = vector.broadcast %cst_80 : f32 to vector<16x32xf32>
    %179 = vector.extract_strided_slice %175 {offsets = [0, 0, 0], sizes = [2, 8, 8], strides = [1, 1, 1]} : vector<2x8x32xf32> to vector<2x8x8xf32>
    %180 = vector.extract_strided_slice %176 {offsets = [0, 0, 0], sizes = [2, 8, 8], strides = [1, 1, 1]} : vector<2x8x32xf32> to vector<2x8x8xf32>
    %181 = vector.extract_strided_slice %177 {offsets = [0, 0, 0], sizes = [2, 8, 8], strides = [1, 1, 1]} : vector<2x8x32xf32> to vector<2x8x8xf32>
    "tpu.trace_start"() <{level = 10 : i32, message = "bqd,bkd->bqk"}> : () -> ()
    %cst_81 = arith.constant dense<0.000000e+00> : vector<2x8x8xf32>
    %182 = tpu.matmul %179, %180, %cst_81 {dimension_numbers = #tpu.dot_dimension_numbers<[2], [2], [1], [1], [0, 0, 0, 1, 1, 1], [0], [0]>} : vector<2x8x8xf32>, vector<2x8x8xf32>, vector<2x8x8xf32> -> vector<2x8x8xf32>
    "tpu.trace_stop"() : () -> ()
    %cst_82 = arith.constant 0.353553385 : f32
    %183 = vector.broadcast %cst_82 : f32 to vector<2x8x8xf32>
    %184 = arith.mulf %182, %183 : vector<2x8x8xf32>
    %cst_83 = arith.constant dense<0xFF800000> : vector<2x8xf32>
    %185 = vector.multi_reduction <maximumf>, %184, %cst_83 [2] : vector<2x8x8xf32> to vector<2x8xf32>
    %186 = vector.shape_cast %185 : vector<2x8xf32> to vector<2x8x1xf32>
    %187 = vector.broadcast %186 : vector<2x8x1xf32> to vector<2x8x8xf32>
    %188 = arith.subf %184, %187 : vector<2x8x8xf32>
    %189 = math.exp %188 : vector<2x8x8xf32>
    %cst_84 = arith.constant dense<0.000000e+00> : vector<2x8xf32>
    %190 = vector.multi_reduction <add>, %189, %cst_84 [2] : vector<2x8x8xf32> to vector<2x8xf32>
    %191 = vector.shape_cast %190 : vector<2x8xf32> to vector<2x8x1xf32>
    %192 = vector.broadcast %191 : vector<2x8x1xf32> to vector<2x8x8xf32>
    %193 = arith.divf %189, %192 : vector<2x8x8xf32>
    "tpu.trace_start"() <{level = 10 : i32, message = "bqk,bkd->bqd"}> : () -> ()
    %cst_85 = arith.constant dense<0.000000e+00> : vector<2x8x8xf32>
    %194 = tpu.matmul %193, %181, %cst_85 {dimension_numbers = #tpu.dot_dimension_numbers<[2], [1], [1], [2], [0, 0, 0, 1, 1, 2], [0], [0]>} : vector<2x8x8xf32>, vector<2x8x8xf32>, vector<2x8x8xf32> -> vector<2x8x8xf32>
    "tpu.trace_stop"() : () -> ()
    %195 = vector.shape_cast %194 : vector<2x8x8xf32> to vector<16x8xf32>
    %196 = vector.extract_strided_slice %164 {offsets = [0, 0], sizes = [8, 32], strides = [1, 1]} : vector<32x32xf32> to vector<8x32xf32>
    %cst_86 = arith.constant dense<0.000000e+00> : vector<16x32xf32>
    %197 = tpu.matmul %195, %196, %cst_86 {dimension_numbers = #tpu.dot_dimension_numbers<[1], [0], [0], [1], [0, 0, 1, 1], [], []>} : vector<16x8xf32>, vector<8x32xf32>, vector<16x32xf32> -> vector<16x32xf32>
    %198 = arith.addf %178, %197 : vector<16x32xf32>
    %199 = vector.extract_strided_slice %175 {offsets = [0, 0, 8], sizes = [2, 8, 8], strides = [1, 1, 1]} : vector<2x8x32xf32> to vector<2x8x8xf32>
    %200 = vector.extract_strided_slice %176 {offsets = [0, 0, 8], sizes = [2, 8, 8], strides = [1, 1, 1]} : vector<2x8x32xf32> to vector<2x8x8xf32>
    %201 = vector.extract_strided_slice %177 {offsets = [0, 0, 8], sizes = [2, 8, 8], strides = [1, 1, 1]} : vector<2x8x32xf32> to vector<2x8x8xf32>
    "tpu.trace_start"() <{level = 10 : i32, message = "bqd,bkd->bqk"}> : () -> ()
    %cst_87 = arith.constant dense<0.000000e+00> : vector<2x8x8xf32>
    %202 = tpu.matmul %199, %200, %cst_87 {dimension_numbers = #tpu.dot_dimension_numbers<[2], [2], [1], [1], [0, 0, 0, 1, 1, 1], [0], [0]>} : vector<2x8x8xf32>, vector<2x8x8xf32>, vector<2x8x8xf32> -> vector<2x8x8xf32>
    "tpu.trace_stop"() : () -> ()
    %cst_88 = arith.constant 0.353553385 : f32
    %203 = vector.broadcast %cst_88 : f32 to vector<2x8x8xf32>
    %204 = arith.mulf %202, %203 : vector<2x8x8xf32>
    %cst_89 = arith.constant dense<0xFF800000> : vector<2x8xf32>
    %205 = vector.multi_reduction <maximumf>, %204, %cst_89 [2] : vector<2x8x8xf32> to vector<2x8xf32>
    %206 = vector.shape_cast %205 : vector<2x8xf32> to vector<2x8x1xf32>
    %207 = vector.broadcast %206 : vector<2x8x1xf32> to vector<2x8x8xf32>
    %208 = arith.subf %204, %207 : vector<2x8x8xf32>
    %209 = math.exp %208 : vector<2x8x8xf32>
    %cst_90 = arith.constant dense<0.000000e+00> : vector<2x8xf32>
    %210 = vector.multi_reduction <add>, %209, %cst_90 [2] : vector<2x8x8xf32> to vector<2x8xf32>
    %211 = vector.shape_cast %210 : vector<2x8xf32> to vector<2x8x1xf32>
    %212 = vector.broadcast %211 : vector<2x8x1xf32> to vector<2x8x8xf32>
    %213 = arith.divf %209, %212 : vector<2x8x8xf32>
    "tpu.trace_start"() <{level = 10 : i32, message = "bqk,bkd->bqd"}> : () -> ()
    %cst_91 = arith.constant dense<0.000000e+00> : vector<2x8x8xf32>
    %214 = tpu.matmul %213, %201, %cst_91 {dimension_numbers = #tpu.dot_dimension_numbers<[2], [1], [1], [2], [0, 0, 0, 1, 1, 2], [0], [0]>} : vector<2x8x8xf32>, vector<2x8x8xf32>, vector<2x8x8xf32> -> vector<2x8x8xf32>
    "tpu.trace_stop"() : () -> ()
    %215 = vector.shape_cast %214 : vector<2x8x8xf32> to vector<16x8xf32>
    %216 = vector.extract_strided_slice %164 {offsets = [8, 0], sizes = [8, 32], strides = [1, 1]} : vector<32x32xf32> to vector<8x32xf32>
    %cst_92 = arith.constant dense<0.000000e+00> : vector<16x32xf32>
    %217 = tpu.matmul %215, %216, %cst_92 {dimension_numbers = #tpu.dot_dimension_numbers<[1], [0], [0], [1], [0, 0, 1, 1], [], []>} : vector<16x8xf32>, vector<8x32xf32>, vector<16x32xf32> -> vector<16x32xf32>
    %218 = arith.addf %198, %217 : vector<16x32xf32>
    %219 = vector.extract_strided_slice %175 {offsets = [0, 0, 16], sizes = [2, 8, 8], strides = [1, 1, 1]} : vector<2x8x32xf32> to vector<2x8x8xf32>
    %220 = vector.extract_strided_slice %176 {offsets = [0, 0, 16], sizes = [2, 8, 8], strides = [1, 1, 1]} : vector<2x8x32xf32> to vector<2x8x8xf32>
    %221 = vector.extract_strided_slice %177 {offsets = [0, 0, 16], sizes = [2, 8, 8], strides = [1, 1, 1]} : vector<2x8x32xf32> to vector<2x8x8xf32>
    "tpu.trace_start"() <{level = 10 : i32, message = "bqd,bkd->bqk"}> : () -> ()
    %cst_93 = arith.constant dense<0.000000e+00> : vector<2x8x8xf32>
    %222 = tpu.matmul %219, %220, %cst_93 {dimension_numbers = #tpu.dot_dimension_numbers<[2], [2], [1], [1], [0, 0, 0, 1, 1, 1], [0], [0]>} : vector<2x8x8xf32>, vector<2x8x8xf32>, vector<2x8x8xf32> -> vector<2x8x8xf32>
    "tpu.trace_stop"() : () -> ()
    %cst_94 = arith.constant 0.353553385 : f32
    %223 = vector.broadcast %cst_94 : f32 to vector<2x8x8xf32>
    %224 = arith.mulf %222, %223 : vector<2x8x8xf32>
    %cst_95 = arith.constant dense<0xFF800000> : vector<2x8xf32>
    %225 = vector.multi_reduction <maximumf>, %224, %cst_95 [2] : vector<2x8x8xf32> to vector<2x8xf32>
    %226 = vector.shape_cast %225 : vector<2x8xf32> to vector<2x8x1xf32>
    %227 = vector.broadcast %226 : vector<2x8x1xf32> to vector<2x8x8xf32>
    %228 = arith.subf %224, %227 : vector<2x8x8xf32>
    %229 = math.exp %228 : vector<2x8x8xf32>
    %cst_96 = arith.constant dense<0.000000e+00> : vector<2x8xf32>
    %230 = vector.multi_reduction <add>, %229, %cst_96 [2] : vector<2x8x8xf32> to vector<2x8xf32>
    %231 = vector.shape_cast %230 : vector<2x8xf32> to vector<2x8x1xf32>
    %232 = vector.broadcast %231 : vector<2x8x1xf32> to vector<2x8x8xf32>
    %233 = arith.divf %229, %232 : vector<2x8x8xf32>
    "tpu.trace_start"() <{level = 10 : i32, message = "bqk,bkd->bqd"}> : () -> ()
    %cst_97 = arith.constant dense<0.000000e+00> : vector<2x8x8xf32>
    %234 = tpu.matmul %233, %221, %cst_97 {dimension_numbers = #tpu.dot_dimension_numbers<[2], [1], [1], [2], [0, 0, 0, 1, 1, 2], [0], [0]>} : vector<2x8x8xf32>, vector<2x8x8xf32>, vector<2x8x8xf32> -> vector<2x8x8xf32>
    "tpu.trace_stop"() : () -> ()
    %235 = vector.shape_cast %234 : vector<2x8x8xf32> to vector<16x8xf32>
    %236 = vector.extract_strided_slice %164 {offsets = [16, 0], sizes = [8, 32], strides = [1, 1]} : vector<32x32xf32> to vector<8x32xf32>
    %cst_98 = arith.constant dense<0.000000e+00> : vector<16x32xf32>
    %237 = tpu.matmul %235, %236, %cst_98 {dimension_numbers = #tpu.dot_dimension_numbers<[1], [0], [0], [1], [0, 0, 1, 1], [], []>} : vector<16x8xf32>, vector<8x32xf32>, vector<16x32xf32> -> vector<16x32xf32>
    %238 = arith.addf %218, %237 : vector<16x32xf32>
    %239 = vector.extract_strided_slice %175 {offsets = [0, 0, 24], sizes = [2, 8, 8], strides = [1, 1, 1]} : vector<2x8x32xf32> to vector<2x8x8xf32>
    %240 = vector.extract_strided_slice %176 {offsets = [0, 0, 24], sizes = [2, 8, 8], strides = [1, 1, 1]} : vector<2x8x32xf32> to vector<2x8x8xf32>
    %241 = vector.extract_strided_slice %177 {offsets = [0, 0, 24], sizes = [2, 8, 8], strides = [1, 1, 1]} : vector<2x8x32xf32> to vector<2x8x8xf32>
    "tpu.trace_start"() <{level = 10 : i32, message = "bqd,bkd->bqk"}> : () -> ()
    %cst_99 = arith.constant dense<0.000000e+00> : vector<2x8x8xf32>
    %242 = tpu.matmul %239, %240, %cst_99 {dimension_numbers = #tpu.dot_dimension_numbers<[2], [2], [1], [1], [0, 0, 0, 1, 1, 1], [0], [0]>} : vector<2x8x8xf32>, vector<2x8x8xf32>, vector<2x8x8xf32> -> vector<2x8x8xf32>
    "tpu.trace_stop"() : () -> ()
    %cst_100 = arith.constant 0.353553385 : f32
    %243 = vector.broadcast %cst_100 : f32 to vector<2x8x8xf32>
    %244 = arith.mulf %242, %243 : vector<2x8x8xf32>
    %cst_101 = arith.constant dense<0xFF800000> : vector<2x8xf32>
    %245 = vector.multi_reduction <maximumf>, %244, %cst_101 [2] : vector<2x8x8xf32> to vector<2x8xf32>
    %246 = vector.shape_cast %245 : vector<2x8xf32> to vector<2x8x1xf32>
    %247 = vector.broadcast %246 : vector<2x8x1xf32> to vector<2x8x8xf32>
    %248 = arith.subf %244, %247 : vector<2x8x8xf32>
    %249 = math.exp %248 : vector<2x8x8xf32>
    %cst_102 = arith.constant dense<0.000000e+00> : vector<2x8xf32>
    %250 = vector.multi_reduction <add>, %249, %cst_102 [2] : vector<2x8x8xf32> to vector<2x8xf32>
    %251 = vector.shape_cast %250 : vector<2x8xf32> to vector<2x8x1xf32>
    %252 = vector.broadcast %251 : vector<2x8x1xf32> to vector<2x8x8xf32>
    %253 = arith.divf %249, %252 : vector<2x8x8xf32>
    "tpu.trace_start"() <{level = 10 : i32, message = "bqk,bkd->bqd"}> : () -> ()
    %cst_103 = arith.constant dense<0.000000e+00> : vector<2x8x8xf32>
    %254 = tpu.matmul %253, %241, %cst_103 {dimension_numbers = #tpu.dot_dimension_numbers<[2], [1], [1], [2], [0, 0, 0, 1, 1, 2], [0], [0]>} : vector<2x8x8xf32>, vector<2x8x8xf32>, vector<2x8x8xf32> -> vector<2x8x8xf32>
    "tpu.trace_stop"() : () -> ()
    %255 = vector.shape_cast %254 : vector<2x8x8xf32> to vector<16x8xf32>
    %256 = vector.extract_strided_slice %164 {offsets = [24, 0], sizes = [8, 32], strides = [1, 1]} : vector<32x32xf32> to vector<8x32xf32>
    %cst_104 = arith.constant dense<0.000000e+00> : vector<16x32xf32>
    %257 = tpu.matmul %255, %256, %cst_104 {dimension_numbers = #tpu.dot_dimension_numbers<[1], [0], [0], [1], [0, 0, 1, 1], [], []>} : vector<16x8xf32>, vector<8x32xf32>, vector<16x32xf32> -> vector<16x32xf32>
    %258 = arith.addf %238, %257 : vector<16x32xf32>
    %259 = vector.broadcast %165 : vector<1x32xf32> to vector<16x32xf32>
    %260 = arith.addf %258, %259 : vector<16x32xf32>
    %261 = vector.shape_cast %260 : vector<16x32xf32> to vector<2x8x32xf32>
    %262 = arith.addf %156, %261 : vector<2x8x32xf32>
    %cst_105 = arith.constant dense<0.000000e+00> : vector<2x8xf32>
    %263 = vector.multi_reduction <add>, %262, %cst_105 [2] : vector<2x8x32xf32> to vector<2x8xf32>
    %264 = vector.shape_cast %263 : vector<2x8xf32> to vector<2x8x1xf32>
    %265 = arith.mulf %262, %262 : vector<2x8x32xf32>
    %cst_106 = arith.constant dense<0.000000e+00> : vector<2x8xf32>
    %266 = vector.multi_reduction <add>, %265, %cst_106 [2] : vector<2x8x32xf32> to vector<2x8xf32>
    %267 = vector.shape_cast %266 : vector<2x8xf32> to vector<2x8x1xf32>
    %cst_107 = arith.constant dense<0.000000e+00> : vector<2x1xf32>
    %268 = vector.multi_reduction <add>, %264, %cst_107 [1] : vector<2x8x1xf32> to vector<2x1xf32>
    %269 = vector.shape_cast %268 : vector<2x1xf32> to vector<2x1x1xf32>
    %cst_108 = arith.constant 3.906250e-03 : f32
    %270 = vector.broadcast %cst_108 : f32 to vector<2x1x1xf32>
    %271 = arith.mulf %269, %270 : vector<2x1x1xf32>
    %cst_109 = arith.constant dense<0.000000e+00> : vector<2x1xf32>
    %272 = vector.multi_reduction <add>, %267, %cst_109 [1] : vector<2x8x1xf32> to vector<2x1xf32>
    %273 = vector.shape_cast %272 : vector<2x1xf32> to vector<2x1x1xf32>
    %cst_110 = arith.constant 3.906250e-03 : f32
    %274 = vector.broadcast %cst_110 : f32 to vector<2x1x1xf32>
    %275 = arith.mulf %273, %274 : vector<2x1x1xf32>
    %276 = arith.mulf %271, %271 : vector<2x1x1xf32>
    %277 = arith.subf %275, %276 : vector<2x1x1xf32>
    %278 = vector.broadcast %271 : vector<2x1x1xf32> to vector<2x8x32xf32>
    %279 = arith.subf %262, %278 : vector<2x8x32xf32>
    %cst_111 = arith.constant 9.99999974E-6 : f32
    %280 = vector.broadcast %cst_111 : f32 to vector<2x1x1xf32>
    %281 = arith.addf %277, %280 : vector<2x1x1xf32>
    %282 = math.rsqrt %281 : vector<2x1x1xf32>
    %283 = vector.broadcast %282 : vector<2x1x1xf32> to vector<2x8x32xf32>
    %284 = arith.mulf %279, %283 : vector<2x8x32xf32>
    %285 = vector.shape_cast %10 : vector<8x32xf32> to vector<1x8x32xf32>
    %286 = vector.broadcast %285 : vector<1x8x32xf32> to vector<2x8x32xf32>
    %287 = arith.mulf %284, %286 : vector<2x8x32xf32>
    %288 = vector.shape_cast %11 : vector<8x32xf32> to vector<1x8x32xf32>
    %289 = vector.broadcast %288 : vector<1x8x32xf32> to vector<2x8x32xf32>
    %290 = arith.addf %287, %289 : vector<2x8x32xf32>
    %291 = vector.shape_cast %290 : vector<2x8x32xf32> to vector<16x32xf32>
    %c0_112 = arith.constant 0 : index
    %c0_113 = arith.constant 0 : index
    %292 = vector.load %arg21[%c0_112, %c0_113] : memref<32x128xf32, #tpu.memory_space<vmem>>, vector<32x128xf32>
    %cst_114 = arith.constant dense<0.000000e+00> : vector<16x128xf32>
    %293 = tpu.matmul %291, %292, %cst_114 {dimension_numbers = #tpu.dot_dimension_numbers<[1], [0], [0], [1], [0, 0, 1, 1], [], []>} : vector<16x32xf32>, vector<32x128xf32>, vector<16x128xf32> -> vector<16x128xf32>
    %c0_115 = arith.constant 0 : index
    %c0_116 = arith.constant 0 : index
    %294 = vector.load %arg22[%c0_115, %c0_116] : memref<1x128xf32, #tpu.memory_space<vmem>>, vector<1x128xf32>
    %295 = vector.broadcast %294 : vector<1x128xf32> to vector<16x128xf32>
    %296 = arith.addf %293, %295 : vector<16x128xf32>
    %cst_117 = arith.constant 5.000000e-01 : f32
    %297 = vector.broadcast %cst_117 : f32 to vector<16x128xf32>
    %298 = arith.mulf %297, %296 : vector<16x128xf32>
    %cst_118 = arith.constant 0.707106769 : f32
    %299 = vector.broadcast %cst_118 : f32 to vector<16x128xf32>
    %300 = arith.mulf %296, %299 : vector<16x128xf32>
    %cst_119 = arith.constant 0.000000e+00 : f32
    %301 = vector.broadcast %cst_119 : f32 to vector<16x128xf32>
    %302 = arith.cmpf olt, %300, %301 : vector<16x128xf32>
    %cst_120 = arith.constant -1.000000e+00 : f32
    %cst_121 = arith.constant 1.000000e+00 : f32
    %303 = vector.broadcast %cst_120 : f32 to vector<16x128xf32>
    %304 = vector.broadcast %cst_121 : f32 to vector<16x128xf32>
    %305 = arith.select %302, %303, %304 : vector<16x128xi1>, vector<16x128xf32>
    %306 = math.absf %300 : vector<16x128xf32>
    %cst_122 = arith.constant 0.327591091 : f32
    %307 = vector.broadcast %cst_122 : f32 to vector<16x128xf32>
    %308 = arith.mulf %307, %306 : vector<16x128xf32>
    %cst_123 = arith.constant 1.000000e+00 : f32
    %309 = vector.broadcast %cst_123 : f32 to vector<16x128xf32>
    %310 = arith.addf %309, %308 : vector<16x128xf32>
    %cst_124 = arith.constant 1.000000e+00 : f32
    %311 = vector.broadcast %cst_124 : f32 to vector<16x128xf32>
    %312 = arith.divf %311, %310 : vector<16x128xf32>
    %cst_125 = arith.constant 1.06140542 : f32
    %313 = vector.broadcast %cst_125 : f32 to vector<16x128xf32>
    %314 = arith.mulf %313, %312 : vector<16x128xf32>
    %cst_126 = arith.constant -1.45315206 : f32
    %315 = vector.broadcast %cst_126 : f32 to vector<16x128xf32>
    %316 = arith.addf %314, %315 : vector<16x128xf32>
    %317 = arith.mulf %316, %312 : vector<16x128xf32>
    %cst_127 = arith.constant 1.42141378 : f32
    %318 = vector.broadcast %cst_127 : f32 to vector<16x128xf32>
    %319 = arith.addf %317, %318 : vector<16x128xf32>
    %320 = arith.mulf %319, %312 : vector<16x128xf32>
    %cst_128 = arith.constant -0.284496725 : f32
    %321 = vector.broadcast %cst_128 : f32 to vector<16x128xf32>
    %322 = arith.addf %320, %321 : vector<16x128xf32>
    %323 = arith.mulf %322, %312 : vector<16x128xf32>
    %cst_129 = arith.constant 0.254829586 : f32
    %324 = vector.broadcast %cst_129 : f32 to vector<16x128xf32>
    %325 = arith.addf %323, %324 : vector<16x128xf32>
    %326 = arith.mulf %325, %312 : vector<16x128xf32>
    %cst_130 = arith.constant 0.000000e+00 : f32
    %327 = vector.broadcast %cst_130 : f32 to vector<16x128xf32>
    %328 = arith.subf %327, %306 : vector<16x128xf32>
    %329 = arith.mulf %328, %306 : vector<16x128xf32>
    %330 = math.exp %329 : vector<16x128xf32>
    %331 = arith.mulf %326, %330 : vector<16x128xf32>
    %cst_131 = arith.constant 1.000000e+00 : f32
    %332 = vector.broadcast %cst_131 : f32 to vector<16x128xf32>
    %333 = arith.subf %332, %331 : vector<16x128xf32>
    %334 = arith.mulf %305, %333 : vector<16x128xf32>
    %cst_132 = arith.constant 1.000000e+00 : f32
    %335 = vector.broadcast %cst_132 : f32 to vector<16x128xf32>
    %336 = arith.addf %335, %334 : vector<16x128xf32>
    %337 = arith.mulf %298, %336 : vector<16x128xf32>
    %c0_133 = arith.constant 0 : index
    %c0_134 = arith.constant 0 : index
    %338 = vector.load %arg23[%c0_133, %c0_134] : memref<128x32xf32, #tpu.memory_space<vmem>>, vector<128x32xf32>
    %cst_135 = arith.constant dense<0.000000e+00> : vector<16x32xf32>
    %339 = tpu.matmul %337, %338, %cst_135 {dimension_numbers = #tpu.dot_dimension_numbers<[1], [0], [0], [1], [0, 0, 1, 1], [], []>} : vector<16x128xf32>, vector<128x32xf32>, vector<16x32xf32> -> vector<16x32xf32>
    %c0_136 = arith.constant 0 : index
    %c0_137 = arith.constant 0 : index
    %340 = vector.load %arg24[%c0_136, %c0_137] : memref<1x32xf32, #tpu.memory_space<vmem>>, vector<1x32xf32>
    %341 = vector.broadcast %340 : vector<1x32xf32> to vector<16x32xf32>
    %342 = arith.addf %339, %341 : vector<16x32xf32>
    %343 = vector.shape_cast %342 : vector<16x32xf32> to vector<2x8x32xf32>
    %344 = arith.addf %290, %343 : vector<2x8x32xf32>
    %cst_138 = arith.constant dense<0.000000e+00> : vector<2x8xf32>
    %345 = vector.multi_reduction <add>, %344, %cst_138 [2] : vector<2x8x32xf32> to vector<2x8xf32>
    %346 = vector.shape_cast %345 : vector<2x8xf32> to vector<2x8x1xf32>
    %347 = arith.mulf %344, %344 : vector<2x8x32xf32>
    %cst_139 = arith.constant dense<0.000000e+00> : vector<2x8xf32>
    %348 = vector.multi_reduction <add>, %347, %cst_139 [2] : vector<2x8x32xf32> to vector<2x8xf32>
    %349 = vector.shape_cast %348 : vector<2x8xf32> to vector<2x8x1xf32>
    %cst_140 = arith.constant dense<0.000000e+00> : vector<2x1xf32>
    %350 = vector.multi_reduction <add>, %346, %cst_140 [1] : vector<2x8x1xf32> to vector<2x1xf32>
    %351 = vector.shape_cast %350 : vector<2x1xf32> to vector<2x1x1xf32>
    %cst_141 = arith.constant 3.906250e-03 : f32
    %352 = vector.broadcast %cst_141 : f32 to vector<2x1x1xf32>
    %353 = arith.mulf %351, %352 : vector<2x1x1xf32>
    %cst_142 = arith.constant dense<0.000000e+00> : vector<2x1xf32>
    %354 = vector.multi_reduction <add>, %349, %cst_142 [1] : vector<2x8x1xf32> to vector<2x1xf32>
    %355 = vector.shape_cast %354 : vector<2x1xf32> to vector<2x1x1xf32>
    %cst_143 = arith.constant 3.906250e-03 : f32
    %356 = vector.broadcast %cst_143 : f32 to vector<2x1x1xf32>
    %357 = arith.mulf %355, %356 : vector<2x1x1xf32>
    %358 = arith.mulf %353, %353 : vector<2x1x1xf32>
    %359 = arith.subf %357, %358 : vector<2x1x1xf32>
    %360 = vector.broadcast %353 : vector<2x1x1xf32> to vector<2x8x32xf32>
    %361 = arith.subf %344, %360 : vector<2x8x32xf32>
    %cst_144 = arith.constant 9.99999974E-6 : f32
    %362 = vector.broadcast %cst_144 : f32 to vector<2x1x1xf32>
    %363 = arith.addf %359, %362 : vector<2x1x1xf32>
    %364 = math.rsqrt %363 : vector<2x1x1xf32>
    %365 = vector.broadcast %364 : vector<2x1x1xf32> to vector<2x8x32xf32>
    %366 = arith.mulf %361, %365 : vector<2x8x32xf32>
    %367 = vector.shape_cast %10 : vector<8x32xf32> to vector<1x8x32xf32>
    %368 = vector.broadcast %367 : vector<1x8x32xf32> to vector<2x8x32xf32>
    %369 = arith.mulf %366, %368 : vector<2x8x32xf32>
    %370 = vector.shape_cast %11 : vector<8x32xf32> to vector<1x8x32xf32>
    %371 = vector.broadcast %370 : vector<1x8x32xf32> to vector<2x8x32xf32>
    %372 = arith.addf %369, %371 : vector<2x8x32xf32>
    %c0_145 = arith.constant 0 : index
    %c0_146 = arith.constant 0 : index
    %c0_147 = arith.constant 0 : index
    %373 = vector.load %arg25[%c0_145, %c0_146, %c0_147] : memref<2x8x32xf32, #tpu.memory_space<vmem>>, vector<2x8x32xf32>
    tpu.vector_store %arg25[%c0_145, %c0_146, %c0_147], %372 {strides = array<i32>} : memref<2x8x32xf32, #tpu.memory_space<vmem>>, vector<2x8x32xf32>,
    return
  }
  func.func @transform_0(%arg0: i32) -> (i32, i32, i32) {
    %c0_i32 = arith.constant 0 : i32
    %c0_i32_0 = arith.constant 0 : i32
    %c0_i32_1 = arith.constant 0 : i32
    return %arg0, %c0_i32, %c0_i32_0 : i32, i32, i32
  }
  func.func @transform_1(%arg0: i32) -> (i32, i32, i32) {
    %c0_i32 = arith.constant 0 : i32
    %c0_i32_0 = arith.constant 0 : i32
    %c0_i32_1 = arith.constant 0 : i32
    return %arg0, %c0_i32, %c0_i32_0 : i32, i32, i32
  }
  func.func @transform_2(%arg0: i32) -> (i32, i32) {
    %c0_i32 = arith.constant 0 : i32
    %c0_i32_0 = arith.constant 0 : i32
    %c0_i32_1 = arith.constant 0 : i32
    return %c0_i32, %c0_i32_0 : i32, i32
  }
  func.func @transform_3(%arg0: i32) -> (i32, i32) {
    %c0_i32 = arith.constant 0 : i32
    %c0_i32_0 = arith.constant 0 : i32
    %c0_i32_1 = arith.constant 0 : i32
    return %c0_i32, %c0_i32_0 : i32, i32
  }
  func.func @transform_4(%arg0: i32) -> (i32, i32) {
    %c0_i32 = arith.constant 0 : i32
    %c0_i32_0 = arith.constant 0 : i32
    %c0_i32_1 = arith.constant 0 : i32
    return %c0_i32, %c0_i32_0 : i32, i32
  }
  func.func @transform_5(%arg0: i32) -> (i32, i32) {
    %c0_i32 = arith.constant 0 : i32
    %c0_i32_0 = arith.constant 0 : i32
    %c0_i32_1 = arith.constant 0 : i32
    return %c0_i32, %c0_i32_0 : i32, i32
  }
  func.func @transform_6(%arg0: i32) -> (i32, i32) {
    %c0_i32 = arith.constant 0 : i32
    %c0_i32_0 = arith.constant 0 : i32
    %c0_i32_1 = arith.constant 0 : i32
    return %c0_i32, %c0_i32_0 : i32, i32
  }
  func.func @transform_7(%arg0: i32) -> (i32, i32) {
    %c0_i32 = arith.constant 0 : i32
    %c0_i32_0 = arith.constant 0 : i32
    %c0_i32_1 = arith.constant 0 : i32
    return %c0_i32, %c0_i32_0 : i32, i32
  }
  func.func @transform_8(%arg0: i32) -> (i32, i32) {
    %c0_i32 = arith.constant 0 : i32
    %c0_i32_0 = arith.constant 0 : i32
    %c0_i32_1 = arith.constant 0 : i32
    return %c0_i32, %c0_i32_0 : i32, i32
  }
  func.func @transform_9(%arg0: i32) -> (i32, i32) {
    %c0_i32 = arith.constant 0 : i32
    %c0_i32_0 = arith.constant 0 : i32
    %c0_i32_1 = arith.constant 0 : i32
    return %c0_i32, %c0_i32_0 : i32, i32
  }
  func.func @transform_10(%arg0: i32) -> (i32, i32) {
    %c0_i32 = arith.constant 0 : i32
    %c0_i32_0 = arith.constant 0 : i32
    %c0_i32_1 = arith.constant 0 : i32
    return %c0_i32, %c0_i32_0 : i32, i32
  }
  func.func @transform_11(%arg0: i32) -> (i32, i32) {
    %c0_i32 = arith.constant 0 : i32
    %c0_i32_0 = arith.constant 0 : i32
    %c0_i32_1 = arith.constant 0 : i32
    return %c0_i32, %c0_i32_0 : i32, i32
  }
  func.func @transform_12(%arg0: i32) -> (i32, i32) {
    %c0_i32 = arith.constant 0 : i32
    %c0_i32_0 = arith.constant 0 : i32
    %c0_i32_1 = arith.constant 0 : i32
    return %c0_i32, %c0_i32_0 : i32, i32
  }
  func.func @transform_13(%arg0: i32) -> (i32, i32) {
    %c0_i32 = arith.constant 0 : i32
    %c0_i32_0 = arith.constant 0 : i32
    %c0_i32_1 = arith.constant 0 : i32
    return %c0_i32, %c0_i32_0 : i32, i32
  }
  func.func @transform_14(%arg0: i32) -> (i32, i32) {
    %c0_i32 = arith.constant 0 : i32
    %c0_i32_0 = arith.constant 0 : i32
    %c0_i32_1 = arith.constant 0 : i32
    return %c0_i32, %c0_i32_0 : i32, i32
  }
  func.func @transform_15(%arg0: i32) -> (i32, i32) {
    %c0_i32 = arith.constant 0 : i32
    %c0_i32_0 = arith.constant 0 : i32
    %c0_i32_1 = arith.constant 0 : i32
    return %c0_i32, %c0_i32_0 : i32, i32
  }
  func.func @transform_16(%arg0: i32) -> (i32, i32) {
    %c0_i32 = arith.constant 0 : i32
    %c0_i32_0 = arith.constant 0 : i32
    %c0_i32_1 = arith.constant 0 : i32
    return %c0_i32, %c0_i32_0 : i32, i32
  }
  func.func @transform_17(%arg0: i32) -> (i32, i32) {
    %c0_i32 = arith.constant 0 : i32
    %c0_i32_0 = arith.constant 0 : i32
    %c0_i32_1 = arith.constant 0 : i32
    return %c0_i32, %c0_i32_0 : i32, i32
  }
  func.func @transform_18(%arg0: i32) -> (i32, i32) {
    %c0_i32 = arith.constant 0 : i32
    %c0_i32_0 = arith.constant 0 : i32
    %c0_i32_1 = arith.constant 0 : i32
    return %c0_i32, %c0_i32_0 : i32, i32
  }
  func.func @transform_19(%arg0: i32) -> (i32, i32) {
    %c0_i32 = arith.constant 0 : i32
    %c0_i32_0 = arith.constant 0 : i32
    %c0_i32_1 = arith.constant 0 : i32
    return %c0_i32, %c0_i32_0 : i32, i32
  }
  func.func @transform_20(%arg0: i32) -> (i32, i32) {
    %c0_i32 = arith.constant 0 : i32
    %c0_i32_0 = arith.constant 0 : i32
    %c0_i32_1 = arith.constant 0 : i32
    return %c0_i32, %c0_i32_0 : i32, i32
  }
  func.func @transform_21(%arg0: i32) -> (i32, i32) {
    %c0_i32 = arith.constant 0 : i32
    %c0_i32_0 = arith.constant 0 : i32
    %c0_i32_1 = arith.constant 0 : i32
    return %c0_i32, %c0_i32_0 : i32, i32
  }
  func.func @transform_22(%arg0: i32) -> (i32, i32) {
    %c0_i32 = arith.constant 0 : i32
    %c0_i32_0 = arith.constant 0 : i32
    %c0_i32_1 = arith.constant 0 : i32
    return %c0_i32, %c0_i32_0 : i32, i32
  }
  func.func @transform_23(%arg0: i32) -> (i32, i32) {
    %c0_i32 = arith.constant 0 : i32
    %c0_i32_0 = arith.constant 0 : i32
    %c0_i32_1 = arith.constant 0 : i32
    return %c0_i32, %c0_i32_0 : i32, i32
  }
  func.func @transform_24(%arg0: i32) -> (i32, i32, i32) {
    %c0_i32 = arith.constant 0 : i32
    %c0_i32_0 = arith.constant 0 : i32
    %c0_i32_1 = arith.constant 0 : i32
    return %arg0, %c0_i32, %c0_i32_0 : i32, i32, i32
  }
}

</mosaic_0001>

<bundles_post_ra>
// kernel: tpu_custom_call.1
= control target key start
LH: loop header
LB: loop body
LE: loop exit
PB: predicated region body
PF: predicated region fallthrough
CT: control target
= control target key end

     0   :  { %s8128_s0 = inlined_call_operand.vmem [shape: f32[4,8,32], index: 0, kind: input, shape index: {}]   ;;  %s8129_s1 = inlined_call_operand.vmem [shape: f32[4,8,32], index: 1, kind: input, shape index: {}]   ;;  %s8130_s2 = inlined_call_operand.vmem [shape: f32[32,32], index: 2, kind: input, shape index: {}]   ;;  %s8131_s3 = inlined_call_operand.hbm [shape: f32[1,32], index: 3, kind: input, shape index: {}]   ;;  %s8132_s4 = inlined_call_operand.vmem [shape: f32[32,32], index: 4, kind: input, shape index: {}]   ;;  %s8133_s5 = inlined_call_operand.hbm [shape: f32[1,32], index: 5, kind: input, shape index: {}]   ;;  %s8134_s6 = inlined_call_operand.vmem [shape: f32[32,32], index: 6, kind: input, shape index: {}]   ;;  %s8135_s7 = inlined_call_operand.hbm [shape: f32[1,32], index: 7, kind: input, shape index: {}]   ;;  %s8136_s8 = inlined_call_operand.hbm [shape: f32[32,32], index: 8, kind: input, shape index: {}]   ;;  %s8137_s9 = inlined_call_operand.hbm [shape: f32[1,32], index: 9, kind: input, shape index: {}]   ;;  %s8138_s10 = inlined_call_operand.vmem [shape: f32[32,32], index: 10, kind: input, shape index: {}]   ;;  %s8139_s11 = inlined_call_operand.hbm [shape: f32[1,32], index: 11, kind: input, shape index: {}]   ;;  %s8140_s12 = inlined_call_operand.hbm [shape: f32[32,32], index: 12, kind: input, shape index: {}]   ;;  %s8141_s13 = inlined_call_operand.hbm [shape: f32[1,32], index: 13, kind: input, shape index: {}]   ;;  %s8142_s14 = inlined_call_operand.hbm [shape: f32[32,32], index: 14, kind: input, shape index: {}]   ;;  %s8143_s15 = inlined_call_operand.hbm [shape: f32[1,32], index: 15, kind: input, shape index: {}]   ;;  %s8144_s16 = inlined_call_operand.hbm [shape: f32[32,32], index: 16, kind: input, shape index: {}]   ;;  %s8145_s17 = inlined_call_operand.hbm [shape: f32[1,32], index: 17, kind: input, shape index: {}]   ;;  %s8146_s18 = inlined_call_operand.hbm [shape: f32[8,32], index: 18, kind: input, shape index: {}]   ;;  %s8147_s19 = inlined_call_operand.hbm [shape: f32[8,32], index: 19, kind: input, shape index: {}]   ;;  %s8148_s20 = inlined_call_operand.hbm [shape: f32[32,128], index: 20, kind: input, shape index: {}]   ;;  %s8149_s21 = inlined_call_operand.vmem [shape: f32[1,128], index: 21, kind: input, shape index: {}]   ;;  %s8150_s22 = inlined_call_operand.vmem [shape: f32[128,32], index: 22, kind: input, shape index: {}]   ;;  %s8151_s23 = inlined_call_operand.vmem [shape: f32[1,32], index: 23, kind: input, shape index: {}]   ;;  %s8152_s24 = inlined_call_operand.hbm [shape: f32[4,8,32], index: 24, kind: output, shape index: {}]  }
   0x1   :  { %8180 = sst [smem:[#allocation44_spill]] %s8128_s0 }
   0x2   :  { %8181 = sst [smem:[#allocation45_spill]] %s8129_s1 }
   0x3   :  { %8182 = sst [smem:[#allocation46_spill]] %s8130_s2 }
   0x4   :  { %8183 = sst [smem:[#allocation47_spill]] %s8131_s3 }
   0x5   :  { %8184 = sst [smem:[#allocation48_spill]] %s8132_s4 }
   0x6   :  { %8185 = sst [smem:[#allocation49_spill]] %s8133_s5 }
   0x7   :  { %8186 = sst [smem:[#allocation50_spill]] %s8134_s6 }
   0x8   :  { %8187 = sst [smem:[#allocation51_spill]] %s8135_s7 }
   0x9   :  { %8188 = sst [smem:[#allocation52_spill]] %s8136_s8 }
   0xa   :  { %8189 = sst [smem:[#allocation53_spill]] %s8137_s9 }
   0xb   :  { %8190 = sst [smem:[#allocation54_spill]] %s8139_s11 }
   0xc   :  { %8191 = sst [smem:[#allocation55_spill]] %s8149_s21 }
   0xd   :  { %8192 = sst [smem:[#allocation56_spill]] %s8151_s23 }
   0xe   :  { %8193 = sst [smem:[#allocation57_spill]] %s8152_s24 }
   0xf   :  { %29 = vsyncpa [#allocation3], 0 }
  0x10   :  { %30 = vsyncpa [#allocation6], 0 }
  0x11   :  { %31 = vsyncpa [#allocation9], 0 }
  0x12   :  { %32 = vsyncpa [#allocation12], 0 }
  0x13   :  { %33 = vsyncpa [#allocation15], 0 }
  0x14   :  { %34 = vsyncpa [#allocation18], 0 }
  0x15   :  { %35 = vsyncpa [#allocation21], 0 }
  0x16   :  { %36 = vsyncpa [#allocation24], 0 }
  0x17   :  { %37 = vsyncpa [#allocation4], 0 }
  0x18   :  { %39 = vsyncpa [#allocation4 + $0x1], 0  ;;  %s7144_s5 = smov 0   ;;  %s7146_s26 = smov 0  }
  0x19   :  { %s7148_s27 = smov 0   ;;  %s7150_s28 = smov 0  }
  0x1a LB: > { %8194 = sst [smem:[#allocation36_spill]] %s6978_s5  ;;  %s7165_s6 = sadd.s32 4294967295, %s6990_s28   ;;  %s6990_s28 = sphi %s7150_s28, %s8248_s28   ;;  %s6986_s27 = sphi %s7148_s27, %s8251_s27   ;;  %s6982_s26 = sphi %s7146_s26, %s8250_s26   ;;  %s6978_s5 = sphi %s7144_s5, %s8249_s5  }
  0x1b   : > { %8195 = sst [smem:[#allocation37_spill]] %s6982_s26  ;;  %s5496_s2 = sadd.s32 4294967294, %s6990_s28  }
  0x1c   : > { %8196 = sst [smem:[#allocation38_spill]] %s6986_s27  ;;  %s7169_s29 = sadd.s32 1, %s6990_s28  }
  0x1d   : > { %8197 = sst [smem:[#allocation39_spill]] %s6990_s28  ;;  %s566_s0 = sadd.s32 1, %s6986_s27 }
  0x1e   : > { %8198 = sst [smem:[#allocation40_spill]] %s7169_s29  ;;  %s563_s7 = ssub.s32 %s6990_s28, %s7169_s29 }
  0x1f   : > { %p576_p0 = scmp.ne.s32.totalorder %s6986_s27, %s6982_s26  ;;  %p564_p1 = scmp.eq.s32.totalorder %s563_s7, 0 }
  0x20   : > { %p577_p2 = scmp.eq.s32.totalorder %s7165_s6, 1  ;;  %p582_p3 = scmp.ne.s32.totalorder %s6982_s26, %s6978_s5 }
  0x21   : > { %p583_p4 = scmp.eq.s32.totalorder %s5496_s2, 1  ;;  %p5497_p7 = scmp.ge.s32.totalorder %s6990_s28, 1 }
  0x22   : > { %s7180_s30 = scalar_select %p564_p1, %s6986_s27, %s566_s0  }
  0x23   : > { %p7182_p5 = por %p577_p2, %p576_p0  ;;  %p7186_p6 = por %p583_p4, %p582_p3 }
  0x24   : > { %8199 = sst [smem:[#allocation41_spill]] %s7180_s30  ;;  %p590_p8 = scmp.lt.s32.totalorder %s6990_s28, 3 }
  0x25   : > { %s8200_s3 = scalar_select %p7182_p5, 1, 0 }
  0x26   : > { %s8202_s25 = scalar_select %p7186_p6, 1, 0 }
  0x27   : > { %8201 = sst [smem:[#allocation42_spill]] %s8200_s3  ;;  %p8170_p9 = scmp.eq.s32.totalorder %s7165_s6, 0 }
  0x28   : > { %8203 = sst [smem:[#allocation43_spill]] %s8202_s25  ;;  %p7193_p10 = pnand %p5497_p7, %p590_p8 }
  0x29   : > { %s6992_s4 = smov [#allocation5]   ;;  %s6993_s2 = smov [#allocation8]  }
  0x2a   : > { %s8204_s8 = scalar_select %p7193_p10, 1, 0 }
  0x2b   : > { %s620_s1 = sshll.u32 %s6992_s4, 4  ;;  %p6251_p11 = pneg %p7193_p10  ;;  %s621_s1 = int_to_ptr.vmem [resolvable:$true] %s620_s1 }
  0x2c   : > { %s644_s0 = sshll.u32 %s6993_s2, 4  ;;  %s6994_s30 = smov [#allocation11]   ;;  %s7205_s0 = int_to_ptr.vmem [resolvable:$true] %s644_s0 }
  0x2d   : > { %p7201_p12 = pnand %p8170_p9, %p6251_p11  ;;  %s7207_s27 = sshll.u32 %s6994_s30, 4  ;;  %s673_s27 = int_to_ptr.vmem [resolvable:$true] %s7207_s27 }
  0x2e   : > { %s8206_s5 = sld [smem:[#allocation49_spill]] }
  0x2f   : > { %p7217_p0 = pneg %p7201_p12 }
  0x34   : > { %s8207_s24 = smov %s8206_s5  ;;  %s6476_s4 = scalar_lea.hbm %s8206_s5, 16 }
  0x35   : > { %p6477_p13 = scmp.ne.s32.totalorder %s8207_s24, %s6476_s4  ;;  %p6483_p3 = scmp.lt.u32.totalorder %s6476_s4, %s8207_s24 }
  0x37   : > { %p6479_p1 = pnand %p7217_p0, %p6477_p13 }
  0x39   : > { %p6480_p2 = pneg %p6479_p1 }
  0x3b   : > { %p6485_p4 = pnand %p6483_p3, %p6480_p2 }
  0x3d   : > { %6488 = shalt.err (!%p6485_p4)
}
  0x3e   : > { %s6489_s5 = scalar_lea.vmem %s621_s1, 16  ;;  %s6496_s28 = scalar_lea.vmem %s621_s1, 32 }
  0x3f   : > { %p6490_p7 = scmp.ne.s32.totalorder %s621_s1, %s6489_s5  ;;  %p6497_p9 = scmp.lt.s32.totalorder %s621_s1, %s621_s1 }
  0x40   : > { %p6498_p6 = scmp.lt.s32.totalorder %s6496_s28, %s6489_s5 }
  0x41   : > { %p6492_p8 = pnand %p6490_p7, %p7217_p0 }
  0x42   : > { %p6499_p5 = por %p6498_p6, %p6497_p9 }
  0x43   : > { %p6493_p11 = pneg %p6492_p8 }
  0x45   : > { %p6500_p10 = pnand %p6499_p5, %p6493_p11 }
  0x47   : > { %6503 = shalt.err (!%p6500_p10)
}
  0x48   : > { %6257 = dma.hbm_to_vmem [thread:$0]  (!%p7201_p12), %s8207_s24, 16, %s621_s1, [#allocation6]  }
  0x49   : > { %s8209_s4 = sld [smem:[#allocation52_spill]] }
  0x4f   : > { %s6504_s30 = scalar_lea.hbm %s8209_s4, 512 }
  0x50   : > { %p6505_p13 = scmp.ne.s32.totalorder %s8209_s4, %s6504_s30  ;;  %p6511_p5 = scmp.lt.u32.totalorder %s6504_s30, %s8209_s4 }
  0x52   : > { %p6507_p1 = pnand %p6505_p13, %p7217_p0 }
  0x54   : > { %p6508_p6 = pneg %p6507_p1 }
  0x56   : > { %p6513_p9 = pnand %p6511_p5, %p6508_p6 }
  0x58   : > { %6516 = shalt.err (!%p6513_p9)
}
  0x59   : > { %s6517_s1 = scalar_lea.vmem %s7205_s0, 512  ;;  %p6525_p4 = scmp.lt.s32.totalorder %s7205_s0, %s7205_s0 }
  0x5a   : > { %p6518_p10 = scmp.ne.s32.totalorder %s7205_s0, %s6517_s1  ;;  %p6526_p7 = scmp.lt.s32.totalorder %s6517_s1, %s6517_s1 }
  0x5c   : > { %p6520_p2 = pnand %p6518_p10, %p7217_p0  ;;  %p6527_p8 = por %p6526_p7, %p6525_p4 }
  0x5e   : > { %p6521_p3 = pneg %p6520_p2 }
  0x60   : > { %p6528_p11 = pnand %p6527_p8, %p6521_p3 }
  0x62   : > { %6531 = shalt.err (!%p6528_p11)
}
  0x63   : > { %s8174_s21 = smov 128   ;;  %s8176_s23 = smov 8  }
  0x64   : > { %6263 = dma.hbm_to_vmem [thread:$0]  (!%p7201_p12), %s8209_s4, 512, %s7205_s0, [#allocation9], %s8174_s21, %s8174_s21, %s8176_s23  }
  0x65   : > { %s8210_s11 = sld [smem:[#allocation54_spill]] }
  0x6b   : > { %s6532_s30 = scalar_lea.hbm %s8210_s11, 16 }
  0x6c   : > { %p6533_p13 = scmp.ne.s32.totalorder %s8210_s11, %s6532_s30  ;;  %p6539_p5 = scmp.lt.u32.totalorder %s6532_s30, %s8210_s11 }
  0x6e   : > { %p6535_p1 = pnand %p6533_p13, %p7217_p0 }
  0x70   : > { %p6536_p6 = pneg %p6535_p1 }
  0x72   : > { %p6541_p9 = pnand %p6539_p5, %p6536_p6 }
  0x74   : > { %6544 = shalt.err (!%p6541_p9)
}
  0x75   : > { %s6545_s29 = scalar_lea.vmem %s673_s27, 16  ;;  %s6552_s0 = scalar_lea.vmem %s673_s27, 32 }
  0x76   : > { %p6546_p10 = scmp.ne.s32.totalorder %s673_s27, %s6545_s29  ;;  %p6553_p4 = scmp.lt.s32.totalorder %s673_s27, %s673_s27 }
  0x77   : > { %p6554_p7 = scmp.lt.s32.totalorder %s6552_s0, %s6545_s29 }
  0x78   : > { %p6548_p2 = pnand %p6546_p10, %p7217_p0 }
  0x79   : > { %p6555_p8 = por %p6554_p7, %p6553_p4 }
  0x7a   : > { %p6549_p3 = pneg %p6548_p2 }
  0x7c   : > { %p6556_p11 = pnand %p6555_p8, %p6549_p3 }
  0x7e   : > { %6559 = shalt.err (!%p6556_p11)
}
  0x7f   : > { %6269 = dma.hbm_to_vmem [thread:$0]  (!%p7201_p12), %s8210_s11, 16, %s673_s27, [#allocation12]  }
  0x80   : > { %s6997_s24 = smov [#allocation14]   ;;  %s6998_s30 = smov [#allocation17]  }
  0x81   : > { %s696_s25 = sshll.u32 %s6997_s24, 4  ;;  %s720_s5 = sshll.u32 %s6998_s30, 4  ;;  %s697_s25 = int_to_ptr.vmem [resolvable:$true] %s696_s25  ;;  %s721_s5 = int_to_ptr.vmem [resolvable:$true] %s720_s5 }
  0x82   : > { %s6560_s21 = scalar_lea.hbm %s8141_s13, 16 }
  0x83   : > { %p6561_p13 = scmp.ne.s32.totalorder %s8141_s13, %s6560_s21  ;;  %p6567_p5 = scmp.lt.u32.totalorder %s6560_s21, %s8141_s13 }
  0x85   : > { %p6563_p1 = pnand %p6561_p13, %p7217_p0 }
  0x87   : > { %p6564_p6 = pneg %p6563_p1 }
  0x89   : > { %p6569_p9 = pnand %p6567_p5, %p6564_p6 }
  0x8b   : > { %6572 = shalt.err (!%p6569_p9)
}
  0x8c   : > { %s6573_s27 = scalar_lea.vmem %s697_s25, 16  ;;  %s6580_s26 = scalar_lea.vmem %s697_s25, 32 }
  0x8d   : > { %p6574_p10 = scmp.ne.s32.totalorder %s697_s25, %s6573_s27  ;;  %p6581_p4 = scmp.lt.s32.totalorder %s697_s25, %s697_s25 }
  0x8e   : > { %p6582_p7 = scmp.lt.s32.totalorder %s6580_s26, %s6573_s27 }
  0x8f   : > { %p6576_p2 = pnand %p6574_p10, %p7217_p0 }
  0x90   : > { %p6583_p8 = por %p6582_p7, %p6581_p4 }
  0x91   : > { %p6577_p3 = pneg %p6576_p2 }
  0x93   : > { %p6584_p11 = pnand %p6583_p8, %p6577_p3 }
  0x95   : > { %6587 = shalt.err (!%p6584_p11)
}
  0x96   : > { %6275 = dma.hbm_to_vmem [thread:$0]  (!%p7201_p12), %s8141_s13, 16, %s697_s25, [#allocation15]  }
  0x97   : > { %s6588_s28 = scalar_lea.hbm %s8143_s15, 16 }
  0x98   : > { %p6589_p13 = scmp.ne.s32.totalorder %s8143_s15, %s6588_s28  ;;  %p6595_p5 = scmp.lt.u32.totalorder %s6588_s28, %s8143_s15 }
  0x9a   : > { %p6591_p1 = pnand %p6589_p13, %p7217_p0 }
  0x9c   : > { %p6592_p6 = pneg %p6591_p1 }
  0x9e   : > { %p6597_p9 = pnand %p6595_p5, %p6592_p6 }
  0xa0   : > { %6600 = shalt.err (!%p6597_p9)
}
  0xa1   : > { %s6601_s27 = scalar_lea.vmem %s721_s5, 16  ;;  %s6608_s25 = scalar_lea.vmem %s721_s5, 32 }
  0xa2   : > { %p6602_p10 = scmp.ne.s32.totalorder %s721_s5, %s6601_s27  ;;  %p6609_p4 = scmp.lt.s32.totalorder %s721_s5, %s721_s5 }
  0xa3   : > { %p6610_p7 = scmp.lt.s32.totalorder %s6608_s25, %s6601_s27 }
  0xa4   : > { %p6604_p2 = pnand %p6602_p10, %p7217_p0 }
  0xa5   : > { %p6611_p8 = por %p6610_p7, %p6609_p4 }
  0xa6   : > { %p6605_p3 = pneg %p6604_p2 }
  0xa8   : > { %p6612_p11 = pnand %p6611_p8, %p6605_p3 }
  0xaa   : > { %6615 = shalt.err (!%p6612_p11)
}
  0xab   : > { %6281 = dma.hbm_to_vmem [thread:$0]  (!%p7201_p12), %s8143_s15, 16, %s721_s5, [#allocation18]  }
  0xac   : > { %s6999_s30 = smov [#allocation20]   ;;  %s7000_s23 = smov [#allocation23]  }
  0xad   : > { %s744_s21 = sshll.u32 %s6999_s30, 4  ;;  %s766_s28 = sshll.u32 %s7000_s23, 4  ;;  %s745_s21 = int_to_ptr.vmem [resolvable:$true] %s744_s21  ;;  %s767_s28 = int_to_ptr.vmem [resolvable:$true] %s766_s28 }
  0xae   : > { %s6616_s0 = scalar_lea.hbm %s8145_s17, 16 }
  0xaf   : > { %p6617_p13 = scmp.ne.s32.totalorder %s8145_s17, %s6616_s0  ;;  %p6623_p5 = scmp.lt.u32.totalorder %s6616_s0, %s8145_s17 }
  0xb1   : > { %p6619_p1 = pnand %p6617_p13, %p7217_p0 }
  0xb3   : > { %p6620_p6 = pneg %p6619_p1 }
  0xb5   : > { %p6625_p9 = pnand %p6623_p5, %p6620_p6 }
  0xb7   : > { %6628 = shalt.err (!%p6625_p9)
}
  0xb8   : > { %s6629_s5 = scalar_lea.vmem %s745_s21, 16  ;;  %s6636_s24 = scalar_lea.vmem %s745_s21, 32 }
  0xb9   : > { %p6630_p10 = scmp.ne.s32.totalorder %s745_s21, %s6629_s5  ;;  %p6637_p4 = scmp.lt.s32.totalorder %s745_s21, %s745_s21 }
  0xba   : > { %p6638_p7 = scmp.lt.s32.totalorder %s6636_s24, %s6629_s5 }
  0xbb   : > { %p6632_p2 = pnand %p6630_p10, %p7217_p0 }
  0xbc   : > { %p6639_p8 = por %p6638_p7, %p6637_p4 }
  0xbd   : > { %p6633_p3 = pneg %p6632_p2 }
  0xbf   : > { %p6640_p11 = pnand %p6639_p8, %p6633_p3 }
  0xc1   : > { %6643 = shalt.err (!%p6640_p11)
}
  0xc2   : > { %6287 = dma.hbm_to_vmem [thread:$0]  (!%p7201_p12), %s8145_s17, 16, %s745_s21, [#allocation21]  }
  0xc3   : > { %s6644_s0 = scalar_lea.hbm %s8147_s19, 128 }
  0xc4   : > { %p6645_p13 = scmp.ne.s32.totalorder %s8147_s19, %s6644_s0  ;;  %p6651_p5 = scmp.lt.u32.totalorder %s6644_s0, %s8147_s19 }
  0xc6   : > { %p6647_p1 = pnand %p6645_p13, %p7217_p0 }
  0xc8   : > { %p6648_p6 = pneg %p6647_p1 }
  0xca   : > { %p6653_p9 = pnand %p6651_p5, %p6648_p6 }
  0xcc   : > { %6656 = shalt.err (!%p6653_p9)
}
  0xcd   : > { %s6657_s5 = scalar_lea.vmem %s767_s28, 128  ;;  %p6665_p4 = scmp.lt.s32.totalorder %s767_s28, %s767_s28 }
  0xce   : > { %p6658_p10 = scmp.ne.s32.totalorder %s767_s28, %s6657_s5  ;;  %p6666_p7 = scmp.lt.s32.totalorder %s6657_s5, %s6657_s5 }
  0xd0   : > { %p6660_p2 = pnand %p6658_p10, %p7217_p0  ;;  %p6667_p8 = por %p6666_p7, %p6665_p4 }
  0xd2   : > { %p6661_p3 = pneg %p6660_p2 }
  0xd4   : > { %p6668_p11 = pnand %p6667_p8, %p6661_p3 }
  0xd6   : > { %6671 = shalt.err (!%p6668_p11)
}
  0xd7   : > { %6293 = dma.hbm_to_vmem [thread:$0]  (!%p7201_p12), %s8147_s19, 128, %s767_s28, [#allocation24]  }
  0xd8   : > { %s7001_s30 = smov [#allocation2]   ;;  %s7002_s1 = smov [#allocation7]  }
  0xd9   : > { %s606_s23 = sshll.u32 %s7001_s30, 4  ;;  %s634_s29 = sshll.u32 %s7002_s1, 4  ;;  %s607_s23 = int_to_ptr.vmem [resolvable:$true] %s606_s23  ;;  %s635_s29 = int_to_ptr.vmem [resolvable:$true] %s634_s29 }
  0xda   : > { %s8211_s27 = sld [smem:[#allocation47_spill]] }
  0xe0   : > { %s8212_s25 = smov %s8211_s27  ;;  %s6672_s26 = scalar_lea.hbm %s8211_s27, 16 }
  0xe1   : > { %p6673_p13 = scmp.ne.s32.totalorder %s8212_s25, %s6672_s26  ;;  %p6679_p5 = scmp.lt.u32.totalorder %s6672_s26, %s8212_s25 }
  0xe3   : > { %p6675_p1 = pnand %p6673_p13, %p7217_p0 }
  0xe5   : > { %p6676_p6 = pneg %p6675_p1 }
  0xe7   : > { %p6681_p9 = pnand %p6679_p5, %p6676_p6 }
  0xe9   : > { %6684 = shalt.err (!%p6681_p9)
}
  0xea   : > { %s6685_s28 = scalar_lea.vmem %s607_s23, 16  ;;  %s6692_s24 = scalar_lea.vmem %s607_s23, 32 }
  0xeb   : > { %p6686_p10 = scmp.ne.s32.totalorder %s607_s23, %s6685_s28  ;;  %p6693_p4 = scmp.lt.s32.totalorder %s607_s23, %s607_s23 }
  0xec   : > { %p6694_p7 = scmp.lt.s32.totalorder %s6692_s24, %s6685_s28 }
  0xed   : > { %p6688_p2 = pnand %p6686_p10, %p7217_p0 }
  0xee   : > { %p6695_p8 = por %p6694_p7, %p6693_p4 }
  0xef   : > { %p6689_p3 = pneg %p6688_p2 }
  0xf1   : > { %p6696_p11 = pnand %p6695_p8, %p6689_p3 }
  0xf3   : > { %6699 = shalt.err (!%p6696_p11)
}
  0xf4   : > { %6254 = dma.hbm_to_vmem [thread:$0]  (!%p7201_p12), %s8212_s25, 16, %s607_s23, [#allocation3]  }
  0xf5   : > { %s8213_s0 = sld [smem:[#allocation51_spill]] }
  0xfb   : > { %s6700_s3 = scalar_lea.hbm %s8213_s0, 16 }
  0xfc   : > { %p6701_p13 = scmp.ne.s32.totalorder %s8213_s0, %s6700_s3  ;;  %p6707_p5 = scmp.lt.u32.totalorder %s6700_s3, %s8213_s0 }
  0xfe   : > { %p6703_p1 = pnand %p6701_p13, %p7217_p0 }
 0x100   : > { %p6704_p6 = pneg %p6703_p1 }
 0x102   : > { %p6709_p9 = pnand %p6707_p5, %p6704_p6 }
 0x104   : > { %6712 = shalt.err (!%p6709_p9)
}
 0x105   : > { %s6713_s28 = scalar_lea.vmem %s635_s29, 16  ;;  %s6720_s23 = scalar_lea.vmem %s635_s29, 32 }
 0x106   : > { %p6714_p10 = scmp.ne.s32.totalorder %s635_s29, %s6713_s28  ;;  %p6721_p4 = scmp.lt.s32.totalorder %s635_s29, %s635_s29 }
 0x107   : > { %p6722_p7 = scmp.lt.s32.totalorder %s6720_s23, %s6713_s28 }
 0x108   : > { %p6716_p2 = pnand %p6714_p10, %p7217_p0 }
 0x109   : > { %p6723_p8 = por %p6722_p7, %p6721_p4 }
 0x10a   : > { %p6717_p3 = pneg %p6716_p2 }
 0x10c   : > { %p6724_p11 = pnand %p6723_p8, %p6717_p3 }
 0x10e   : > { %6727 = shalt.err (!%p6724_p11)
}
 0x10f   : > { %6260 = dma.hbm_to_vmem [thread:$0]  (!%p7201_p12), %s8213_s0, 16, %s635_s29, [#allocation6]  }
 0x110   : > { %s7003_s30 = smov [#allocation10]   ;;  %s7004_s1 = smov [#allocation13]  }
 0x111   : > { %s658_s11 = sshll.u32 %s7003_s30, 4  ;;  %s682_s3 = sshll.u32 %s7004_s1, 4  ;;  %s659_s11 = int_to_ptr.vmem [resolvable:$true] %s658_s11  ;;  %s683_s3 = int_to_ptr.vmem [resolvable:$true] %s682_s3 }
 0x112   : > { %s8214_s9 = sld [smem:[#allocation53_spill]] }
 0x118   : > { %s6728_s5 = scalar_lea.hbm %s8214_s9, 16 }
 0x119   : > { %p6729_p13 = scmp.ne.s32.totalorder %s8214_s9, %s6728_s5  ;;  %p6735_p5 = scmp.lt.u32.totalorder %s6728_s5, %s8214_s9 }
 0x11b   : > { %p6731_p1 = pnand %p6729_p13, %p7217_p0 }
 0x11d   : > { %p6732_p6 = pneg %p6731_p1 }
 0x11f   : > { %p6737_p9 = pnand %p6735_p5, %p6732_p6 }
 0x121   : > { %6740 = shalt.err (!%p6737_p9)
}
 0x122   : > { %s6741_s29 = scalar_lea.vmem %s659_s11, 16  ;;  %s6748_s4 = scalar_lea.vmem %s659_s11, 32 }
 0x123   : > { %p6742_p10 = scmp.ne.s32.totalorder %s659_s11, %s6741_s29  ;;  %p6749_p4 = scmp.lt.s32.totalorder %s659_s11, %s659_s11 }
 0x124   : > { %p6750_p7 = scmp.lt.s32.totalorder %s6748_s4, %s6741_s29 }
 0x125   : > { %p6744_p2 = pnand %p6742_p10, %p7217_p0 }
 0x126   : > { %p6751_p8 = por %p6750_p7, %p6749_p4 }
 0x127   : > { %p6745_p3 = pneg %p6744_p2 }
 0x129   : > { %p6752_p11 = pnand %p6751_p8, %p6745_p3 }
 0x12b   : > { %6755 = shalt.err (!%p6752_p11)
}
 0x12c   : > { %6266 = dma.hbm_to_vmem [thread:$0]  (!%p7201_p12), %s8214_s9, 16, %s659_s11, [#allocation9]  }
 0x12d   : > { %s6756_s5 = scalar_lea.hbm %s8140_s12, 512 }
 0x12e   : > { %p6757_p13 = scmp.ne.s32.totalorder %s8140_s12, %s6756_s5  ;;  %p6763_p5 = scmp.lt.u32.totalorder %s6756_s5, %s8140_s12 }
 0x130   : > { %p6759_p1 = pnand %p6757_p13, %p7217_p0 }
 0x132   : > { %p6760_p6 = pneg %p6759_p1 }
 0x134   : > { %p6765_p9 = pnand %p6763_p5, %p6760_p6 }
 0x136   : > { %6768 = shalt.err (!%p6765_p9)
}
 0x137   : > { %s6769_s29 = scalar_lea.vmem %s683_s3, 512  ;;  %p6777_p4 = scmp.lt.s32.totalorder %s683_s3, %s683_s3 }
 0x138   : > { %p6770_p10 = scmp.ne.s32.totalorder %s683_s3, %s6769_s29  ;;  %p6778_p7 = scmp.lt.s32.totalorder %s6769_s29, %s6769_s29 }
 0x13a   : > { %p6772_p2 = pnand %p6770_p10, %p7217_p0  ;;  %p6779_p8 = por %p6778_p7, %p6777_p4 }
 0x13c   : > { %p6773_p3 = pneg %p6772_p2 }
 0x13e   : > { %p6780_p11 = pnand %p6779_p8, %p6773_p3 }
 0x140   : > { %6783 = shalt.err (!%p6780_p11)
}
 0x141   : > { %s8215_s11 = smov 8   ;;  %s8216_s4 = smov 128  }
 0x142   : > { %6272 = dma.hbm_to_vmem [thread:$0]  (!%p7201_p12), %s8140_s12, 512, %s683_s3, [#allocation12], %s8216_s4, %s8216_s4, %s8215_s11  }
 0x143   : > { %s7005_s27 = smov [#allocation16]   ;;  %s7006_s5 = smov [#allocation19]  }
 0x144   : > { %s706_s26 = sshll.u32 %s7005_s27, 4  ;;  %s730_s21 = sshll.u32 %s7006_s5, 4  ;;  %s707_s26 = int_to_ptr.vmem [resolvable:$true] %s706_s26  ;;  %s731_s21 = int_to_ptr.vmem [resolvable:$true] %s730_s21 }
 0x145   : > { %s6784_s24 = scalar_lea.hbm %s8142_s14, 512 }
 0x146   : > { %p6785_p13 = scmp.ne.s32.totalorder %s8142_s14, %s6784_s24  ;;  %p6791_p5 = scmp.lt.u32.totalorder %s6784_s24, %s8142_s14 }
 0x148   : > { %p6787_p1 = pnand %p6785_p13, %p7217_p0 }
 0x14a   : > { %p6788_p6 = pneg %p6787_p1 }
 0x14c   : > { %p6793_p9 = pnand %p6791_p5, %p6788_p6 }
 0x14e   : > { %6796 = shalt.err (!%p6793_p9)
}
 0x14f   : > { %s6797_s3 = scalar_lea.vmem %s707_s26, 512  ;;  %p6805_p4 = scmp.lt.s32.totalorder %s707_s26, %s707_s26 }
 0x150   : > { %p6798_p10 = scmp.ne.s32.totalorder %s707_s26, %s6797_s3  ;;  %p6806_p7 = scmp.lt.s32.totalorder %s6797_s3, %s6797_s3 }
 0x152   : > { %p6800_p2 = pnand %p6798_p10, %p7217_p0  ;;  %p6807_p8 = por %p6806_p7, %p6805_p4 }
 0x154   : > { %p6801_p3 = pneg %p6800_p2 }
 0x156   : > { %p6808_p11 = pnand %p6807_p8, %p6801_p3 }
 0x158   : > { %6811 = shalt.err (!%p6808_p11)
}
 0x159   : > { %6278 = dma.hbm_to_vmem [thread:$0]  (!%p7201_p12), %s8142_s14, 512, %s707_s26, [#allocation15], %s8216_s4, %s8216_s4, %s8215_s11  }
 0x15a   : > { %s6812_s5 = scalar_lea.hbm %s8144_s16, 512 }
 0x15b   : > { %p6813_p13 = scmp.ne.s32.totalorder %s8144_s16, %s6812_s5  ;;  %p6819_p5 = scmp.lt.u32.totalorder %s6812_s5, %s8144_s16 }
 0x15d   : > { %p6815_p1 = pnand %p6813_p13, %p7217_p0 }
 0x15f   : > { %p6816_p6 = pneg %p6815_p1 }
 0x161   : > { %p6821_p9 = pnand %p6819_p5, %p6816_p6 }
 0x163   : > { %6824 = shalt.err (!%p6821_p9)
}
 0x164   : > { %s6825_s30 = scalar_lea.vmem %s731_s21, 512  ;;  %p6833_p4 = scmp.lt.s32.totalorder %s731_s21, %s731_s21 }
 0x165   : > { %p6826_p10 = scmp.ne.s32.totalorder %s731_s21, %s6825_s30  ;;  %p6834_p7 = scmp.lt.s32.totalorder %s6825_s30, %s6825_s30 }
 0x167   : > { %p6828_p2 = pnand %p6826_p10, %p7217_p0  ;;  %p6835_p8 = por %p6834_p7, %p6833_p4 }
 0x169   : > { %p6829_p3 = pneg %p6828_p2 }
 0x16b   : > { %p6836_p11 = pnand %p6835_p8, %p6829_p3 }
 0x16d   : > { %6839 = shalt.err (!%p6836_p11)
}
 0x16e   : > { %6284 = dma.hbm_to_vmem [thread:$0]  (!%p7201_p12), %s8144_s16, 512, %s731_s21, [#allocation18], %s8216_s4, %s8216_s4, %s8215_s11  }
 0x16f   : > { %s7007_s9 = smov [#allocation22]   ;;  %s7008_s1 = smov [#allocation25]  }
 0x170   : > { %s755_s0 = sshll.u32 %s7007_s9, 4  ;;  %s776_s27 = sshll.u32 %s7008_s1, 4  ;;  %s756_s0 = int_to_ptr.vmem [resolvable:$true] %s755_s0  ;;  %s777_s27 = int_to_ptr.vmem [resolvable:$true] %s776_s27 }
 0x171   : > { %s6840_s23 = scalar_lea.hbm %s8146_s18, 128 }
 0x172   : > { %p6841_p13 = scmp.ne.s32.totalorder %s8146_s18, %s6840_s23  ;;  %p6847_p5 = scmp.lt.u32.totalorder %s6840_s23, %s8146_s18 }
 0x174   : > { %p6843_p1 = pnand %p6841_p13, %p7217_p0 }
 0x176   : > { %p6844_p6 = pneg %p6843_p1 }
 0x178   : > { %p6849_p9 = pnand %p6847_p5, %p6844_p6 }
 0x17a   : > { %6852 = shalt.err (!%p6849_p9)
}
 0x17b   : > { %s6853_s21 = scalar_lea.vmem %s756_s0, 128  ;;  %p6861_p4 = scmp.lt.s32.totalorder %s756_s0, %s756_s0 }
 0x17c   : > { %p6854_p10 = scmp.ne.s32.totalorder %s756_s0, %s6853_s21  ;;  %p6862_p7 = scmp.lt.s32.totalorder %s6853_s21, %s6853_s21 }
 0x17e   : > { %p6856_p2 = pnand %p6854_p10, %p7217_p0  ;;  %p6863_p8 = por %p6862_p7, %p6861_p4 }
 0x180   : > { %p6857_p3 = pneg %p6856_p2 }
 0x182   : > { %p6864_p11 = pnand %p6863_p8, %p6857_p3 }
 0x184   : > { %6867 = shalt.err (!%p6864_p11)
}
 0x185   : > { %6290 = dma.hbm_to_vmem [thread:$0]  (!%p7201_p12), %s8146_s18, 128, %s756_s0, [#allocation21]  }
 0x186   : > { %s6868_s28 = scalar_lea.hbm %s8148_s20, 512 }
 0x187   : > { %p6869_p13 = scmp.ne.s32.totalorder %s8148_s20, %s6868_s28  ;;  %p6875_p5 = scmp.lt.u32.totalorder %s6868_s28, %s8148_s20 }
 0x189   : > { %p6871_p1 = pnand %p6869_p13, %p7217_p0 }
 0x18b   : > { %p6872_p6 = pneg %p6871_p1 }
 0x18d   : > { %p6877_p9 = pnand %p6875_p5, %p6872_p6 }
 0x18f   : > { %6880 = shalt.err (!%p6877_p9)
}
 0x190   : > { %s6881_s26 = scalar_lea.vmem %s777_s27, 512  ;;  %p6889_p4 = scmp.lt.s32.totalorder %s777_s27, %s777_s27 }
 0x191   : > { %p6882_p10 = scmp.ne.s32.totalorder %s777_s27, %s6881_s26  ;;  %p6890_p7 = scmp.lt.s32.totalorder %s6881_s26, %s6881_s26 }
 0x193   : > { %p6884_p2 = pnand %p6882_p10, %p7217_p0  ;;  %p6891_p8 = por %p6890_p7, %p6889_p4 }
 0x195   : > { %p6885_p3 = pneg %p6884_p2 }
 0x197   : > { %p6892_p11 = pnand %p6891_p8, %p6885_p3 }
 0x199   : > { %6895 = shalt.err (!%p6892_p11)
}
 0x19a   : > { %6296 = dma.hbm_to_vmem [thread:$0]  (!%p7201_p12), %s8148_s20, 512, %s777_s27, [#allocation24], %s8216_s4, %s8216_s4, %s8215_s11  }
 0x19b   : > { %p8217_p13 = scmp.ne.s32.totalorder %s8204_s8, 0 }
 0x19c   : > { %p8218_p0 = scmp.eq.s32.totalorder (!%p8217_p13), %s7165_s6, 0 }
 0x19d   : > { %819 = sbr.rel (%p8217_p13) target bundleno = 7495 (0x1d47), region = 116 }
 0x1a4   : > { %6941 = dma.done.wait (%p8218_p0), [#allocation3], 16   ;;  %p8219_p1 = pmov %p8218_p0 }
 0x1a5   : > { %p8220_p6 = pmov %p8218_p0 }
 0x1a6   : > { %6943 = vsyncadd (%p8219_p1), [#allocation3], 4294967280 }
 0x1a7   : > { %6945 = dma.done.wait (%p8220_p6), [#allocation6], 32   ;;  %p8221_p5 = pmov %p8218_p0 }
 0x1a8   : > { %p8222_p9 = pmov %p8218_p0 }
 0x1a9   : > { %6947 = vsyncadd (%p8221_p5), [#allocation6], 4294967264 }
 0x1aa   : > { %6949 = dma.done.wait (%p8222_p9), [#allocation9], 528   ;;  %p8223_p12 = pmov %p8218_p0 }
 0x1ab   : > { %p8224_p10 = pmov %p8218_p0 }
 0x1ac   : > { %6951 = vsyncadd (%p8223_p12), [#allocation9], 4294966768 }
 0x1ad   : > { %6953 = dma.done.wait (%p8224_p10), [#allocation12], 528   ;;  %p8225_p2 = pmov %p8218_p0 }
 0x1ae   : > { %p8226_p3 = pmov %p8218_p0 }
 0x1af   : > { %6955 = vsyncadd (%p8225_p2), [#allocation12], 4294966768 }
 0x1b0   : > { %6957 = dma.done.wait (%p8226_p3), [#allocation15], 528   ;;  %p8227_p4 = pmov %p8218_p0 }
 0x1b1   : > { %p8228_p7 = pmov %p8218_p0 }
 0x1b2   : > { %6959 = vsyncadd (%p8227_p4), [#allocation15], 4294966768 }
 0x1b3   : > { %6961 = dma.done.wait (%p8228_p7), [#allocation18], 528   ;;  %p8229_p8 = pmov %p8218_p0 }
 0x1b4   : > { %p8230_p11 = pmov %p8218_p0 }
 0x1b5   : > { %6963 = vsyncadd (%p8229_p8), [#allocation18], 4294966768 }
 0x1b6   : > { %6965 = dma.done.wait (%p8230_p11), [#allocation21], 144   ;;  %p8231_p13 = pmov %p8218_p0 }
 0x1b8   : > { %6967 = vsyncadd (%p8231_p13), [#allocation21], 4294967152 }
 0x1b9   : > { %6969 = dma.done.wait (%p8218_p0), [#allocation24], 640   ;;  %p8232_p1 = pmov %p8218_p0 }
 0x1ba   : > { %s5531_s8 = sshll.u32 %s7165_s6, 1  ;;  %s8233_s4 = sld [smem:[#allocation44_spill]]  ;;  %vm997_vm0 = vcmask 261120   ;;  %v7009_v20 = vmov 0.0   ;;  %vm7010_vm1 = vmmov 0   ;;  %vm1241_vm2 = vcmask 64512  }
 0x1bb   : > { %6971 = vsyncadd (%p8232_p1), [#allocation24], 4294966656  ;;  %p947_p6 = scmp.lt.s32.totalorder %s5531_s8, 3  ;;  %s8234_s1 = sld [smem:[#allocation46_spill]]  ;;  %5820 = vmatprep.subr.mxu0 %v7009_v20  ;;  %5822 = vmatprep.mubr.msk.f32.mxu0 %vm7010_vm1, %v7009_v20  ;;  %v5538_v23 = vld [vmem:[#allocation5] ss:$0 sm:$0xff]  ;;  %v963_v36 = vlaneseq }
 0x1bc   : > { %s8235_s21 = sld [smem:[#allocation48_spill]]  ;;  %s8236_s24 = sld [smem:[#allocation50_spill]]  ;;  %v5535_v27 = vld [vmem:[#allocation2] ss:$0 sm:$0xff]  ;;  %v5541_v31 = vld [vmem:[#allocation7] ss:$0 sm:$0xff] }
 0x1bd   : > { %s8253_s8 = smov (!%p947_p6, %s5531_s8), 3  ;;  %s7011_s11 = smov 120   ;;  %v964_v37 = vshrl.u32 %v963_v36, 7  ;;  %v966_v38 = vand.u32 127, %v963_v36  ;;  %v7012_v44 = vmov -1e+30  }
 0x1be   : > { %s5532_s7 = sshll.u32 %s8253_s8, 3  ;;  %s7014_s3 = smov 104  }
 0x1bf   : > { %vm967_vm3 = vcmp.ge.s32.totalorder %v964_v37, %v966_v38  ;;  %s8237_s29 = sld [smem:[#allocation45_spill]]  ;;  %s8238_s5 = sld [smem:[#allocation55_spill]] }
 0x1c0   : > { %s950_s27 = scalar_lea.vmem %s8233_s4, %s5532_s7  ;;  %v7641_v45 = vsel %vm967_vm3, 0.0, %v7012_v44  ;;  %s7013_s4 = smov 112  }
 0x1c1   : > { %v971_v0 = vld [vmem:[%s8234_s1] sm:$0xff]  ;;  %v972_v1 = vld [vmem:[%s8234_s1 + $0x8] sm:$0xff]  ;;  %v973_v2 = vld [vmem:[%s8234_s1 + $0x10] sm:$0xff]  ;;  %s5628_s0 = sshll.u32 %s7165_s6, 8  ;;  %s8241_s2 = sld [smem:[#allocation42_spill]] }
 0x1c2   : > { %v6089_v3 = vpack.c.bf16 %v972_v1, %v971_v0  ;;  %v974_v4 = vld [vmem:[%s8234_s1 + $0x18] sm:$0xff]  ;;  %v7561_v5 = vld [vmem:[%s950_s27] sm:$0xff]  ;;  %v977_v8 = vld [vmem:[%s8235_s21 + $0x8] sm:$0xff]  ;;  %s7016_s28 = smov [#allocation26]  }
 0x1c3   : > { %v6093_v6 = vpack.c.bf16 %v974_v4, %v973_v2  ;;  %5785 = vmatprep.mubr.msk.f32.mxu1 %vm997_vm0, %v7561_v5  ;;  %v976_v7 = vld [vmem:[%s8235_s21] sm:$0xff]  ;;  %v978_v10 = vld [vmem:[%s8235_s21 + $0x10] sm:$0xff]  ;;  %v979_v11 = vld [vmem:[%s8235_s21 + $0x18] sm:$0xff]  ;;  %s6900_s23 = sshll.u32 %s7016_s28, 4  ;;  %s6901_s23 = int_to_ptr.vmem [resolvable:$false] %s6900_s23 }
 0x1c4   : > { %6090 = vmatprep.subr.bf16.mxu1 %v6089_v3  ;;  %v6097_v9 = vpack.c.bf16 %v977_v8, %v976_v7  ;;  %v7577_v12 = vld [vmem:[%s950_s27 + $0x8] sm:$0xff]  ;;  %v6101_v13 = vpack.c.bf16 %v979_v11, %v978_v10  ;;  %v981_v14 = vld [vmem:[%s8236_s24] sm:$0xff]  ;;  %v983_v17 = vld [vmem:[%s8236_s24 + $0x10] sm:$0xff] }
 0x1c5   : > { %6092 = vmatpush3.bf16.msra.mxu1 %v6089_v3  ;;  %v982_v15 = vld [vmem:[%s8236_s24 + $0x8] sm:$0xff]  ;;  %v984_v18 = vld [vmem:[%s8236_s24 + $0x18] sm:$0xff]  ;;  %s956_s30 = scalar_lea.vmem %s8237_s29, %s5532_s7  ;;  %s8239_s29 = sld [smem:[#allocation56_spill]] }
 0x1c6   : > { %6094 = vmatprep.subr.bf16.mxu1 %v6093_v6  ;;  %v6105_v16 = vpack.c.bf16 %v982_v15, %v981_v14  ;;  %v6109_v19 = vpack.c.bf16 %v984_v18, %v983_v17 }
 0x1c7   : > { %p8243_p9 = scmp.ne.s32.totalorder %s8241_s2, 0 }
 0x1c9   : > { %6096 = vmatpush3.bf16.msra.mxu1 %v6093_v6 }
 0x1ca   : > { %6098 = vmatprep.subr.bf16.mxu1 %v6097_v9 }
 0x1cc   : > { %5786 = vmatmul.mubr.msk.f32.vlgmr.msra.gmra.mrb[0].mxu1 %vm997_vm0, %v7577_v12 }
 0x1cd   : > { %6100 = vmatpush3.bf16.msra.mxu1 %v6097_v9  ;;  %5796 = vmatprep.mubr.msk.f32.mxu1 %vm997_vm0, %v7561_v5 }
 0x1ce   : > { %6102 = vmatprep.subr.bf16.mxu1 %v6101_v13 }
 0x1d1   : > { %6104 = vmatpush3.bf16.msra.mxu1 %v6101_v13 }
 0x1d2   : > { %6106 = vmatprep.subr.bf16.mxu1 %v6105_v16 }
 0x1d4   : > { %5797 = vmatmul.mubr.msk.f32.vlgmr.msra.gmra.mrb[2].mxu1 %vm997_vm0, %v7577_v12 }
 0x1d5   : > { %6108 = vmatpush3.bf16.msra.mxu1 %v6105_v16  ;;  %5807 = vmatprep.mubr.msk.f32.mxu1 %vm997_vm0, %v7561_v5 }
 0x1d6   : > { %6110 = vmatprep.subr.bf16.mxu1 %v6109_v19 }
 0x1d9   : > { %6112 = vmatpush3.bf16.msra.mxu1 %v6109_v19 }
 0x1da   : > { %5810 = vmatprep.subr.mxu1 %v7009_v20 }
 0x1dc   : > { %5808 = vmatmul.mubr.msk.f32.vlgmr.msra.gmra.mrb[4].mxu1 %vm997_vm0, %v7577_v12 }
 0x1dd   : > { %5812 = vmatprep.mubr.msk.f32.mxu1 %vm7010_vm1, %v7009_v20 }
 0x29f   : > { %v5787_v21 = vpop.f32.mrb[0].mxu1 }
 0x2a0   : > { %v1070_v22 = vpop.f32.mrb[1].mxu1  ;;  %v7615_v29 = vadd.f32 %v5787_v21, %v5535_v27 }
 0x2a1   : > { %v7617_v30 = vadd.f32 %v5535_v27, %v1070_v22 }
 0x2a7   : > { %v5798_v24 = vpop.f32.mrb[2].mxu1 }
 0x2a8   : > { %v7607_v25 = vadd.f32 %v5798_v24, %v5538_v23  ;;  %v1151_v26 = vpop.f32.mrb[3].mxu1 }
 0x2a9   : > { %v7609_v28 = vadd.f32 %v5538_v23, %v1151_v26 }
 0x2aa   : > { %1646 = vrot.lane.b32.xlu1 %v7607_v25, %s7011_s11 }
 0x2ab   : > { %5811 = vmatpush3.xpose.msk.msra.mxu1 %vm1241_vm2, %v7609_v28 }
 0x2ac   : > { %5815 = vmatprep.subr.mxu1 %v7009_v20 }
 0x2ae   : > { %1644 = vrot.lane.b32.xlu1 %v7615_v29, %s7011_s11  ;;  %5813 = vmatmul.mubr.msk.f32.vlgmr.msra.gmra.mrb[6].mxu1 %vm1241_vm2, %v7617_v30 }
 0x2af   : > { %5816 = vmatpush3.xpose.msk.msra.mxu1 %vm1241_vm2, %v7607_v25  ;;  %5817 = vmatprep.mubr.msk.f32.mxu1 %vm7010_vm1, %v7009_v20  ;;  %v5809_v32 = vpop.f32.mrb[4].mxu1 }
 0x2b0   : > { %5825 = vmatprep.subr.mxu1 %v7009_v20  ;;  %v7633_v33 = vadd.f32 %v5809_v32, %v5541_v31  ;;  %v1232_v34 = vpop.f32.mrb[5].mxu1 }
 0x2b1   : > { %v7635_v35 = vadd.f32 %v5541_v31, %v1232_v34 }
 0x2b2   : > { %5818 = vmatmul.mubr.msk.f32.vlgmr.msra.gmra.mrb[8].mxu1 %vm1241_vm2, %v7615_v29 }
 0x2b3   : > { %5827 = vmatprep.mubr.msk.f32.mxu1 %vm7010_vm1, %v7009_v20  ;;  %5826 = vmatpush3.msra.mxu1 %v7633_v33 }
 0x2b4   : > { %5821 = vmatpush3.msra.mxu0 %v7635_v35  ;;  %5835 = vmatprep.subr.mxu1 %v7009_v20 }
 0x2b5   : > { %5830 = vmatprep.subr.mxu0 %v7009_v20 }
 0x31c   : > { %v1647_v61 = vpop.permute.xlu1 %1646 }
 0x320   : > { %v1645_v63 = vpop.permute.xlu1 %1644 }
 0x381   : > { %v1314_v39 = vpop.f32.mrb[6].mxu1 }
 0x382   : > { %v5814_v40 = vpop.f32.mrb[7].mxu1  ;;  %v1394_v51 = vmul.f32 0.35355338, %v1314_v39 }
 0x384   : > { %v1396_v54 = vadd.f32 %v1394_v51, %v7641_v45 }
 0x385   : > { %v1390_v41 = vpop.f32.mrb[8].mxu1 }
 0x386   : > { %v1395_v42 = vmul.f32 0.35355338, %v1390_v41  ;;  %v5819_v43 = vpop.f32.mrb[9].mxu1  ;;  %v1398_v55 = vsel %vm1241_vm2, %v1396_v54, -inf }
 0x388   : > { %v1397_v46 = vadd.f32 %v1395_v42, %v7641_v45 }
 0x38a   : > { %v1401_v47 = vsel %vm1241_vm2, %v1397_v46, -inf }
 0x38b   : > { %1402 = vmax.xlane.f32.xlu0 %v1401_v47 }
 0x418   : > { %v1403_v48 = vpop.xlane.xlu0 %1402 }
 0x419   : > { %v1405_v49 = vsub.f32 %v1397_v46, %v1403_v48 }
 0x41b   : > { %v1408_v50 = vmul.f32 1.442695, %v1405_v49 }
 0x41d   : > { %6390 = vpow2.f32 %v1408_v50 }
 0x427   : > { %v6391_v52 = vpop.eup %6390 }
 0x428   : > { %v1413_v53 = vsel %vm1241_vm2, %v6391_v52, 0.0 }
 0x429   : > { %1414 = vadd.xlane.f32.xlu0 %v1413_v53 }
 0x42d   : > { %1399 = vmax.xlane.f32.xlu0 %v1398_v55 }
 0x443   : > { %1568 = vrot.lane.b32.xlu0 %v7609_v28, %s7011_s11 }
 0x447   : > { %1566 = vrot.lane.b32.xlu0 %v7617_v30, %s7011_s11 }
 0x4b6   : > { %v1415_v56 = vpop.xlane.xlu0 %1414 }
 0x4b7   : > { %6392 = vrcp.f32 %v1415_v56 }
 0x4ba   : > { %v1400_v57 = vpop.xlane.xlu0 %1399 }
 0x4bb   : > { %v1404_v58 = vsub.f32 %v1396_v54, %v1400_v57 }
 0x4bd   : > { %v1406_v59 = vmul.f32 1.442695, %v1404_v58 }
 0x4be   : > { %v1569_v6 = vpop.permute.xlu0 %1568 }
 0x4bf   : > { %6394 = vpow2.f32 %v1406_v59 }
 0x4c1   : > { %v6393_v60 = vpop.eup %6392 }
 0x4c2   : > { %v1419_v62 = vmul.f32 %v6393_v60, %v6391_v52  ;;  %v1567_v8 = vpop.permute.xlu0 %1566 }
 0x4c4   : > { %5828 = vmatmul.mubr.msk.f32.vlgmr.msra.gmra.mrb[10].mxu1 %vm1241_vm2, %v1419_v62 }
 0x4c5   : > { %5836 = vmatpush3.xpose.msk.msra.mxu1 %vm1241_vm2, %v1647_v61  ;;  %5837 = vmatprep.mubr.msk.f32.mxu1 %vm7010_vm1, %v7009_v20 }
 0x4c6   : > { %5845 = vmatprep.subr.mxu1 %v7009_v20 }
 0x4c8   : > { %5838 = vmatmul.mubr.msk.f32.vlgmr.msra.gmra.mrb[12].mxu1 %vm1241_vm2, %v1645_v63 }
 0x4c9   : > { %v6395_v0 = vpop.eup %6394  ;;  %5847 = vmatprep.mubr.msk.f32.mxu1 %vm7010_vm1, %v7009_v20 }
 0x4ca   : > { %v1410_v1 = vsel %vm1241_vm2, %v6395_v0, 0.0 }
 0x4cb   : > { %1411 = vadd.xlane.f32.xlu1 %v1410_v1  ;;  %v987_v1 = vld [vmem:[#allocation8 + $0x8] sm:$0xff] }
 0x4dc   : > { %1826 = vrot.lane.b32.xlu1 %v7633_v33, %s7011_s11 }
 0x4e0   : > { %2066 = vrot.lane.b32.xlu1 %v7609_v28, %s7013_s4 }
 0x4e4   : > { %2144 = vrot.lane.b32.xlu1 %v7607_v25, %s7013_s4 }
 0x558   : > { %v1412_v2 = vpop.xlane.xlu1 %1411 }
 0x559   : > { %6396 = vrcp.f32 %v1412_v2  ;;  %v986_v2 = vld [vmem:[#allocation8] sm:$0xff] }
 0x55c   : > { %v1827_v3 = vpop.permute.xlu1 %1826 }
 0x55d   : > { %5846 = vmatpush3.msra.mxu1 %v1827_v3 }
 0x55e   : > { %5860 = vmatprep.subr.mxu1 %v7009_v20 }
 0x560   : > { %v2067_v36 = vpop.permute.xlu1 %2066 }
 0x563   : > { %v6397_v4 = vpop.eup %6396 }
 0x564   : > { %v1417_v7 = vmul.f32 %v6397_v4, %v6395_v0  ;;  %v2145_v37 = vpop.permute.xlu1 %2144 }
 0x566   : > { %5823 = vmatmul.mubr.msk.f32.vlgmr.msra.gmra.mrb[0].mxu0 %vm1241_vm2, %v1417_v7 }
 0x567   : > { %5831 = vmatpush3.xpose.msk.msra.mxu0 %vm1241_vm2, %v1569_v6  ;;  %5832 = vmatprep.mubr.msk.f32.mxu0 %vm7010_vm1, %v7009_v20 }
 0x568   : > { %5840 = vmatprep.subr.mxu0 %v7009_v20 }
 0x56a   : > { %5833 = vmatmul.mubr.msk.f32.vlgmr.msra.gmra.mrb[2].mxu0 %vm1241_vm2, %v1567_v8 }
 0x56b   : > { %5842 = vmatprep.mubr.msk.f32.mxu0 %vm7010_vm1, %v7009_v20 }
 0x597   : > { %v7676_v9 = vpop.f32.mrb[10].mxu1 }
 0x598   : > { %v5829_v10 = vpop.f32.mrb[11].mxu1 }
 0x59b   : > { %v1718_v11 = vpop.f32.mrb[12].mxu1 }
 0x59c   : > { %v1723_v13 = vmul.f32 0.35355338, %v1718_v11  ;;  %v5839_v14 = vpop.f32.mrb[13].mxu1 }
 0x59e   : > { %v1725_v15 = vadd.f32 %v1723_v13, %v7641_v45 }
 0x5a0   : > { %v1729_v16 = vsel %vm1241_vm2, %v1725_v15, -inf }
 0x5a1   : > { %1730 = vmax.xlane.f32.xlu0 %v1729_v16 }
 0x5b7   : > { %2064 = vrot.lane.b32.xlu0 %v7617_v30, %s7013_s4 }
 0x62e   : > { %v1731_v17 = vpop.xlane.xlu0 %1730 }
 0x62f   : > { %v1733_v18 = vsub.f32 %v1725_v15, %v1731_v17 }
 0x631   : > { %v1736_v19 = vmul.f32 1.442695, %v1733_v18 }
 0x632   : > { %v2065_v41 = vpop.permute.xlu0 %2064 }
 0x633   : > { %6398 = vpow2.f32 %v1736_v19 }
 0x639   : > { %v7682_v21 = vpop.f32.mrb[0].mxu0 }
 0x63a   : > { %v5824_v22 = vpop.f32.mrb[1].mxu0 }
 0x63d   : > { %v6399_v23 = vpop.eup %6398  ;;  %v1640_v24 = vpop.f32.mrb[2].mxu0 }
 0x63e   : > { %v5834_v26 = vpop.f32.mrb[3].mxu0  ;;  %v1741_v27 = vsel %vm1241_vm2, %v6399_v23, 0.0  ;;  %v1722_v31 = vmul.f32 0.35355338, %v1640_v24 }
 0x63f   : > { %1742 = vadd.xlane.f32.xlu1 %v1741_v27 }
 0x640   : > { %v1724_v32 = vadd.f32 %v1722_v31, %v7641_v45 }
 0x642   : > { %v1726_v34 = vsel %vm1241_vm2, %v1724_v32, -inf }
 0x650   : > { %2142 = vrot.lane.b32.xlu1 %v7615_v29, %s7013_s4 }
 0x674   : > { %1727 = vmax.xlane.f32.xlu1 %v1726_v34 }
 0x685   : > { %1749 = vrot.lane.b32.xlu1 %v7635_v35, %s7011_s11 }
 0x6cc   : > { %v1743_v38 = vpop.xlane.xlu1 %1742 }
 0x6cd   : > { %6400 = vrcp.f32 %v1743_v38 }
 0x6d0   : > { %v2143_v42 = vpop.permute.xlu1 %2142 }
 0x6d7   : > { %v6401_v39 = vpop.eup %6400 }
 0x6d8   : > { %v1747_v40 = vmul.f32 %v6401_v39, %v6399_v23 }
 0x6da   : > { %5848 = vmatmul.mubr.msk.f32.vlgmr.msra.gmra.mrb[14].mxu1 %vm1241_vm2, %v1747_v40 }
 0x6db   : > { %5861 = vmatpush3.xpose.msk.msra.mxu1 %vm1241_vm2, %v2067_v36  ;;  %5862 = vmatprep.mubr.msk.f32.mxu1 %vm7010_vm1, %v7009_v20 }
 0x6dc   : > { %5865 = vmatprep.subr.mxu1 %v7009_v20 }
 0x6de   : > { %5863 = vmatmul.mubr.msk.f32.vlgmr.msra.gmra.mrb[16].mxu1 %vm1241_vm2, %v2065_v41 }
 0x6df   : > { %5866 = vmatpush3.xpose.msk.msra.mxu1 %vm1241_vm2, %v2145_v37  ;;  %5867 = vmatprep.mubr.msk.f32.mxu1 %vm7010_vm1, %v7009_v20 }
 0x6e0   : > { %5875 = vmatprep.subr.mxu1 %v7009_v20 }
 0x6e2   : > { %5868 = vmatmul.mubr.msk.f32.vlgmr.msra.gmra.mrb[18].mxu1 %vm1241_vm2, %v2143_v42 }
 0x6e3   : > { %5877 = vmatprep.mubr.msk.f32.mxu1 %vm7010_vm1, %v7009_v20 }
 0x701   : > { %v1728_v43 = vpop.xlane.xlu1 %1727 }
 0x702   : > { %v1732_v44 = vsub.f32 %v1724_v32, %v1728_v43 }
 0x704   : > { %v1734_v46 = vmul.f32 1.442695, %v1732_v44 }
 0x705   : > { %v1750_v47 = vpop.permute.xlu1 %1749 }
 0x706   : > { %6402 = vpow2.f32 %v1734_v46  ;;  %5841 = vmatpush3.msra.mxu0 %v1750_v47 }
 0x707   : > { %5850 = vmatprep.subr.mxu0 %v987_v1 }
 0x710   : > { %v6403_v48 = vpop.eup %6402 }
 0x711   : > { %v1738_v49 = vsel %vm1241_vm2, %v6403_v48, 0.0 }
 0x712   : > { %1739 = vadd.xlane.f32.xlu0 %v1738_v49 }
 0x79f   : > { %v1740_v50 = vpop.xlane.xlu0 %1739 }
 0x7a0   : > { %6404 = vrcp.f32 %v1740_v50 }
 0x7aa   : > { %v6405_v51 = vpop.eup %6404 }
 0x7ab   : > { %v1745_v52 = vmul.f32 %v6405_v51, %v6403_v48 }
 0x7ad   : > { %5843 = vmatmul.mubr.msk.f32.vlgmr.msra.gmra.mrb[4].mxu0 %vm1241_vm2, %v1745_v52  ;;  %v1898_v53 = vpop.f32.mrb[14].mxu1 }
 0x7ae   : > { %v5849_v54 = vpop.f32.mrb[15].mxu1  ;;  %5851 = vmatpush3.msra.mxu0 %v987_v1 }
 0x7af   : > { %5855 = vmatprep.subr.mxu0 %v986_v2 }
 0x7b1   : > { %v2138_v55 = vpop.f32.mrb[16].mxu1 }
 0x7b2   : > { %v2220_v56 = vmul.f32 0.35355338, %v2138_v55  ;;  %v5864_v57 = vpop.f32.mrb[17].mxu1 }
 0x7b4   : > { %v2222_v58 = vadd.f32 %v2220_v56, %v7641_v45 }
 0x7b5   : > { %v2216_v59 = vpop.f32.mrb[18].mxu1 }
 0x7b6   : > { %v2221_v60 = vmul.f32 0.35355338, %v2216_v59  ;;  %v5869_v61 = vpop.f32.mrb[19].mxu1  ;;  %v2224_v62 = vsel %vm1241_vm2, %v2222_v58, -inf }
 0x7b7   : > { %2225 = vmax.xlane.f32.xlu0 %v2224_v62 }
 0x7b8   : > { %v2223_v63 = vadd.f32 %v2221_v60, %v7641_v45 }
 0x7ba   : > { %v2227_v0 = vsel %vm1241_vm2, %v2223_v63, -inf }
 0x7bb   : > { %2228 = vmax.xlane.f32.xlu0 %v2227_v0  ;;  %v989_v0 = vld [vmem:[#allocation8 + $0x18] sm:$0xff] }
 0x844   : > { %v2226_v3 = vpop.xlane.xlu0 %2225 }
 0x845   : > { %v2230_v4 = vsub.f32 %v2222_v58, %v2226_v3 }
 0x847   : > { %v2232_v6 = vmul.f32 1.442695, %v2230_v4  ;;  %v5576_v4 = vld [vmem:[#allocation10] ss:$0 sm:$0xff] }
 0x848   : > { %v2229_v7 = vpop.xlane.xlu0 %2228 }
 0x849   : > { %6406 = vpow2.f32 %v2232_v6  ;;  %v2231_v8 = vsub.f32 %v2223_v63, %v2229_v7 }
 0x84b   : > { %v2234_v10 = vmul.f32 1.442695, %v2231_v8 }
 0x84d   : > { %6408 = vpow2.f32 %v2234_v10 }
 0x853   : > { %v6407_v11 = vpop.eup %6406 }
 0x854   : > { %v2236_v13 = vsel %vm1241_vm2, %v6407_v11, 0.0 }
 0x855   : > { %2237 = vadd.xlane.f32.xlu0 %v2236_v13 }
 0x857   : > { %v6409_v14 = vpop.eup %6408 }
 0x858   : > { %v2239_v15 = vsel %vm1241_vm2, %v6409_v14, 0.0 }
 0x859   : > { %2240 = vadd.xlane.f32.xlu1 %v2239_v15 }
 0x86a   : > { %2481 = vrot.lane.b32.xlu1 %v7617_v30, %s7014_s3 }
 0x86b   : > { %2246 = vrot.lane.b32.xlu0 %v7635_v35, %s7013_s4 }
 0x86f   : > { %2322 = vrot.lane.b32.xlu0 %v7633_v33, %s7013_s4 }
 0x873   : > { %2483 = vrot.lane.b32.xlu0 %v7609_v28, %s7014_s3  ;;  %v988_v28 = vld [vmem:[#allocation8 + $0x10] sm:$0xff] }
 0x877   : > { %2561 = vrot.lane.b32.xlu0 %v7607_v25, %s7014_s3 }
 0x87b   : > { %2559 = vrot.lane.b32.xlu0 %v7615_v29, %s7014_s3 }
 0x880   : > { %v1821_v16 = vpop.f32.mrb[4].mxu0 }
 0x881   : > { %v5844_v17 = vpop.f32.mrb[5].mxu0  ;;  %5852 = vmatprep.mubr.msk.f32.mxu0 %vm1241_vm2, %v1821_v16 }
 0x882   : > { %5853 = vmatmul.mubr.msk.f32.vlgmr.msra.gmra.mrb[6].mxu0 %vm1241_vm2, %v1898_v53 }
 0x883   : > { %5857 = vmatprep.mubr.msk.f32.mxu0 %vm1241_vm2, %v7682_v21  ;;  %5856 = vmatpush3.msra.mxu0 %v986_v2 }
 0x884   : > { %5870 = vmatprep.subr.mxu0 %v7009_v20 }
 0x88a   : > { %5858 = vmatmul.mubr.msk.f32.vlgmr.msra.gmra.mrb[6].mxu0 %vm1241_vm2, %v7676_v9 }
 0x88b   : > { %5872 = vmatprep.mubr.msk.f32.mxu0 %vm7010_vm1, %v7009_v20 }
 0x8e2   : > { %v2238_v25 = vpop.xlane.xlu0 %2237 }
 0x8e3   : > { %6410 = vrcp.f32 %v2238_v25  ;;  %v2971_v25 = vld [vmem:[#allocation13] sm:$0xff] }
 0x8e6   : > { %v2241_v29 = vpop.xlane.xlu1 %2240  ;;  %v2247_v30 = vpop.permute.xlu0 %2246 }
 0x8e7   : > { %6412 = vrcp.f32 %v2241_v29  ;;  %5871 = vmatpush3.msra.mxu0 %v2247_v30  ;;  %v2966_v29 = vld [vmem:[%s8138_s10] sm:$0xff] }
 0x8e8   : > { %5880 = vmatprep.subr.mxu0 %v988_v28 }
 0x8ea   : > { %v2323_v18 = vpop.permute.xlu0 %2322  ;;  %v2482_v24 = vpop.permute.xlu1 %2481 }
 0x8eb   : > { %5876 = vmatpush3.msra.mxu1 %v2323_v18  ;;  %v2967_v18 = vld [vmem:[%s8138_s10 + $0x8] sm:$0xff] }
 0x8ec   : > { %5885 = vmatprep.subr.mxu1 %v7009_v20 }
 0x8ed   : > { %v6411_v19 = vpop.eup %6410 }
 0x8ee   : > { %v2243_v21 = vmul.f32 %v6411_v19, %v6407_v11  ;;  %v2484_v23 = vpop.permute.xlu0 %2483  ;;  %v2973_v19 = vld [vmem:[#allocation13 + $0x10] sm:$0xff] }
 0x8f0   : > { %5873 = vmatmul.mubr.msk.f32.vlgmr.msra.gmra.mrb[8].mxu0 %vm1241_vm2, %v2243_v21  ;;  %v2974_v21 = vld [vmem:[#allocation13 + $0x18] sm:$0xff] }
 0x8f1   : > { %v6413_v9 = vpop.eup %6412  ;;  %5881 = vmatpush3.msra.mxu0 %v988_v28  ;;  %v2972_v28 = vld [vmem:[#allocation13 + $0x8] sm:$0xff] }
 0x8f2   : > { %v2245_v22 = vmul.f32 %v6413_v9, %v6409_v14  ;;  %5890 = vmatprep.subr.mxu0 %v7009_v20  ;;  %v2562_v31 = vpop.permute.xlu0 %2561  ;;  %v6121_v30 = vpack.c.bf16 %v2972_v28, %v2971_v25  ;;  %v6113_v9 = vpack.c.bf16 %v2967_v18, %v2966_v29  ;;  %v2978_v18 = vld [vmem:[#allocation16 + $0x10] sm:$0xff] }
 0x8f4   : > { %5878 = vmatmul.mubr.msk.f32.vlgmr.msra.gmra.mrb[20].mxu1 %vm1241_vm2, %v2245_v22  ;;  %v6125_v22 = vpack.c.bf16 %v2974_v21, %v2973_v19  ;;  %v2979_v19 = vld [vmem:[#allocation16 + $0x18] sm:$0xff] }
 0x8f5   : > { %5886 = vmatpush3.xpose.msk.msra.mxu1 %vm1241_vm2, %v2484_v23  ;;  %5887 = vmatprep.mubr.msk.f32.mxu1 %vm7010_vm1, %v7009_v20  ;;  %v7794_v23 = vld [vmem:[%s956_s30] sm:$0xff] }
 0x8f6   : > { %5895 = vmatprep.subr.mxu1 %v7009_v20  ;;  %v2560_v36 = vpop.permute.xlu0 %2559 }
 0x8f8   : > { %5888 = vmatmul.mubr.msk.f32.vlgmr.msra.gmra.mrb[22].mxu1 %vm1241_vm2, %v2482_v24  ;;  %v2968_v24 = vld [vmem:[%s8138_s10 + $0x10] sm:$0xff] }
 0x8f9   : > { %5897 = vmatprep.mubr.msk.f32.mxu1 %vm7010_vm1, %v7009_v20 }
 0x9c3   : > { %v2318_v26 = vpop.f32.mrb[8].mxu0 }
 0x9c4   : > { %v5874_v27 = vpop.f32.mrb[9].mxu0  ;;  %5882 = vmatprep.mubr.msk.f32.mxu0 %vm1241_vm2, %v2318_v26  ;;  %v2969_v26 = vld [vmem:[%s8138_s10 + $0x18] sm:$0xff] }
 0x9c5   : > { %v6117_v27 = vpack.c.bf16 %v2969_v26, %v2968_v24 }
 0x9c7   : > { %v2394_v32 = vpop.f32.mrb[20].mxu1 }
 0x9c8   : > { %v5879_v34 = vpop.f32.mrb[21].mxu1  ;;  %5883 = vmatmul.mubr.msk.f32.vlgmr.msra.gmra.mrb[6].mxu0 %vm1241_vm2, %v2394_v32  ;;  %v2976_v32 = vld [vmem:[#allocation16] sm:$0xff] }
 0x9c9   : > { %5891 = vmatpush3.xpose.msk.msra.mxu0 %vm1241_vm2, %v2562_v31  ;;  %5892 = vmatprep.mubr.msk.f32.mxu0 %vm7010_vm1, %v7009_v20  ;;  %v7804_v31 = vld [vmem:[%s956_s30 + $0x8] sm:$0xff]  ;;  %v2977_v34 = vld [vmem:[#allocation16 + $0x8] sm:$0xff]  ;;  %s8240_s30 = sld [smem:[#allocation37_spill]] }
 0x9ca   : > { %5900 = vmatprep.subr.mxu0 %v7009_v20 }
 0x9cb   : > { %v2555_v37 = vpop.f32.mrb[22].mxu1 }
 0x9cc   : > { %v2637_v38 = vmul.f32 0.35355338, %v2555_v37  ;;  %v5889_v39 = vpop.f32.mrb[23].mxu1  ;;  %5893 = vmatmul.mubr.msk.f32.vlgmr.msra.gmra.mrb[10].mxu0 %vm1241_vm2, %v2560_v36  ;;  %v6129_v36 = vpack.c.bf16 %v2977_v34, %v2976_v32 }
 0x9cd   : > { %5902 = vmatprep.mubr.msk.f32.mxu0 %vm7010_vm1, %v7009_v20 }
 0x9ce   : > { %v2639_v40 = vadd.f32 %v2637_v38, %v7641_v45 }
 0x9cf   : > { %s943_s27 = sand.u32 1, %s8240_s30  }
 0x9d0   : > { %v2641_v41 = vsel %vm1241_vm2, %v2639_v40, -inf  ;;  %s5530_s26 = sshll.u32 %s943_s27, 4  ;;  %s8087_s6 = scalar_lea.sflag [#allocation4], %s943_s27 }
 0x9d1   : > { %2642 = vmax.xlane.f32.xlu0 %v2641_v41  ;;  %s945_s8 = scalar_lea.vmem [#allocation26], %s5530_s26 }
 0x9d2   : > { %s5277_s7 = sshll.u32 %s945_s8, 4  ;;  %s8083_s7 = int_to_ptr.vmem [resolvable:$true] %s5277_s7 }
 0x9d3   : > { %p6903_p2 = scmp.lt.s32.totalorder %s8083_s7, %s6901_s23 }
 0xa5e   : > { %v2643_v42 = vpop.xlane.xlu0 %2642 }
 0xa5f   : > { %v2647_v43 = vsub.f32 %v2639_v40, %v2643_v42 }
 0xa61   : > { %v2649_v44 = vmul.f32 1.442695, %v2647_v43 }
 0xa63   : > { %6414 = vpow2.f32 %v2649_v44 }
 0xa6d   : > { %v6415_v46 = vpop.eup %6414 }
 0xa6e   : > { %v2653_v47 = vsel %vm1241_vm2, %v6415_v46, 0.0 }
 0xa6f   : > { %2654 = vadd.xlane.f32.xlu0 %v2653_v47 }
 0xa9f   : > { %v2633_v48 = vpop.f32.mrb[10].mxu0 }
 0xaa0   : > { %v2638_v49 = vmul.f32 0.35355338, %v2633_v48  ;;  %v5894_v50 = vpop.f32.mrb[11].mxu0 }
 0xaa2   : > { %v2640_v51 = vadd.f32 %v2638_v49, %v7641_v45 }
 0xaa4   : > { %v2644_v52 = vsel %vm1241_vm2, %v2640_v51, -inf }
 0xaa5   : > { %2645 = vmax.xlane.f32.xlu1 %v2644_v52 }
 0xab6   : > { %2739 = vrot.lane.b32.xlu1 %v7633_v33, %s7014_s3 }
 0xafc   : > { %v2655_v45 = vpop.xlane.xlu0 %2654 }
 0xb32   : > { %v2646_v53 = vpop.xlane.xlu1 %2645 }
 0xb33   : > { %v2648_v54 = vsub.f32 %v2640_v51, %v2646_v53 }
 0xb35   : > { %v2651_v55 = vmul.f32 1.442695, %v2648_v54 }
 0xb36   : > { %v2740_v56 = vpop.permute.xlu1 %2739 }
 0xb37   : > { %6416 = vpow2.f32 %v2651_v55  ;;  %5901 = vmatpush3.msra.mxu0 %v2740_v56 }
 0xb38   : > { %6418 = vrcp.f32 %v2655_v45  ;;  %5905 = vmatprep.subr.mxu0 %v989_v0 }
 0xb41   : > { %v6417_v57 = vpop.eup %6416 }
 0xb42   : > { %v2656_v58 = vsel %vm1241_vm2, %v6417_v57, 0.0  ;;  %v6419_v60 = vpop.eup %6418 }
 0xb43   : > { %2657 = vadd.xlane.f32.xlu0 %v2656_v58  ;;  %v2660_v61 = vmul.f32 %v6419_v60, %v6415_v46 }
 0xb59   : > { %2663 = vrot.lane.b32.xlu0 %v7635_v35, %s7014_s3 }
 0xbd0   : > { %v2658_v59 = vpop.xlane.xlu0 %2657 }
 0xbd1   : > { %6420 = vrcp.f32 %v2658_v59 }
 0xbd4   : > { %v2664_v33 = vpop.permute.xlu0 %2663 }
 0xbd5   : > { %5896 = vmatpush3.msra.mxu1 %v2664_v33 }
 0xbd6   : > { %5898 = vmatmul.mubr.msk.f32.vlgmr.msra.gmra.mrb[24].mxu1 %vm1241_vm2, %v2660_v61  ;;  %6114 = vmatprep.subr.bf16.mxu1 %v6113_v9 }
 0xbd7   : > { %6116 = vmatpush3.bf16.msra.mxu1 %v6113_v9  ;;  %v6133_v9 = vpack.c.bf16 %v2979_v19, %v2978_v18 }
 0xbd8   : > { %6118 = vmatprep.subr.bf16.mxu1 %v6117_v27 }
 0xbdb   : > { %v6421_v62 = vpop.eup %6420  ;;  %6120 = vmatpush3.bf16.msra.mxu1 %v6117_v27 }
 0xbdc   : > { %v2662_v63 = vmul.f32 %v6421_v62, %v6417_v57  ;;  %6130 = vmatprep.subr.bf16.mxu1 %v6129_v36 }
 0xbde   : > { %5903 = vmatmul.mubr.msk.f32.vlgmr.msra.gmra.mrb[12].mxu0 %vm1241_vm2, %v2662_v63 }
 0xbdf   : > { %5906 = vmatpush3.msra.mxu0 %v989_v0 }
 0xbe0   : > { %6122 = vmatprep.subr.bf16.mxu0 %v6121_v30 }
 0xca9   : > { %v2735_v1 = vpop.f32.mrb[24].mxu1 }
 0xcaa   : > { %v5899_v2 = vpop.f32.mrb[25].mxu1  ;;  %5907 = vmatprep.mubr.msk.f32.mxu0 %vm1241_vm2, %v2735_v1 }
 0xcb1   : > { %v2811_v35 = vpop.f32.mrb[12].mxu0 }
 0xcb2   : > { %v5904_v3 = vpop.f32.mrb[13].mxu0  ;;  %5908 = vmatmul.mubr.msk.f32.vlgmr.msra.gmra.mrb[6].mxu0 %vm1241_vm2, %v2811_v35 }
 0xcb3   : > { %5929 = vmatprep.mubr.msk.f32.mxu0 %vm997_vm0, %v7794_v23  ;;  %6124 = vmatpush3.bf16.msra.mxu0 %v6121_v30 }
 0xcb4   : > { %6126 = vmatprep.subr.bf16.mxu0 %v6125_v22 }
 0xcb7   : > { %6128 = vmatpush3.bf16.msra.mxu0 %v6125_v22 }
 0xcb8   : > { %5943 = vmatprep.subr.mxu0 %v7009_v20 }
 0xcba   : > { %5930 = vmatmul.mubr.msk.f32.vlgmr.msra.gmra.mrb[14].mxu0 %vm997_vm0, %v7804_v31 }
 0xcbb   : > { %5945 = vmatprep.mubr.msk.f32.mxu0 %vm7010_vm1, %v7009_v20 }
 0xd85   : > { %v5909_v6 = vpop.f32.mrb[6].mxu0 }
 0xd86   : > { %v2905_v7 = vadd.f32 %v5909_v6, %v5576_v4  ;;  %v2887_v8 = vpop.f32.mrb[7].mxu0 }
 0xd87   : > { %v2904_v10 = vadd.f32 %v5576_v4, %v2887_v8 }
 0xd88   : > { %v7768_v11 = vadd.f32 %v2905_v7, %v7577_v12 }
 0xd89   : > { %v7771_v13 = vadd.f32 %v2904_v10, %v7561_v5 }
 0xd8a   : > { %v2911_v14 = vsel %vm997_vm0, %v7768_v11, 0.0  ;;  %v2915_v12 = vmul.f32 %v7768_v11, %v7768_v11 }
 0xd8b   : > { %2912 = vadd.xlane.f32.xlu1 %v2911_v14  ;;  %v2908_v15 = vsel %vm997_vm0, %v7771_v13, 0.0  ;;  %v2914_v16 = vmul.f32 %v7771_v13, %v7771_v13 }
 0xd8c   : > { %2909 = vadd.xlane.f32.xlu0 %v2908_v15  ;;  %v2919_v5 = vsel %vm997_vm0, %v2915_v12, 0.0  ;;  %v7814_v12 = vld [vmem:[#allocation23] sm:$0xff] }
 0xd8d   : > { %v2916_v17 = vsel %vm997_vm0, %v2914_v16, 0.0  ;;  %v7812_v16 = vld [vmem:[#allocation22] sm:$0xff]  ;;  %v5931_v22 = vpop.f32.mrb[14].mxu0 }
 0xd8e   : > { %v3151_v26 = vpop.f32.mrb[15].mxu0 }
 0xd90   : > { %2917 = vadd.xlane.f32.xlu0 %v2916_v17 }
 0xd94   : > { %2920 = vadd.xlane.f32.xlu0 %v2919_v5 }
 0xe18   : > { %v2913_v37 = vpop.xlane.xlu1 %2912 }
 0xe19   : > { %v2928_v38 = vrot.slane %v2913_v37, 4  ;;  %v2910_v39 = vpop.xlane.xlu0 %2909 }
 0xe1a   : > { %v2922_v40 = vrot.slane %v2910_v39, 4 }
 0xe1b   : > { %v2929_v41 = vadd.f32 %v2928_v38, %v2913_v37  ;;  %v5583_v37 = vld [vmem:[#allocation17] ss:$0 sm:$0xff] }
 0xe1c   : > { %v2923_v42 = vadd.f32 %v2922_v40, %v2910_v39 }
 0xe1d   : > { %v2930_v43 = vrot.slane %v2929_v41, 2  ;;  %v2918_v44 = vpop.xlane.xlu0 %2917 }
 0xe1e   : > { %v2924_v46 = vrot.slane %v2923_v42, 2  ;;  %v2936_v47 = vrot.slane %v2918_v44, 4 }
 0xe1f   : > { %v2931_v48 = vadd.f32 %v2930_v43, %v2929_v41 }
 0xe20   : > { %v2925_v49 = vadd.f32 %v2924_v46, %v2923_v42  ;;  %v2937_v50 = vadd.f32 %v2936_v47, %v2918_v44 }
 0xe21   : > { %v2921_v51 = vpop.xlane.xlu0 %2920  ;;  %v2932_v52 = vrot.slane %v2931_v48, 1 }
 0xe22   : > { %v2926_v53 = vrot.slane %v2925_v49, 1  ;;  %v2938_v54 = vrot.slane %v2937_v50, 2  ;;  %v2942_v55 = vrot.slane %v2921_v51, 4 }
 0xe23   : > { %v2933_v45 = vadd.f32 %v2932_v52, %v2931_v48 }
 0xe24   : > { %v2927_v56 = vadd.f32 %v2926_v53, %v2925_v49  ;;  %v2939_v57 = vadd.f32 %v2938_v54, %v2937_v50  ;;  %v2943_v58 = vadd.f32 %v2942_v55, %v2921_v51 }
 0xe25   : > { %v2935_v63 = vmul.f32 0.00390625, %v2933_v45 }
 0xe26   : > { %v2934_v59 = vmul.f32 0.00390625, %v2927_v56  ;;  %v2940_v60 = vrot.slane %v2939_v57, 1  ;;  %v2944_v61 = vrot.slane %v2943_v58, 2 }
 0xe27   : > { %v2951_v4 = vmul.f32 %v2935_v63, %v2935_v63  ;;  %v2955_v5 = vsub.f32 %v7768_v11, %v2935_v63  ;;  %v5580_v11 = vld [vmem:[#allocation14] ss:$0 sm:$0xff] }
 0xe28   : > { %v2941_v33 = vadd.f32 %v2940_v60, %v2939_v57  ;;  %v2945_v62 = vadd.f32 %v2944_v61, %v2943_v58  ;;  %v2950_v0 = vmul.f32 %v2934_v59, %v2934_v59  ;;  %v2954_v14 = vsub.f32 %v7771_v13, %v2934_v59 }
 0xe29   : > { %v7836_v24 = vadd.f32 %v5931_v22, %v5580_v11  ;;  %v7838_v27 = vadd.f32 %v5580_v11, %v3151_v26 }
 0xe2a   : > { %v2948_v1 = vmul.f32 0.00390625, %v2941_v33  ;;  %v2946_v2 = vrot.slane %v2945_v62, 1 }
 0xe2b   : > { %5944 = vmatpush3.xpose.msk.msra.mxu0 %vm1241_vm2, %v7838_v27 }
 0xe2c   : > { %v2952_v35 = vsub.f32 %v2948_v1, %v2950_v0  ;;  %v2947_v3 = vadd.f32 %v2946_v2, %v2945_v62  ;;  %5953 = vmatprep.subr.mxu0 %v7009_v20 }
 0xe2e   : > { %v2956_v6 = vadd.f32 1e-05, %v2952_v35  ;;  %v2949_v7 = vmul.f32 0.00390625, %v2947_v3 }
 0xe30   : > { %6422 = vrsqrt.f32 %v2956_v6  ;;  %v2953_v8 = vsub.f32 %v2949_v7, %v2951_v4 }
 0xe32   : > { %v2957_v10 = vadd.f32 1e-05, %v2953_v8 }
 0xe34   : > { %6424 = vrsqrt.f32 %v2957_v10 }
 0xe3a   : > { %v6423_v15 = vpop.eup %6422 }
 0xe3b   : > { %v2960_v17 = vmul.f32 %v6423_v15, %v2954_v14 }
 0xe3d   : > { %v2962_v25 = vmul.f32 %v2960_v17, %v7812_v16 }
 0xe3e   : > { %v6425_v28 = vpop.eup %6424 }
 0xe3f   : > { %v7819_v29 = vadd.f32 %v2962_v25, %v7814_v12  ;;  %v2961_v30 = vmul.f32 %v6425_v28, %v2955_v5 }
 0xe41   : > { %5918 = vmatprep.mubr.msk.f32.mxu1 %vm997_vm0, %v7819_v29  ;;  %v2963_v13 = vmul.f32 %v2961_v30, %v7812_v16 }
 0xe43   : > { %v7825_v21 = vadd.f32 %v2963_v13, %v7814_v12 }
 0xe45   : > { %5919 = vmatmul.mubr.msk.f32.vlgmr.msra.gmra.mrb[26].mxu1 %vm997_vm0, %v7825_v21 }
 0xe46   : > { %6132 = vmatpush3.bf16.msra.mxu1 %v6129_v36  ;;  %5940 = vmatprep.mubr.msk.f32.mxu1 %vm997_vm0, %v7794_v23  ;;  %v5577_v23 = vld [vmem:[#allocation11] ss:$0 sm:$0xff] }
 0xe47   : > { %6134 = vmatprep.subr.bf16.mxu1 %v6133_v9 }
 0xe4a   : > { %6136 = vmatpush3.bf16.msra.mxu1 %v6133_v9 }
 0xe4b   : > { %5948 = vmatprep.subr.mxu1 %v7009_v20 }
 0xe4d   : > { %5941 = vmatmul.mubr.msk.f32.vlgmr.msra.gmra.mrb[28].mxu1 %vm997_vm0, %v7804_v31 }
 0xe4e   : > { %5950 = vmatprep.mubr.msk.f32.mxu1 %vm7010_vm1, %v7009_v20 }
 0xe53   : > { %5949 = vmatpush3.xpose.msk.msra.mxu1 %vm1241_vm2, %v7836_v24 }
 0xe54   : > { %5958 = vmatprep.subr.mxu1 %v7009_v20 }
 0xf18   : > { %v5920_v31 = vpop.f32.mrb[26].mxu1 }
 0xf19   : > { %v7846_v32 = vadd.f32 %v5920_v31, %v5577_v23  ;;  %v3064_v34 = vpop.f32.mrb[27].mxu1 }
 0xf1a   : > { %v7848_v36 = vadd.f32 %v5577_v23, %v3064_v34 }
 0xf1b   : > { %5951 = vmatmul.mubr.msk.f32.vlgmr.msra.gmra.mrb[30].mxu1 %vm1241_vm2, %v7846_v32 }
 0xf1c   : > { %5946 = vmatmul.mubr.msk.f32.vlgmr.msra.gmra.mrb[16].mxu0 %vm1241_vm2, %v7848_v36  ;;  %5960 = vmatprep.mubr.msk.f32.mxu1 %vm7010_vm1, %v7009_v20 }
 0xf1d   : > { %5955 = vmatprep.mubr.msk.f32.mxu0 %vm7010_vm1, %v7009_v20 }
 0xf20   : > { %v5942_v38 = vpop.f32.mrb[28].mxu1 }
 0xf21   : > { %v7858_v39 = vadd.f32 %v5942_v38, %v5583_v37  ;;  %v3232_v40 = vpop.f32.mrb[29].mxu1 }
 0xf22   : > { %v7860_v41 = vadd.f32 %v5583_v37, %v3232_v40 }
 0xf23   : > { %5959 = vmatpush3.msra.mxu1 %v7858_v39 }
 0xf24   : > { %5954 = vmatpush3.msra.mxu0 %v7860_v41  ;;  %5968 = vmatprep.subr.mxu1 %v7009_v20 }
 0xf25   : > { %5963 = vmatprep.subr.mxu0 %v7009_v20 }
 0xfee   : > { %v3389_v42 = vpop.f32.mrb[30].mxu1 }
 0xfef   : > { %v3394_v43 = vmul.f32 0.35355338, %v3389_v42  ;;  %v3313_v44 = vpop.f32.mrb[16].mxu0  ;;  %v5952_v46 = vpop.f32.mrb[31].mxu1 }
 0xff0   : > { %v5947_v47 = vpop.f32.mrb[17].mxu0  ;;  %v3393_v54 = vmul.f32 0.35355338, %v3313_v44 }
 0xff1   : > { %v3398_v48 = vsel %vm1241_vm2, %v3394_v43, -inf }
 0xff2   : > { %3399 = vmax.xlane.f32.xlu0 %v3398_v48  ;;  %v3395_v55 = vsel %vm1241_vm2, %v3393_v54, -inf }
0x1008   : > { %3643 = vrot.lane.b32.xlu0 %v7836_v24, %s7011_s11 }
0x107f   : > { %v3400_v49 = vpop.xlane.xlu0 %3399 }
0x1080   : > { %v3402_v50 = vsub.f32 %v3394_v43, %v3400_v49 }
0x1082   : > { %v3405_v51 = vmul.f32 1.442695, %v3402_v50 }
0x1083   : > { %v3644_v45 = vpop.permute.xlu0 %3643 }
0x1084   : > { %6426 = vpow2.f32 %v3405_v51 }
0x108e   : > { %v6427_v52 = vpop.eup %6426 }
0x108f   : > { %v3410_v53 = vsel %vm1241_vm2, %v6427_v52, 0.0 }
0x1090   : > { %3411 = vadd.xlane.f32.xlu1 %v3410_v53 }
0x10a1   : > { %3641 = vrot.lane.b32.xlu1 %v7846_v32, %s7011_s11 }
0x10c5   : > { %3396 = vmax.xlane.f32.xlu1 %v3395_v55 }
0x10d6   : > { %3563 = vrot.lane.b32.xlu1 %v7848_v36, %s7011_s11 }
0x111d   : > { %v3412_v56 = vpop.xlane.xlu1 %3411 }
0x111e   : > { %6428 = vrcp.f32 %v3412_v56 }
0x1121   : > { %v3642_v59 = vpop.permute.xlu1 %3641 }
0x1128   : > { %v6429_v57 = vpop.eup %6428 }
0x1129   : > { %v3416_v58 = vmul.f32 %v6429_v57, %v6427_v52 }
0x112b   : > { %5961 = vmatmul.mubr.msk.f32.vlgmr.msra.gmra.mrb[32].mxu1 %vm1241_vm2, %v3416_v58 }
0x112c   : > { %5969 = vmatpush3.xpose.msk.msra.mxu1 %vm1241_vm2, %v3644_v45  ;;  %5970 = vmatprep.mubr.msk.f32.mxu1 %vm7010_vm1, %v7009_v20 }
0x112d   : > { %5978 = vmatprep.subr.mxu1 %v7009_v20 }
0x112f   : > { %5971 = vmatmul.mubr.msk.f32.vlgmr.msra.gmra.mrb[34].mxu1 %vm1241_vm2, %v3642_v59  ;;  %v2982_v59 = vld [vmem:[#allocation19 + $0x8] sm:$0xff] }
0x1130   : > { %5980 = vmatprep.mubr.msk.f32.mxu1 %vm7010_vm1, %v7009_v20 }
0x1152   : > { %v3397_v60 = vpop.xlane.xlu1 %3396 }
0x1153   : > { %v3401_v61 = vsub.f32 %v3393_v54, %v3397_v60  ;;  %v2981_v60 = vld [vmem:[#allocation19] sm:$0xff] }
0x1155   : > { %v3403_v33 = vmul.f32 1.442695, %v3401_v61 }
0x1156   : > { %v3564_v6 = vpop.permute.xlu1 %3563 }
0x1157   : > { %6430 = vpow2.f32 %v3403_v33 }
0x1161   : > { %v6431_v62 = vpop.eup %6430 }
0x1162   : > { %v3407_v63 = vsel %vm1241_vm2, %v6431_v62, 0.0 }
0x1163   : > { %3408 = vadd.xlane.f32.xlu0 %v3407_v63 }
0x1179   : > { %3565 = vrot.lane.b32.xlu0 %v7838_v27, %s7011_s11 }
0x11f0   : > { %v3409_v0 = vpop.xlane.xlu0 %3408 }
0x11f1   : > { %6432 = vrcp.f32 %v3409_v0 }
0x11f4   : > { %v3566_v35 = vpop.permute.xlu0 %3565 }
0x11fb   : > { %v6433_v1 = vpop.eup %6432 }
0x11fc   : > { %v3414_v2 = vmul.f32 %v6433_v1, %v6431_v62 }
0x11fe   : > { %5956 = vmatmul.mubr.msk.f32.vlgmr.msra.gmra.mrb[18].mxu0 %vm1241_vm2, %v3414_v2  ;;  %v7887_v3 = vpop.f32.mrb[32].mxu1 }
0x11ff   : > { %5964 = vmatpush3.xpose.msk.msra.mxu0 %vm1241_vm2, %v3566_v35  ;;  %v5962_v4 = vpop.f32.mrb[33].mxu1  ;;  %5965 = vmatprep.mubr.msk.f32.mxu0 %vm7010_vm1, %v7009_v20 }
0x1200   : > { %5973 = vmatprep.subr.mxu0 %v7009_v20 }
0x1202   : > { %5966 = vmatmul.mubr.msk.f32.vlgmr.msra.gmra.mrb[20].mxu0 %vm1241_vm2, %v3564_v6  ;;  %v3715_v7 = vpop.f32.mrb[34].mxu1 }
0x1203   : > { %v3720_v8 = vmul.f32 0.35355338, %v3715_v7  ;;  %v5972_v10 = vpop.f32.mrb[35].mxu1  ;;  %5975 = vmatprep.mubr.msk.f32.mxu0 %vm7010_vm1, %v7009_v20 }
0x1205   : > { %v3724_v14 = vsel %vm1241_vm2, %v3720_v8, -inf }
0x1206   : > { %3725 = vmax.xlane.f32.xlu1 %v3724_v14  ;;  %v2983_v14 = vld [vmem:[#allocation19 + $0x10] sm:$0xff] }
0x1217   : > { %4061 = vrot.lane.b32.xlu1 %v7838_v27, %s7013_s4 }
0x121b   : > { %4059 = vrot.lane.b32.xlu1 %v7848_v36, %s7013_s4 }
0x121f   : > { %4139 = vrot.lane.b32.xlu1 %v7836_v24, %s7013_s4 }
0x1293   : > { %v3726_v15 = vpop.xlane.xlu1 %3725 }
0x1294   : > { %v3728_v17 = vsub.f32 %v3720_v8, %v3726_v15 }
0x1296   : > { %v3731_v5 = vmul.f32 1.442695, %v3728_v17 }
0x1297   : > { %v4062_v23 = vpop.permute.xlu1 %4061 }
0x1298   : > { %6434 = vpow2.f32 %v3731_v5 }
0x129b   : > { %v4060_v34 = vpop.permute.xlu1 %4059 }
0x129f   : > { %v4140_v38 = vpop.permute.xlu1 %4139 }
0x12a2   : > { %v6435_v25 = vpop.eup %6434 }
0x12a3   : > { %v3736_v28 = vsel %vm1241_vm2, %v6435_v25, 0.0 }
0x12a4   : > { %3737 = vadd.xlane.f32.xlu0 %v3736_v28 }
0x12ba   : > { %3821 = vrot.lane.b32.xlu0 %v7858_v39, %s7011_s11 }
0x12be   : > { %4137 = vrot.lane.b32.xlu0 %v7846_v32, %s7013_s4 }
0x12d1   : > { %v7908_v30 = vpop.f32.mrb[18].mxu0 }
0x12d2   : > { %v5957_v18 = vpop.f32.mrb[19].mxu0 }
0x12d5   : > { %v3637_v19 = vpop.f32.mrb[20].mxu0 }
0x12d6   : > { %v3719_v13 = vmul.f32 0.35355338, %v3637_v19  ;;  %v5967_v9 = vpop.f32.mrb[21].mxu0 }
0x12d8   : > { %v3721_v11 = vsel %vm1241_vm2, %v3719_v13, -inf }
0x12d9   : > { %3722 = vmax.xlane.f32.xlu1 %v3721_v11 }
0x1331   : > { %v3738_v22 = vpop.xlane.xlu0 %3737 }
0x1332   : > { %6436 = vrcp.f32 %v3738_v22 }
0x1335   : > { %v3822_v26 = vpop.permute.xlu0 %3821 }
0x1336   : > { %5979 = vmatpush3.msra.mxu1 %v3822_v26 }
0x1337   : > { %5993 = vmatprep.subr.mxu1 %v7009_v20 }
0x1339   : > { %v4138_v40 = vpop.permute.xlu0 %4137 }
0x133c   : > { %v6437_v31 = vpop.eup %6436 }
0x133d   : > { %v3742_v37 = vmul.f32 %v6437_v31, %v6435_v25 }
0x133f   : > { %5981 = vmatmul.mubr.msk.f32.vlgmr.msra.gmra.mrb[36].mxu1 %vm1241_vm2, %v3742_v37 }
0x1340   : > { %5994 = vmatpush3.xpose.msk.msra.mxu1 %vm1241_vm2, %v4062_v23  ;;  %5995 = vmatprep.mubr.msk.f32.mxu1 %vm7010_vm1, %v7009_v20 }
0x1341   : > { %5998 = vmatprep.subr.mxu1 %v7009_v20 }
0x1343   : > { %5996 = vmatmul.mubr.msk.f32.vlgmr.msra.gmra.mrb[38].mxu1 %vm1241_vm2, %v4060_v34 }
0x1344   : > { %5999 = vmatpush3.xpose.msk.msra.mxu1 %vm1241_vm2, %v4140_v38  ;;  %6000 = vmatprep.mubr.msk.f32.mxu1 %vm7010_vm1, %v7009_v20 }
0x1345   : > { %6008 = vmatprep.subr.mxu1 %v7009_v20 }
0x1347   : > { %6001 = vmatmul.mubr.msk.f32.vlgmr.msra.gmra.mrb[40].mxu1 %vm1241_vm2, %v4138_v40 }
0x1348   : > { %6010 = vmatprep.mubr.msk.f32.mxu1 %vm7010_vm1, %v7009_v20 }
0x1366   : > { %v3723_v42 = vpop.xlane.xlu1 %3722 }
0x1367   : > { %v3727_v43 = vsub.f32 %v3719_v13, %v3723_v42 }
0x1369   : > { %v3729_v44 = vmul.f32 1.442695, %v3727_v43 }
0x136b   : > { %6438 = vpow2.f32 %v3729_v44 }
0x1375   : > { %v6439_v46 = vpop.eup %6438 }
0x1376   : > { %v3733_v47 = vsel %vm1241_vm2, %v6439_v46, 0.0 }
0x1377   : > { %3734 = vadd.xlane.f32.xlu0 %v3733_v47 }
0x138d   : > { %3744 = vrot.lane.b32.xlu0 %v7860_v41, %s7011_s11 }
0x1391   : > { %4315 = vrot.lane.b32.xlu0 %v7858_v39, %s7013_s4 }
0x1395   : > { %4476 = vrot.lane.b32.xlu0 %v7838_v27, %s7014_s3 }
0x1399   : > { %4554 = vrot.lane.b32.xlu0 %v7836_v24, %s7014_s3 }
0x139d   : > { %4474 = vrot.lane.b32.xlu0 %v7848_v36, %s7014_s3 }
0x1404   : > { %v3735_v48 = vpop.xlane.xlu0 %3734 }
0x1405   : > { %6440 = vrcp.f32 %v3735_v48 }
0x1408   : > { %v3745_v49 = vpop.permute.xlu0 %3744 }
0x1409   : > { %5974 = vmatpush3.msra.mxu0 %v3745_v49 }
0x140a   : > { %5983 = vmatprep.subr.mxu0 %v2982_v59 }
0x140c   : > { %v4316_v50 = vpop.permute.xlu0 %4315 }
0x140d   : > { %6009 = vmatpush3.msra.mxu1 %v4316_v50 }
0x140e   : > { %6018 = vmatprep.subr.mxu1 %v7009_v20 }
0x140f   : > { %v6441_v51 = vpop.eup %6440 }
0x1410   : > { %v3740_v52 = vmul.f32 %v6441_v51, %v6439_v46  ;;  %v4477_v17 = vpop.permute.xlu0 %4476 }
0x1412   : > { %5976 = vmatmul.mubr.msk.f32.vlgmr.msra.gmra.mrb[22].mxu0 %vm1241_vm2, %v3740_v52  ;;  %v3893_v53 = vpop.f32.mrb[36].mxu1 }
0x1413   : > { %v5982_v27 = vpop.f32.mrb[37].mxu1  ;;  %5984 = vmatpush3.msra.mxu0 %v2982_v59 }
0x1414   : > { %5988 = vmatprep.subr.mxu0 %v2981_v60 }
0x1416   : > { %v4133_v54 = vpop.f32.mrb[38].mxu1 }
0x1417   : > { %v4215_v55 = vmul.f32 0.35355338, %v4133_v54  ;;  %v5997_v24 = vpop.f32.mrb[39].mxu1 }
0x1419   : > { %v4217_v56 = vsel %vm1241_vm2, %v4215_v55, -inf }
0x141a   : > { %v4211_v36 = vpop.f32.mrb[40].mxu1  ;;  %4218 = vmax.xlane.f32.xlu1 %v4217_v56 }
0x141b   : > { %v4216_v57 = vmul.f32 0.35355338, %v4211_v36  ;;  %v6002_v58 = vpop.f32.mrb[41].mxu1 }
0x141d   : > { %v4220_v45 = vsel %vm1241_vm2, %v4216_v57, -inf }
0x141e   : > { %4221 = vmax.xlane.f32.xlu1 %v4220_v45 }
0x14a7   : > { %v4219_v61 = vpop.xlane.xlu1 %4218 }
0x14a8   : > { %v4223_v33 = vsub.f32 %v4215_v55, %v4219_v61 }
0x14aa   : > { %v4225_v62 = vmul.f32 1.442695, %v4223_v33 }
0x14ab   : > { %v4222_v63 = vpop.xlane.xlu1 %4221 }
0x14ac   : > { %6442 = vpow2.f32 %v4225_v62  ;;  %v4224_v0 = vsub.f32 %v4216_v57, %v4222_v63  ;;  %v2984_v57 = vld [vmem:[#allocation19 + $0x18] sm:$0xff] }
0x14ae   : > { %v4227_v1 = vmul.f32 1.442695, %v4224_v0 }
0x14b0   : > { %6444 = vpow2.f32 %v4227_v1 }
0x14b6   : > { %v6443_v2 = vpop.eup %6442 }
0x14b7   : > { %v4229_v35 = vsel %vm1241_vm2, %v6443_v2, 0.0 }
0x14b8   : > { %4230 = vadd.xlane.f32.xlu1 %v4229_v35 }
0x14ba   : > { %v6445_v4 = vpop.eup %6444 }
0x14bb   : > { %v4232_v6 = vsel %vm1241_vm2, %v6445_v4, 0.0 }
0x14bc   : > { %4233 = vadd.xlane.f32.xlu1 %v4232_v6 }
0x14cd   : > { %4239 = vrot.lane.b32.xlu1 %v7860_v41, %s7013_s4 }
0x14d1   : > { %4552 = vrot.lane.b32.xlu1 %v7846_v32, %s7014_s3 }
0x14e5   : > { %v3816_v7 = vpop.f32.mrb[22].mxu0 }
0x14e6   : > { %v5977_v8 = vpop.f32.mrb[23].mxu0  ;;  %5985 = vmatprep.mubr.msk.f32.mxu0 %vm1241_vm2, %v3816_v7  ;;  %v4957_v7 = vld [vmem:[#allocation25] sm:$0xff] }
0x14e7   : > { %5986 = vmatmul.mubr.msk.f32.vlgmr.msra.gmra.mrb[24].mxu0 %vm1241_vm2, %v3893_v53  ;;  %v4958_v8 = vld [vmem:[#allocation25 + $0x8] sm:$0xff] }
0x14e8   : > { %5990 = vmatprep.mubr.msk.f32.mxu0 %vm1241_vm2, %v7908_v30  ;;  %5989 = vmatpush3.msra.mxu0 %v2981_v60  ;;  %v4555_v30 = vpop.permute.xlu0 %4554  ;;  %v5618_v60 = vld [vmem:[#allocation20] ss:$0 sm:$0xff] }
0x14e9   : > { %6003 = vmatprep.subr.mxu0 %v7009_v20 }
0x14ec   : > { %v4475_v18 = vpop.permute.xlu0 %4474 }
0x14ef   : > { %5991 = vmatmul.mubr.msk.f32.vlgmr.msra.gmra.mrb[24].mxu0 %vm1241_vm2, %v7887_v3 }
0x14f0   : > { %6005 = vmatprep.mubr.msk.f32.mxu0 %vm7010_vm1, %v7009_v20 }
0x1545   : > { %v4231_v10 = vpop.xlane.xlu1 %4230 }
0x1546   : > { %6446 = vrcp.f32 %v4231_v10  ;;  %v4959_v10 = vld [vmem:[#allocation25 + $0x10] sm:$0xff] }
0x1549   : > { %v4234_v32 = vpop.xlane.xlu1 %4233 }
0x154a   : > { %6448 = vrcp.f32 %v4234_v32  ;;  %v6137_v32 = vpack.c.bf16 %v4958_v8, %v4957_v7  ;;  %v5110_v7 = vld [vmem:[%s8150_s22 + $0x38] sm:$0xff] }
0x154d   : > { %v4240_v15 = vpop.permute.xlu1 %4239 }
0x154e   : > { %6004 = vmatpush3.msra.mxu0 %v4240_v15 }
0x154f   : > { %6013 = vmatprep.subr.mxu0 %v2983_v14 }
0x1550   : > { %v6447_v5 = vpop.eup %6446 }
0x1551   : > { %v4236_v25 = vmul.f32 %v6447_v5, %v6443_v2  ;;  %v4553_v22 = vpop.permute.xlu1 %4552 }
0x1553   : > { %6006 = vmatmul.mubr.msk.f32.vlgmr.msra.gmra.mrb[26].mxu0 %vm1241_vm2, %v4236_v25 }
0x1554   : > { %v6449_v28 = vpop.eup %6448  ;;  %6014 = vmatpush3.msra.mxu0 %v2983_v14  ;;  %v4960_v14 = vld [vmem:[#allocation25 + $0x18] sm:$0xff] }
0x1555   : > { %v4238_v3 = vmul.f32 %v6449_v28, %v6445_v4  ;;  %6023 = vmatprep.subr.mxu0 %v7009_v20  ;;  %v6141_v15 = vpack.c.bf16 %v4960_v14, %v4959_v10  ;;  %v5111_v10 = vld [vmem:[%s8150_s22 + $0x40] sm:$0xff] }
0x1557   : > { %6011 = vmatmul.mubr.msk.f32.vlgmr.msra.gmra.mrb[42].mxu1 %vm1241_vm2, %v4238_v3 }
0x1558   : > { %6019 = vmatpush3.xpose.msk.msra.mxu1 %vm1241_vm2, %v4477_v17  ;;  %6020 = vmatprep.mubr.msk.f32.mxu1 %vm7010_vm1, %v7009_v20 }
0x1559   : > { %6028 = vmatprep.subr.mxu1 %v7009_v20 }
0x155b   : > { %6021 = vmatmul.mubr.msk.f32.vlgmr.msra.gmra.mrb[44].mxu1 %vm1241_vm2, %v4475_v18 }
0x155c   : > { %6030 = vmatprep.mubr.msk.f32.mxu1 %vm7010_vm1, %v7009_v20 }
0x1626   : > { %v4311_v19 = vpop.f32.mrb[26].mxu0 }
0x1627   : > { %v6007_v13 = vpop.f32.mrb[27].mxu0  ;;  %6015 = vmatprep.mubr.msk.f32.mxu0 %vm1241_vm2, %v4311_v19 }
0x162a   : > { %v4387_v9 = vpop.f32.mrb[42].mxu1 }
0x162b   : > { %v6012_v11 = vpop.f32.mrb[43].mxu1  ;;  %6016 = vmatmul.mubr.msk.f32.vlgmr.msra.gmra.mrb[24].mxu0 %vm1241_vm2, %v4387_v9 }
0x162c   : > { %6024 = vmatpush3.xpose.msk.msra.mxu0 %vm1241_vm2, %v4555_v30  ;;  %6025 = vmatprep.mubr.msk.f32.mxu0 %vm7010_vm1, %v7009_v20 }
0x162d   : > { %6033 = vmatprep.subr.mxu0 %v7009_v20 }
0x162e   : > { %v4548_v26 = vpop.f32.mrb[44].mxu1 }
0x162f   : > { %v4630_v23 = vmul.f32 0.35355338, %v4548_v26  ;;  %v6022_v31 = vpop.f32.mrb[45].mxu1  ;;  %6026 = vmatmul.mubr.msk.f32.vlgmr.msra.gmra.mrb[28].mxu0 %vm1241_vm2, %v4553_v22 }
0x1630   : > { %6035 = vmatprep.mubr.msk.f32.mxu0 %vm7010_vm1, %v7009_v20 }
0x1631   : > { %v4632_v34 = vsel %vm1241_vm2, %v4630_v23, -inf }
0x1632   : > { %4633 = vmax.xlane.f32.xlu0 %v4632_v34 }
0x16bf   : > { %v4634_v37 = vpop.xlane.xlu0 %4633 }
0x16c0   : > { %v4638_v38 = vsub.f32 %v4630_v23, %v4634_v37 }
0x16c2   : > { %v4640_v40 = vmul.f32 1.442695, %v4638_v38 }
0x16c4   : > { %6450 = vpow2.f32 %v4640_v40 }
0x16ce   : > { %v6451_v42 = vpop.eup %6450 }
0x16cf   : > { %v4644_v43 = vsel %vm1241_vm2, %v6451_v42, 0.0 }
0x16d0   : > { %4645 = vadd.xlane.f32.xlu0 %v4644_v43 }
0x1702   : > { %v4626_v44 = vpop.f32.mrb[28].mxu0 }
0x1703   : > { %v4631_v46 = vmul.f32 0.35355338, %v4626_v44  ;;  %v6027_v47 = vpop.f32.mrb[29].mxu0 }
0x1705   : > { %v4635_v48 = vsel %vm1241_vm2, %v4631_v46, -inf }
0x1706   : > { %4636 = vmax.xlane.f32.xlu1 %v4635_v48 }
0x1717   : > { %4730 = vrot.lane.b32.xlu1 %v7858_v39, %s7014_s3 }
0x175d   : > { %v4646_v27 = vpop.xlane.xlu0 %4645 }
0x1793   : > { %v4637_v20 = vpop.xlane.xlu1 %4636 }
0x1794   : > { %v4639_v49 = vsub.f32 %v4631_v46, %v4637_v20 }
0x1796   : > { %v4642_v50 = vmul.f32 1.442695, %v4639_v49 }
0x1797   : > { %v4731_v51 = vpop.permute.xlu1 %4730 }
0x1798   : > { %6452 = vpow2.f32 %v4642_v50  ;;  %6034 = vmatpush3.msra.mxu0 %v4731_v51 }
0x1799   : > { %6454 = vrcp.f32 %v4646_v27  ;;  %6038 = vmatprep.subr.mxu0 %v2984_v57 }
0x17a2   : > { %v6453_v52 = vpop.eup %6452 }
0x17a3   : > { %v4647_v53 = vsel %vm1241_vm2, %v6453_v52, 0.0  ;;  %v6455_v55 = vpop.eup %6454 }
0x17a4   : > { %4648 = vadd.xlane.f32.xlu0 %v4647_v53  ;;  %v4651_v24 = vmul.f32 %v6455_v55, %v6451_v42 }
0x17ba   : > { %4654 = vrot.lane.b32.xlu0 %v7860_v41, %s7014_s3  ;;  %s8242_s3 = sld [smem:[#allocation57_spill]] }
0x17c0   : > { %s8081_s9 = scalar_lea.hbm %s8242_s3, %s5628_s0 }
0x1831   : > { %v4649_v54 = vpop.xlane.xlu0 %4648 }
0x1832   : > { %6456 = vrcp.f32 %v4649_v54 }
0x1835   : > { %v4655_v39 = vpop.permute.xlu0 %4654 }
0x1836   : > { %6029 = vmatpush3.msra.mxu1 %v4655_v39 }
0x1837   : > { %6031 = vmatmul.mubr.msk.f32.vlgmr.msra.gmra.mrb[46].mxu1 %vm1241_vm2, %v4651_v24  ;;  %6138 = vmatprep.subr.bf16.mxu1 %v6137_v32 }
0x1838   : > { %6140 = vmatpush3.bf16.msra.mxu1 %v6137_v32  ;;  %v5112_v32 = vld [vmem:[%s8150_s22 + $0x48] sm:$0xff] }
0x1839   : > { %6142 = vmatprep.subr.bf16.mxu1 %v6141_v15  ;;  %v6161_v14 = vpack.c.bf16 %v5112_v32, %v5111_v10 }
0x183c   : > { %v6457_v56 = vpop.eup %6456  ;;  %6144 = vmatpush3.bf16.msra.mxu1 %v6141_v15  ;;  %v5113_v15 = vld [vmem:[%s8150_s22 + $0x50] sm:$0xff] }
0x183d   : > { %v4653_v36 = vmul.f32 %v6457_v56, %v6453_v52 }
0x183f   : > { %6036 = vmatmul.mubr.msk.f32.vlgmr.msra.gmra.mrb[30].mxu0 %vm1241_vm2, %v4653_v36 }
0x1840   : > { %6039 = vmatpush3.msra.mxu0 %v2984_v57 }
0x190a   : > { %v4726_v58 = vpop.f32.mrb[46].mxu1 }
0x190b   : > { %v6032_v45 = vpop.f32.mrb[47].mxu1  ;;  %6040 = vmatprep.mubr.msk.f32.mxu0 %vm1241_vm2, %v4726_v58 }
0x1912   : > { %v4802_v41 = vpop.f32.mrb[30].mxu0 }
0x1913   : > { %v6037_v59 = vpop.f32.mrb[31].mxu0  ;;  %6041 = vmatmul.mubr.msk.f32.vlgmr.msra.gmra.mrb[24].mxu0 %vm1241_vm2, %v4802_v41 }
0x19e6   : > { %v6042_v61 = vpop.f32.mrb[24].mxu0 }
0x19e7   : > { %v4896_v33 = vadd.f32 %v6042_v61, %v5618_v60  ;;  %v4878_v62 = vpop.f32.mrb[25].mxu0 }
0x19e8   : > { %v4895_v63 = vadd.f32 %v5618_v60, %v4878_v62 }
0x19e9   : > { %v7987_v0 = vadd.f32 %v4896_v33, %v7825_v21 }
0x19ea   : > { %v7990_v1 = vadd.f32 %v4895_v63, %v7819_v29 }
0x19eb   : > { %v4902_v2 = vsel %vm997_vm0, %v7987_v0, 0.0  ;;  %v4906_v6 = vmul.f32 %v7987_v0, %v7987_v0 }
0x19ec   : > { %4903 = vadd.xlane.f32.xlu0 %v4902_v2  ;;  %v4899_v35 = vsel %vm997_vm0, %v7990_v1, 0.0  ;;  %v4905_v4 = vmul.f32 %v7990_v1, %v7990_v1  ;;  %v5106_v2 = vld [vmem:[%s8150_s22 + $0x18] sm:$0xff] }
0x19ed   : > { %4900 = vadd.xlane.f32.xlu1 %v4899_v35  ;;  %v4910_v29 = vsel %vm997_vm0, %v4906_v6, 0.0  ;;  %v5108_v6 = vld [vmem:[%s8150_s22 + $0x28] sm:$0xff] }
0x19ee   : > { %v4907_v21 = vsel %vm997_vm0, %v4905_v4, 0.0  ;;  %v5107_v4 = vld [vmem:[%s8150_s22 + $0x20] sm:$0xff] }
0x19f0   : > { %4908 = vadd.xlane.f32.xlu0 %v4907_v21  ;;  %v6153_v21 = vpack.c.bf16 %v5108_v6, %v5107_v4  ;;  %v7015_v4 = vmov 1.0  }
0x19f1   : > { %4911 = vadd.xlane.f32.xlu1 %v4910_v29  ;;  %v5109_v29 = vld [vmem:[%s8150_s22 + $0x30] sm:$0xff] }
0x19f2   : > { %v6157_v8 = vpack.c.bf16 %v5110_v7, %v5109_v29 }
0x1a79   : > { %v4904_v17 = vpop.xlane.xlu0 %4903 }
0x1a7a   : > { %v4919_v5 = vrot.slane %v4904_v17, 4  ;;  %v4901_v25 = vpop.xlane.xlu1 %4900 }
0x1a7b   : > { %v4913_v28 = vrot.slane %v4901_v25, 4 }
0x1a7c   : > { %v4920_v30 = vadd.f32 %v4919_v5, %v4904_v17  ;;  %v5114_v17 = vld [vmem:[%s8150_s22 + $0x58] sm:$0xff] }
0x1a7d   : > { %v4914_v3 = vadd.f32 %v4913_v28, %v4901_v25  ;;  %v4909_v18 = vpop.xlane.xlu0 %4908  ;;  %v6165_v5 = vpack.c.bf16 %v5114_v17, %v5113_v15  ;;  %v5115_v25 = vld [vmem:[%s8150_s22 + $0x60] sm:$0xff]  ;;  %v5116_v28 = vld [vmem:[%s8150_s22 + $0x68] sm:$0xff] }
0x1a7e   : > { %v4921_v19 = vrot.slane %v4920_v30, 2  ;;  %v4927_v13 = vrot.slane %v4909_v18, 4  ;;  %v4912_v9 = vpop.xlane.xlu1 %4911 }
0x1a7f   : > { %v4915_v11 = vrot.slane %v4914_v3, 2  ;;  %v4933_v22 = vrot.slane %v4912_v9, 4 }
0x1a80   : > { %v4922_v26 = vadd.f32 %v4921_v19, %v4920_v30  ;;  %v4928_v23 = vadd.f32 %v4927_v13, %v4909_v18  ;;  %v6169_v30 = vpack.c.bf16 %v5116_v28, %v5115_v25  ;;  %v5118_v18 = vld [vmem:[%s8150_s22 + $0x78] sm:$0xff]  ;;  %v5619_v13 = vld [vmem:[%s8238_s5] ss:$0 sm:$0xff]  ;;  %s6896_s5 = scalar_lea.vmem %s8083_s7, 256 }
0x1a81   : > { %v4916_v31 = vadd.f32 %v4915_v11, %v4914_v3  ;;  %v4934_v34 = vadd.f32 %v4933_v22, %v4912_v9  ;;  %v5117_v3 = vld [vmem:[%s8150_s22 + $0x70] sm:$0xff]  ;;  %v5622_v25 = vld [vmem:[%s8239_s29] ss:$0 sm:$0xff]  ;;  %p6897_p5 = scmp.ne.s32.totalorder %s8083_s7, %s6896_s5  ;;  %s6902_s29 = scalar_lea.vmem %s6901_s23, 512 }
0x1a82   : > { %v4923_v37 = vrot.slane %v4922_v26, 1  ;;  %v4929_v38 = vrot.slane %v4928_v23, 2  ;;  %v6173_v19 = vpack.c.bf16 %v5118_v18, %v5117_v3  ;;  %p6904_p3 = scmp.lt.s32.totalorder %s6902_s29, %s6896_s5 }
0x1a83   : > { %v4917_v40 = vrot.slane %v4916_v31, 1  ;;  %v4935_v42 = vrot.slane %v4934_v34, 2  ;;  %p6898_p12 = pnand %p6897_p5, %p8243_p9 }
0x1a84   : > { %v4924_v43 = vadd.f32 %v4923_v37, %v4922_v26  ;;  %v4930_v44 = vadd.f32 %v4929_v38, %v4928_v23  ;;  %p6905_p4 = por %p6904_p3, %p6903_p2 }
0x1a85   : > { %v4918_v46 = vadd.f32 %v4917_v40, %v4916_v31  ;;  %v4936_v47 = vadd.f32 %v4935_v42, %v4934_v34  ;;  %p6899_p10 = pneg %p6898_p12 }
0x1a86   : > { %v4931_v48 = vrot.slane %v4930_v44, 1  ;;  %v4926_v20 = vmul.f32 0.00390625, %v4924_v43 }
0x1a87   : > { %v4925_v49 = vmul.f32 0.00390625, %v4918_v46  ;;  %v4937_v50 = vrot.slane %v4936_v47, 1  ;;  %p6906_p7 = pnand %p6905_p4, %p6899_p10 }
0x1a88   : > { %v4932_v51 = vadd.f32 %v4931_v48, %v4930_v44  ;;  %v4942_v54 = vmul.f32 %v4926_v20, %v4926_v20  ;;  %v4946_v45 = vsub.f32 %v7987_v0, %v4926_v20  ;;  %v5103_v0 = vld [vmem:[%s8150_s22] sm:$0xff] }
0x1a89   : > { %v4941_v52 = vmul.f32 %v4925_v49, %v4925_v49  ;;  %v4938_v53 = vadd.f32 %v4937_v50, %v4936_v47  ;;  %v4945_v57 = vsub.f32 %v7990_v1, %v4925_v49 }
0x1a8a   : > { %v4939_v27 = vmul.f32 0.00390625, %v4932_v51 }
0x1a8b   : > { %v4940_v55 = vmul.f32 0.00390625, %v4938_v53 }
0x1a8c   : > { %v4943_v24 = vsub.f32 %v4939_v27, %v4941_v52 }
0x1a8d   : > { %v4944_v39 = vsub.f32 %v4940_v55, %v4942_v54 }
0x1a8e   : > { %v4947_v56 = vadd.f32 1e-05, %v4943_v24 }
0x1a8f   : > { %v4948_v36 = vadd.f32 1e-05, %v4944_v39 }
0x1a90   : > { %6458 = vrsqrt.f32 %v4947_v56 }
0x1a91   : > { %6460 = vrsqrt.f32 %v4948_v36 }
0x1a9a   : > { %v6459_v58 = vpop.eup %6458 }
0x1a9b   : > { %v6461_v41 = vpop.eup %6460  ;;  %v4951_v59 = vmul.f32 %v6459_v58, %v4945_v57 }
0x1a9c   : > { %v4952_v60 = vmul.f32 %v6461_v41, %v4946_v45 }
0x1a9d   : > { %v4953_v61 = vmul.f32 %v4951_v59, %v7812_v16 }
0x1a9e   : > { %v4954_v33 = vmul.f32 %v4952_v60, %v7812_v16  ;;  %v5104_v16 = vld [vmem:[%s8150_s22 + $0x8] sm:$0xff] }
0x1a9f   : > { %v8007_v62 = vadd.f32 %v4953_v61, %v7814_v12  ;;  %v6145_v1 = vpack.c.bf16 %v5104_v16, %v5103_v0 }
0x1aa0   : > { %v8010_v63 = vadd.f32 %v4954_v33, %v7814_v12  ;;  %v5105_v12 = vld [vmem:[%s8150_s22 + $0x10] sm:$0xff] }
0x1aa1   : > { %6051 = vmatprep.mubr.msk.f32.mxu1 %vm997_vm0, %v8007_v62  ;;  %6146 = vmatprep.subr.bf16.mxu0 %v6145_v1  ;;  %v6149_v35 = vpack.c.bf16 %v5106_v2, %v5105_v12 }
0x1aa2   : > { %6052 = vmatmul.mubr.msk.f32.vlgmr.msra.gmra.mrb[48].mxu1 %vm997_vm0, %v8010_v63  ;;  %6148 = vmatpush3.bf16.msra.mxu0 %v6145_v1 }
0x1aa3   : > { %6150 = vmatprep.subr.bf16.mxu0 %v6149_v35 }
0x1aa6   : > { %6152 = vmatpush3.bf16.msra.mxu0 %v6149_v35 }
0x1aa7   : > { %6154 = vmatprep.subr.bf16.mxu0 %v6153_v21 }
0x1aaa   : > { %6156 = vmatpush3.bf16.msra.mxu0 %v6153_v21 }
0x1aab   : > { %6158 = vmatprep.subr.bf16.mxu0 %v6157_v8 }
0x1aae   : > { %6160 = vmatpush3.bf16.msra.mxu0 %v6157_v8 }
0x1aaf   : > { %6162 = vmatprep.subr.bf16.mxu0 %v6161_v14 }
0x1ab2   : > { %6164 = vmatpush3.bf16.msra.mxu0 %v6161_v14 }
0x1ab3   : > { %6166 = vmatprep.subr.bf16.mxu0 %v6165_v5 }
0x1ab6   : > { %6168 = vmatpush3.bf16.msra.mxu0 %v6165_v5 }
0x1ab7   : > { %6170 = vmatprep.subr.bf16.mxu0 %v6169_v30 }
0x1aba   : > { %6172 = vmatpush3.bf16.msra.mxu0 %v6169_v30 }
0x1abb   : > { %6174 = vmatprep.subr.bf16.mxu0 %v6173_v19 }
0x1abe   : > { %6176 = vmatpush3.bf16.msra.mxu0 %v6173_v19 }
0x1b75   : > { %v6053_v9 = vpop.f32.mrb[48].mxu1 }
0x1b76   : > { %v5046_v11 = vadd.f32 %v6053_v9, %v5619_v13  ;;  %v5040_v22 = vpop.f32.mrb[49].mxu1 }
0x1b77   : > { %v5041_v26 = vadd.f32 %v5619_v13, %v5040_v22 }
0x1b78   : > { %v5052_v23 = vmul.f32 0.70710677, %v5046_v11  ;;  %v5050_v15 = vmul.f32 0.5, %v5046_v11 }
0x1b79   : > { %v5051_v31 = vmul.f32 0.70710677, %v5041_v26  ;;  %v5049_v32 = vmul.f32 0.5, %v5041_v26 }
0x1b7a   : > { %v5058_v34 = vand.u32 2147483647, %v5052_v23  ;;  %vm5054_vm4 = vcmp.lt.f32.partialorder %v5052_v23, 0.0 }
0x1b7b   : > { %v5057_v37 = vand.u32 2147483647, %v5051_v31  ;;  %vm5053_vm5 = vcmp.lt.f32.partialorder %v5051_v31, 0.0  ;;  %v5056_v6 = vsel %vm5054_vm4, -1.0, %v7015_v4 }
0x1b7c   : > { %v5060_v38 = vmul.f32 0.3275911, %v5058_v34  ;;  %v5086_v44 = vsub.f32 0.0, %v5058_v34  ;;  %v5055_v7 = vsel %vm5053_vm5, -1.0, %v7015_v4 }
0x1b7d   : > { %v5059_v40 = vmul.f32 0.3275911, %v5057_v37  ;;  %v5085_v46 = vsub.f32 0.0, %v5057_v37 }
0x1b7e   : > { %v5062_v42 = vadd.f32 1.0, %v5060_v38  ;;  %v5088_v48 = vmul.f32 %v5086_v44, %v5058_v34 }
0x1b7f   : > { %v5061_v43 = vadd.f32 1.0, %v5059_v40  ;;  %v5087_v50 = vmul.f32 %v5085_v46, %v5057_v37 }
0x1b80   : > { %6462 = vrcp.f32 %v5062_v42  ;;  %v5091_v53 = vmul.f32 1.442695, %v5088_v48 }
0x1b81   : > { %6464 = vrcp.f32 %v5061_v43  ;;  %v5089_v55 = vmul.f32 1.442695, %v5087_v50 }
0x1b82   : > { %6466 = vpow2.f32 %v5091_v53 }
0x1b83   : > { %6468 = vpow2.f32 %v5089_v55 }
0x1b8a   : > { %v6463_v47 = vpop.eup %6462 }
0x1b8b   : > { %v6465_v20 = vpop.eup %6464  ;;  %v5068_v49 = vmul.f32 1.0614054, %v6463_v47 }
0x1b8c   : > { %v5067_v51 = vmul.f32 1.0614054, %v6465_v20  ;;  %v6467_v0 = vpop.eup %6466 }
0x1b8d   : > { %v5070_v52 = vadd.f32 -1.4531521, %v5068_v49  ;;  %v6469_v1 = vpop.eup %6468 }
0x1b8e   : > { %v5069_v27 = vadd.f32 -1.4531521, %v5067_v51 }
0x1b8f   : > { %v5072_v54 = vmul.f32 %v6463_v47, %v5070_v52 }
0x1b90   : > { %v5071_v24 = vmul.f32 %v6465_v20, %v5069_v27 }
0x1b91   : > { %v5074_v39 = vadd.f32 1.4214138, %v5072_v54 }
0x1b92   : > { %v5073_v56 = vadd.f32 1.4214138, %v5071_v24 }
0x1b93   : > { %v5076_v36 = vmul.f32 %v6463_v47, %v5074_v39 }
0x1b94   : > { %v5075_v57 = vmul.f32 %v6465_v20, %v5073_v56 }
0x1b95   : > { %v5078_v58 = vadd.f32 -0.28449672, %v5076_v36 }
0x1b96   : > { %v5077_v45 = vadd.f32 -0.28449672, %v5075_v57 }
0x1b97   : > { %v5080_v41 = vmul.f32 %v6463_v47, %v5078_v58 }
0x1b98   : > { %v5079_v59 = vmul.f32 %v6465_v20, %v5077_v45 }
0x1b99   : > { %v5082_v60 = vadd.f32 0.2548296, %v5080_v41 }
0x1b9a   : > { %v5081_v61 = vadd.f32 0.2548296, %v5079_v59 }
0x1b9b   : > { %v5084_v33 = vmul.f32 %v6463_v47, %v5082_v60 }
0x1b9c   : > { %v5083_v16 = vmul.f32 %v6465_v20, %v5081_v61 }
0x1b9d   : > { %v5094_v12 = vmul.f32 %v6467_v0, %v5084_v33 }
0x1b9e   : > { %v5093_v2 = vmul.f32 %v6469_v1, %v5083_v16 }
0x1b9f   : > { %v5096_v35 = vsub.f32 1.0, %v5094_v12 }
0x1ba0   : > { %v5095_v21 = vsub.f32 1.0, %v5093_v2 }
0x1ba1   : > { %v5098_v29 = vmul.f32 %v5096_v35, %v5056_v6 }
0x1ba2   : > { %v5097_v8 = vmul.f32 %v5095_v21, %v5055_v7 }
0x1ba3   : > { %v5100_v10 = vadd.f32 1.0, %v5098_v29 }
0x1ba4   : > { %v5099_v14 = vadd.f32 1.0, %v5097_v8  ;;  %v6474_v8 = vld [vmem:[#allocation22] sm:$0xff] }
0x1ba5   : > { %v5102_v5 = vmul.f32 %v5100_v10, %v5050_v15 }
0x1ba6   : > { %v5101_v17 = vmul.f32 %v5099_v14, %v5049_v32  ;;  %v6475_v14 = vld [vmem:[#allocation23] sm:$0xff] }
0x1ba8   : > { %6086 = vmatprep.mubr.f32.mxu0 %v5101_v17 }
0x1ba9   : > { %6087 = vmatmul.mubr.f32.vlgmr.msra.gmra.mrb[32].mxu0 %v5102_v5 }
0x1c7c   : > { %v6088_v28 = vpop.f32.mrb[32].mxu0 }
0x1c7d   : > { %v5198_v30 = vadd.f32 %v6088_v28, %v5622_v25  ;;  %v5192_v3 = vpop.f32.mrb[33].mxu0 }
0x1c7e   : > { %v5193_v18 = vadd.f32 %v5622_v25, %v5192_v3 }
0x1c7f   : > { %v5202_v19 = vadd.f32 %v5198_v30, %v8010_v63 }
0x1c80   : > { %v5201_v13 = vadd.f32 %v5193_v18, %v8007_v62 }
0x1c81   : > { %v5206_v9 = vsel %vm997_vm0, %v5202_v19, 0.0  ;;  %v5210_v22 = vmul.f32 %v5202_v19, %v5202_v19 }
0x1c82   : > { %5207 = vadd.xlane.f32.xlu1 %v5206_v9  ;;  %v5203_v11 = vsel %vm997_vm0, %v5201_v13, 0.0  ;;  %v5209_v26 = vmul.f32 %v5201_v13, %v5201_v13 }
0x1c83   : > { %5204 = vadd.xlane.f32.xlu0 %v5203_v11  ;;  %v5214_v23 = vsel %vm997_vm0, %v5210_v22, 0.0 }
0x1c84   : > { %v5211_v31 = vsel %vm997_vm0, %v5209_v26, 0.0 }
0x1c86   : > { %5215 = vadd.xlane.f32.xlu1 %v5214_v23 }
0x1c87   : > { %5212 = vadd.xlane.f32.xlu0 %v5211_v31 }
0x1d0f   : > { %v5208_v34 = vpop.xlane.xlu1 %5207 }
0x1d10   : > { %v5223_v37 = vrot.slane %v5208_v34, 4  ;;  %v5205_v38 = vpop.xlane.xlu0 %5204 }
0x1d11   : > { %v5217_v63 = vrot.slane %v5205_v38, 4 }
0x1d12   : > { %v5224_v40 = vadd.f32 %v5223_v37, %v5208_v34 }
0x1d13   : > { %v5218_v62 = vadd.f32 %v5217_v63, %v5205_v38  ;;  %v5216_v42 = vpop.xlane.xlu1 %5215 }
0x1d14   : > { %v5225_v43 = vrot.slane %v5224_v40, 2  ;;  %v5237_v44 = vrot.slane %v5216_v42, 4  ;;  %v5213_v46 = vpop.xlane.xlu0 %5212 }
0x1d15   : > { %v5219_v47 = vrot.slane %v5218_v62, 2  ;;  %v5231_v48 = vrot.slane %v5213_v46, 4 }
0x1d16   : > { %v5226_v20 = vadd.f32 %v5225_v43, %v5224_v40  ;;  %v5238_v49 = vadd.f32 %v5237_v44, %v5216_v42 }
0x1d17   : > { %v5220_v50 = vadd.f32 %v5219_v47, %v5218_v62  ;;  %v5232_v51 = vadd.f32 %v5231_v48, %v5213_v46 }
0x1d18   : > { %v5227_v52 = vrot.slane %v5226_v20, 1  ;;  %v5239_v53 = vrot.slane %v5238_v49, 2 }
0x1d19   : > { %v5221_v27 = vrot.slane %v5220_v50, 1  ;;  %v5233_v54 = vrot.slane %v5232_v51, 2 }
0x1d1a   : > { %v5228_v55 = vadd.f32 %v5227_v52, %v5226_v20  ;;  %v5240_v24 = vadd.f32 %v5239_v53, %v5238_v49 }
0x1d1b   : > { %v5222_v39 = vadd.f32 %v5221_v27, %v5220_v50  ;;  %v5234_v56 = vadd.f32 %v5233_v54, %v5232_v51 }
0x1d1c   : > { %v5230_v36 = vmul.f32 0.00390625, %v5228_v55  ;;  %v5241_v57 = vrot.slane %v5240_v24, 1 }
0x1d1d   : > { %v5229_v58 = vmul.f32 0.00390625, %v5222_v39  ;;  %v5235_v45 = vrot.slane %v5234_v56, 1 }
0x1d1e   : > { %v5242_v41 = vadd.f32 %v5241_v57, %v5240_v24  ;;  %v5246_v60 = vmul.f32 %v5230_v36, %v5230_v36  ;;  %v5250_v35 = vsub.f32 %v5202_v19, %v5230_v36 }
0x1d1f   : > { %v5236_v59 = vadd.f32 %v5235_v45, %v5234_v56  ;;  %v5245_v33 = vmul.f32 %v5229_v58, %v5229_v58  ;;  %v5249_v6 = vsub.f32 %v5201_v13, %v5229_v58 }
0x1d20   : > { %v5244_v61 = vmul.f32 0.00390625, %v5242_v41 }
0x1d21   : > { %v5243_v0 = vmul.f32 0.00390625, %v5236_v59 }
0x1d22   : > { %v5248_v16 = vsub.f32 %v5244_v61, %v5246_v60 }
0x1d23   : > { %v5247_v1 = vsub.f32 %v5243_v0, %v5245_v33 }
0x1d24   : > { %v5252_v12 = vadd.f32 1e-05, %v5248_v16 }
0x1d25   : > { %v5251_v2 = vadd.f32 1e-05, %v5247_v1 }
0x1d26   : > { %6470 = vrsqrt.f32 %v5252_v12 }
0x1d27   : > { %6472 = vrsqrt.f32 %v5251_v2 }
0x1d30   : > { %v6471_v4 = vpop.eup %6470 }
0x1d31   : > { %v6473_v21 = vpop.eup %6472  ;;  %v5256_v29 = vmul.f32 %v6471_v4, %v5250_v35 }
0x1d32   : > { %v5255_v7 = vmul.f32 %v6473_v21, %v5249_v6 }
0x1d33   : > { %v5258_v10 = vmul.f32 %v6474_v8, %v5256_v29 }
0x1d34   : > { %v5257_v32 = vmul.f32 %v6474_v8, %v5255_v7 }
0x1d35   : > { %v5260_v15 = vadd.f32 %v6475_v14, %v5258_v10 }
0x1d36   : > { %v5259_v17 = vadd.f32 %v6475_v14, %v5257_v32 }
0x1d37   : > { %5262 = vst.msk [vmem:[%s945_s8 + $0x8] sm:$0xff] %vm997_vm0, %v5260_v15 }
0x1d38   : > { %5261 = vst.msk [vmem:[%s945_s8] sm:$0xff] %vm997_vm0, %v5259_v17 }
0x1d39   : > { %6909 = shalt.err (!%p6906_p7)
}
0x1d3a   : > { %s6910_s30 = scalar_lea.hbm %s8081_s9, 256  ;;  %s6914_s0 = scalar_lea.hbm %s8242_s3, 512 }
0x1d3b   : > { %p6911_p8 = scmp.ne.s32.totalorder %s8081_s9, %s6910_s30  ;;  %p6915_p0 = scmp.lt.u32.totalorder %s8081_s9, %s8242_s3 }
0x1d3c   : > { %p6916_p1 = scmp.lt.u32.totalorder %s6914_s0, %s6910_s30  ;;  %p6918_p5 = scmp.lt.u32.totalorder %s6910_s30, %s8081_s9 }
0x1d3d   : > { %p6912_p11 = pnand %p6911_p8, %p8243_p9 }
0x1d3e   : > { %p6917_p6 = por %p6916_p1, %p6915_p0 }
0x1d3f   : > { %p6913_p13 = pneg %p6912_p11 }
0x1d40   : > { %p6919_p12 = por %p6918_p5, %p6917_p6 }
0x1d42   : > { %p6920_p10 = pnand %p6919_p12, %p6913_p13 }
0x1d44   : > { %6923 = shalt.err (!%p6920_p10)
}
0x1d45   : > { %s7017_s4 = smov 128   ;;  %s7018_s5 = smov 8  }
0x1d46   : > { %6249 = dma.vmem_to_hbm [thread:$0]  (%p8243_p9), %s8083_s7, 256, %s8081_s9, %s8087_s6, %s7017_s4, %s7017_s4, %s7018_s5  }
0x1d47 PF: > { %s8244_s28 = sld [smem:[#allocation39_spill]]  ;;  %s8245_s23 = sld [smem:[#allocation36_spill]] }
0x1d48   : > { %s8246_s29 = sld [smem:[#allocation43_spill]] }
0x1d4d   : > { %p6331_p2 = scmp.ge.s32.totalorder %s8244_s28, 2  ;;  %s5292_s27 = sand.u32 1, %s8245_s23  }
0x1d4e   : > { %p8247_p3 = scmp.ne.s32.totalorder %s8246_s29, 0  ;;  %s5293_s30 = scalar_lea.sflag [#allocation4], %s5292_s27 }
0x1d50   : > { %p6298_p4 = pnand %p6331_p2, %p8247_p3 }
0x1d52   : > { %6973 = dma.done.wait (!%p6298_p4), %s5293_s30, 256  }
0x1d53   : > { %6975 = vsyncadd (!%p6298_p4), %s5293_s30, 4294967040  ;;  %s8248_s28 = sld [smem:[#allocation40_spill]]  ;;  %s8249_s5 = sld [smem:[#allocation37_spill]] }
0x1d54   : > { %s8250_s26 = sld [smem:[#allocation38_spill]]  ;;  %s8251_s27 = sld [smem:[#allocation41_spill]] }
0x1d59   : > { %p42_p7 = scmp.ge.s32.totalorder %s8248_s28, 4  }
0x1d5b   :  { %44 = sbr.rel (!%p42_p7) target bundleno = 26 (0x1a), region = 215 }
0x1d62   :  { %5298 = vsyncpa [#allocation3], 1 }
0x1d63   :  { %5300 = vsyncpa [#allocation3 + $0x1], 1 }
0x1d64   :  { %5301 = vsyncpa [#allocation6], 1 }
0x1d65   :  { %5302 = vsyncpa [#allocation9], 1 }
0x1d66   :  { %5303 = vsyncpa [#allocation12], 1 }
0x1d67   :  { %5304 = vsyncpa [#allocation15], 1 }
0x1d68   :  { %5305 = vsyncpa [#allocation18], 1 }
0x1d69   :  { %5306 = vsyncpa [#allocation21], 1 }
0x1d6a   :  { %5307 = vsyncpa [#allocation24], 1 }
0x1d6b   :  { %5308 = vsyncpa [#allocation4], 1 }
0x1d6c   :  { %5310 = vsyncpa [#allocation4 + $0x1], 1 }

</bundles_post_ra>
